<compile_context>
chip_gen: v6e
topology: v6e:2x2x1
jax: 0.10.0
libtpu: 0.0.40
codegen_flags: <defaults>
</compile_context>

<pallas_src>
import functools

import jax
import jax.numpy as jnp
import numpy as np
from jax.experimental import pallas as pl
from jax.experimental.pallas import tpu as pltpu


def _gcn_block_kernel(x_ref, at_ref, wproj_ref, w2_ref, t1_ref, bias_ref,
                      out_ref, *, K, Bc):
    # x_ref:    (G*J, B*c_in)            rows = (group, joint), cols = (sample, ch)
    # at_ref:   (K, G*J, G*J)            kron(I_G, A[k]^T)
    # wproj_ref:(B*c_in, (K+1)*B*c_out)  block-diag [w1_eff(k=0..K-1) | wr_eff]
    # w2_ref:   (B*c_out, B*c_out)       block-diag tcn conv (BN2 folded)
    # t1_ref:   (G*J, B*c_out)  f32      BN1 shift + gcn bias aggregated through A
    # bias_ref: (G*J, B*c_out)  f32      (b2_eff + br_eff), pre-tiled
    # out_ref:  (G*J, B*c_out)  f32
    cdt = x_ref.dtype                                      # matmul compute dtype

    # Fused gcn (all K branches) + residual 1x1 convs; BN scales pre-folded.
    p = jax.lax.dot_general(x_ref[...], wproj_ref[...], (((1,), (0,)), ((), ())),
                            preferred_element_type=jnp.float32)

    # Residual branch = last lane-aligned column block of the projection (f32).
    r = p[:, K * Bc:(K + 1) * Bc]                          # (G*J, B*c_out)

    # Graph aggregation: z = sum_k kron(I_G, A_k^T) @ y_k.  Lane-aligned slices;
    # K is small and static, so the loop unrolls into K wide MXU contractions.
    pk = p[:, 0:K * Bc].astype(cdt)
    z = jax.lax.dot_general(at_ref[0], pk[:, 0:Bc], (((1,), (0,)), ((), ())),
                            preferred_element_type=jnp.float32)
    for k in range(1, K):
        z = z + jax.lax.dot_general(at_ref[k], pk[:, k * Bc:(k + 1) * Bc],
                                    (((1,), (0,)), ((), ())),
                                    preferred_element_type=jnp.float32)

    # tcn: BN1 (folded) -> ReLU -> (dropout: id) -> 1x1 conv -> BN2 (folded).
    h = jnp.maximum(z + t1_ref[...], 0.0)
    h2 = jax.lax.dot_general(h.astype(cdt), w2_ref[...], (((1,), (0,)), ((), ())),
                             preferred_element_type=jnp.float32)

    # Residual add + folded per-channel biases + exact (erf) GELU.
    o = h2 + r + bias_ref[...]
    out_ref[...] = 0.5 * o * (1.0 + jax.lax.erf(o * 0.7071067811865476))


def gcn_block_forward(x, A, params, *, batch_block=32, group_block=8,
                      compute_dtype=jnp.bfloat16, single_buffer_constants=True):
    """x: (N, J, C_in) f32, A: (K, J, J) f32 -> ((N, J, C_out), A)."""
    f32 = jnp.float32
    N, J, c_in = x.shape
    K = A.shape[0]
    c_out = params["w2"].shape[0]

    B, G = batch_block, group_block
    assert N % (G * B) == 0, "N must be divisible by group_block*batch_block"
    assert (B * c_in) % 128 == 0, "batch_block*c_in must be lane-aligned (128)"
    assert (B * c_out) % 128 == 0, "batch_block*c_out must be lane-aligned (128)"
    assert (G * J) % 8 == 0, "group_block*J must be sublane-aligned (8)"
    Bc_in, Bc_out, GJ = B * c_in, B * c_out, G * J
    NG = N // (G * B)                                      # grid steps

    w1 = params["w1"].astype(f32); b1 = params["b1"].astype(f32)
    w2 = params["w2"].astype(f32); b2 = params["b2"].astype(f32)
    wr = params["wr"].astype(f32); br = params["br"].astype(f32)
    s1 = params["s1"].astype(f32); t1 = params["t1"].astype(f32)
    s2 = params["s2"].astype(f32); t2 = params["t2"].astype(f32)
    sr = params["sr"].astype(f32); tr = params["tr"].astype(f32)
    A32 = A.astype(f32)

    # --- host-side folding of BatchNorm into weights / biases ---------------
    s1k = jnp.tile(s1, K)                                  # scale per (k, c) row
    w1_eff = w1 * s1k[:, None]                             # (K*c_out, c_in)
    b1_eff = b1 * s1k
    w2_eff = w2 * s2[:, None]                              # (c_out, c_out)
    b2_eff = b2 * s2 + t2
    wr_eff = wr * sr[:, None]                              # (c_out, c_in)
    br_eff = br * sr + tr

    # gcn conv bias propagated through the graph aggregation + BN1 shift.
    asum = A32.sum(axis=1)                                 # (K, J): sum_v A[k,v,w]
    bias_z = jnp.einsum("kw,kc->wc", asum, b1_eff.reshape(K, c_out))
    t1_full = bias_z + t1[None, :]                         # (J, c_out)

    # Block-diagonal (per-sample) weight matrices.
    eye_b = jnp.eye(B, dtype=f32)
    proj_blocks = [jnp.kron(eye_b, w1_eff[k * c_out:(k + 1) * c_out, :].T)
                   for k in range(K)]
    proj_blocks.append(jnp.kron(eye_b, wr_eff.T))
    wproj = jnp.concatenate(proj_blocks, axis=1)           # (B*c_in, (K+1)*B*c_out)
    w2_blk = jnp.kron(eye_b, w2_eff.T)                     # (B*c_out, B*c_out)

    # Block-diagonal (per-group) adjacency for the sublane-stacked layout.
    eye_g = jnp.eye(G, dtype=f32)
    a_blk = jnp.stack([jnp.kron(eye_g, A32[k].T) for k in range(K)])  # (K, GJ, GJ)

    # f32 epilogue constants, pre-tiled to full block shape (no in-kernel bcast).
    t1_tiled = jnp.tile(t1_full, (G, B))                           # (GJ, B*c_out)
    bias_tiled = jnp.tile((b2_eff + br_eff)[None, :], (GJ, B))     # (GJ, B*c_out)

    # bf16 matmul operands (f32 on the debug path).
    cdt = compute_dtype
    wproj_c, w2_c, a_c = wproj.astype(cdt), w2_blk.astype(cdt), a_blk.astype(cdt)

    # Lane-dense, sublane-stacked input slab:
    #   rows = (block, group, joint), cols = (sample-in-group, channel).
    x2 = (x.astype(f32)
          .reshape(NG, G, B, J, c_in)
          .transpose(0, 1, 3, 2, 4)
          .reshape(NG * GJ, Bc_in)
          .astype(cdt))

    kernel = functools.partial(_gcn_block_kernel, K=K, Bc=Bc_out)

    def _call(single_buf):
        # Constant operands: fixed block index -> DMA'd once, reused every step.
        const_kw = dict(pipeline_mode=pl.Buffered(1)) if single_buf else {}
        in_specs = [
            pl.BlockSpec((GJ, Bc_in), lambda i: (i, 0)),               # x slab
            pl.BlockSpec(a_c.shape, lambda i: (0, 0, 0), **const_kw),  # A^T blk-diag
            pl.BlockSpec(wproj_c.shape, lambda i: (0, 0), **const_kw),  # fused proj
            pl.BlockSpec(w2_c.shape, lambda i: (0, 0), **const_kw),     # tcn conv
            pl.BlockSpec(t1_tiled.shape, lambda i: (0, 0), **const_kw),  # BN1 shift
            pl.BlockSpec(bias_tiled.shape, lambda i: (0, 0), **const_kw),  # bias
        ]
        return pl.pallas_call(
            kernel,
            out_shape=jax.ShapeDtypeStruct((NG * GJ, Bc_out), f32),
            grid=(NG,),
            in_specs=in_specs,
            out_specs=pl.BlockSpec((GJ, Bc_out), lambda i: (i, 0)),
            compiler_params=pltpu.CompilerParams(
                dimension_semantics=("parallel",)),
        )(x2, a_c, wproj_c, w2_c, t1_tiled, bias_tiled)

    if single_buffer_constants:
        try:
            out2 = jax.block_until_ready(_call(True))
        except Exception:
            # pl.Buffered(1) unsupported on this JAX build -> default buffering.
            out2 = _call(False)
    else:
        out2 = _call(False)

    # Undo the sublane/lane-dense layout: (NG*GJ, B*c_out) -> (N, J, c_out).
    out = (out2.reshape(NG, G, J, B, c_out)
           .transpose(0, 1, 3, 2, 4)
           .reshape(N, J, c_out))
    return out, A


def _reference(x, A, p, K, c_out):
    """Pure-JAX reference mirroring the PyTorch NCHW forward exactly."""
    N, J, c_in = x.shape
    xn = jnp.transpose(x, (0, 2, 1)).reshape(N, c_in, 1, J)           # NCHW, T=1

    res = jnp.einsum("oc,nctv->notv", p["wr"], xn) + p["br"][None, :, None, None]
    res = res * p["sr"][None, :, None, None] + p["tr"][None, :, None, None]

    y = jnp.einsum("oc,nctv->notv", p["w1"], xn) + p["b1"][None, :, None, None]
    y = y.reshape(N, K, c_out, 1, J)
    z = jnp.einsum("nkctv,kvw->nctw", y, A)

    h = jnp.maximum(z * p["s1"][None, :, None, None] + p["t1"][None, :, None, None], 0.0)
    h = jnp.einsum("oc,nctv->notv", p["w2"], h) + p["b2"][None, :, None, None]
    h = h * p["s2"][None, :, None, None] + p["t2"][None, :, None, None]

    o = h + res
    o = jnp.transpose(o.reshape(N, c_out, J), (0, 2, 1))
    return jax.nn.gelu(o, approximate=False)


def _fold_bn(gamma, beta, mean, var, eps=1e-5):
    scale = gamma / jnp.sqrt(var + eps)
    return scale, beta - mean * scale


if __name__ == "__main__":
    # Small deterministic configuration (big enough to exercise the batched,
    # sublane-stacked tiling: 2 grid steps of (G*J, B*C) = (128, 256) blocks).
    N, J = 512, 16        # batch, joints (graph vertices)
    C_IN, C_OUT = 4, 8    # in/out channels (differ -> residual conv path)
    K = 3                 # spatial kernel size (number of adjacency matrices)
    B = 32                # samples per lane group  -> B*C_IN = 128 lanes
    G = 8                 # batch groups per block  -> G*J   = 128 sublanes

    key = jax.random.PRNGKey(0)
    ks = jax.random.split(key, 16)

    x = jax.random.normal(ks[0], (N, J, C_IN), jnp.float32)
    A = jax.random.normal(ks[1], (K, J, J), jnp.float32) * 0.2

    # gcn conv:  Conv2d(C_IN, C_OUT*K, (1,1))  -> weight (K*C_OUT, C_IN)
    w1 = jax.random.normal(ks[2], (K * C_OUT, C_IN), jnp.float32) * 0.3
    b1 = jax.random.normal(ks[3], (K * C_OUT,), jnp.float32) * 0.1
    # tcn conv:  Conv2d(C_OUT, C_OUT, (1,1))
    w2 = jax.random.normal(ks[4], (C_OUT, C_OUT), jnp.float32) * 0.3
    b2 = jax.random.normal(ks[5], (C_OUT,), jnp.float32) * 0.1
    # residual conv: Conv2d(C_IN, C_OUT, 1)
    wr = jax.random.normal(ks[6], (C_OUT, C_IN), jnp.float32) * 0.3
    br = jax.random.normal(ks[7], (C_OUT,), jnp.float32) * 0.1

    # Folded BatchNorm parameters (inference mode).
    def bn_params(k):
        kg, kb, km, kv = jax.random.split(k, 4)
        gamma = 1.0 + 0.1 * jax.random.normal(kg, (C_OUT,), jnp.float32)
        beta = 0.1 * jax.random.normal(kb, (C_OUT,), jnp.float32)
        mean = 0.1 * jax.random.normal(km, (C_OUT,), jnp.float32)
        var = 1.0 + 0.5 * jnp.abs(jax.random.normal(kv, (C_OUT,), jnp.float32))
        return _fold_bn(gamma, beta, mean, var)

    s1, t1 = bn_params(ks[8])    # tcn BN #1
    s2, t2 = bn_params(ks[9])    # tcn BN #2
    sr, tr = bn_params(ks[10])   # residual BN

    params = dict(w1=w1, b1=b1, s1=s1, t1=t1,
                  w2=w2, b2=b2, s2=s2, t2=t2,
                  wr=wr, br=br, sr=sr, tr=tr)

    ref = _reference(x, A, params, K, C_OUT)

    # Performance path: bf16 MXU operands, f32 accumulation + epilogue.
    out_bf16, A_out = gcn_block_forward(x, A, params, batch_block=B,
                                        group_block=G,
                                        compute_dtype=jnp.bfloat16)
    out_bf16 = jax.block_until_ready(out_bf16)
    np.testing.assert_allclose(np.asarray(out_bf16), np.asarray(ref),
                               rtol=5e-2, atol=5e-2)

    # f32 debug path: tight numerical check of the folding / layout logic.
    out_f32, _ = gcn_block_forward(x, A, params, batch_block=B,
                                   group_block=G, compute_dtype=jnp.float32)
    out_f32 = jax.block_until_ready(out_f32)
    np.testing.assert_allclose(np.asarray(out_f32), np.asarray(ref),
                               rtol=5e-4, atol=5e-4)

    assert out_bf16.shape == (N, J, C_OUT)
    assert A_out.shape == A.shape

    print("KERNEL_OK")
</pallas_src>

<mosaic_0001>
module attributes {stable_mosaic.version = 11 : i64} {
  func.func @_gcn_block_kernel(%arg0: i32, %arg1: memref<128x128xbf16, #tpu.memory_space<vmem>>, %arg2: memref<3x128x128xbf16, #tpu.memory_space<vmem>>, %arg3: memref<128x1024xbf16, #tpu.memory_space<vmem>>, %arg4: memref<256x256xbf16, #tpu.memory_space<vmem>>, %arg5: memref<128x256xf32, #tpu.memory_space<vmem>>, %arg6: memref<128x256xf32, #tpu.memory_space<vmem>>, %arg7: memref<128x256xf32, #tpu.memory_space<vmem>>) attributes {dimension_semantics = [#tpu.dimension_semantics<parallel>], iteration_bounds = array<i64: 2>, scalar_prefetch = 0 : i64, scratch_operands = 0 : i64, tpu.core_type = #tpu.core_type<tc>, window_params = [{transform_indices = @transform_0, window_bounds = array<i64: 128, 128>}, {pipeline_mode = #tpu.pipeline_mode<synchronous>, transform_indices = @transform_1, window_bounds = array<i64: 3, 128, 128>}, {pipeline_mode = #tpu.pipeline_mode<synchronous>, transform_indices = @transform_2, window_bounds = array<i64: 128, 1024>}, {pipeline_mode = #tpu.pipeline_mode<synchronous>, transform_indices = @transform_3, window_bounds = array<i64: 256, 256>}, {pipeline_mode = #tpu.pipeline_mode<synchronous>, transform_indices = @transform_4, window_bounds = array<i64: 128, 256>}, {pipeline_mode = #tpu.pipeline_mode<synchronous>, transform_indices = @transform_5, window_bounds = array<i64: 128, 256>}, {transform_indices = @transform_6, window_bounds = array<i64: 128, 256>}]} {
    %c0 = arith.constant 0 : index
    %c0_0 = arith.constant 0 : index
    %0 = vector.load %arg1[%c0, %c0_0] : memref<128x128xbf16, #tpu.memory_space<vmem>>, vector<128x128xbf16>
    %c0_1 = arith.constant 0 : index
    %c0_2 = arith.constant 0 : index
    %1 = vector.load %arg3[%c0_1, %c0_2] : memref<128x1024xbf16, #tpu.memory_space<vmem>>, vector<128x1024xbf16>
    %cst = arith.constant dense<0.000000e+00> : vector<128x1024xf32>
    %2 = tpu.matmul %0, %1, %cst {dimension_numbers = #tpu.dot_dimension_numbers<[1], [0], [0], [1], [0, 0, 1, 1], [], []>} : vector<128x128xbf16>, vector<128x1024xbf16>, vector<128x1024xf32> -> vector<128x1024xf32>
    %3 = vector.extract_strided_slice %2 {offsets = [0, 768], sizes = [128, 256], strides = [1, 1]} : vector<128x1024xf32> to vector<128x256xf32>
    %4 = vector.extract_strided_slice %2 {offsets = [0, 0], sizes = [128, 768], strides = [1, 1]} : vector<128x1024xf32> to vector<128x768xf32>
    %5 = arith.truncf %4 : vector<128x768xf32> to vector<128x768xbf16>
    %c0_3 = arith.constant 0 : index
    %c0_4 = arith.constant 0 : index
    %c0_5 = arith.constant 0 : index
    %6 = vector.load %arg2[%c0_3, %c0_4, %c0_5] : memref<3x128x128xbf16, #tpu.memory_space<vmem>>, vector<1x128x128xbf16>
    %7 = vector.shape_cast %6 : vector<1x128x128xbf16> to vector<128x128xbf16>
    %8 = vector.extract_strided_slice %5 {offsets = [0, 0], sizes = [128, 256], strides = [1, 1]} : vector<128x768xbf16> to vector<128x256xbf16>
    %cst_6 = arith.constant dense<0.000000e+00> : vector<128x256xf32>
    %9 = tpu.matmul %7, %8, %cst_6 {dimension_numbers = #tpu.dot_dimension_numbers<[1], [0], [0], [1], [0, 0, 1, 1], [], []>} : vector<128x128xbf16>, vector<128x256xbf16>, vector<128x256xf32> -> vector<128x256xf32>
    %c1 = arith.constant 1 : index
    %c0_7 = arith.constant 0 : index
    %c0_8 = arith.constant 0 : index
    %10 = vector.load %arg2[%c1, %c0_7, %c0_8] : memref<3x128x128xbf16, #tpu.memory_space<vmem>>, vector<1x128x128xbf16>
    %11 = vector.shape_cast %10 : vector<1x128x128xbf16> to vector<128x128xbf16>
    %12 = vector.extract_strided_slice %5 {offsets = [0, 256], sizes = [128, 256], strides = [1, 1]} : vector<128x768xbf16> to vector<128x256xbf16>
    %cst_9 = arith.constant dense<0.000000e+00> : vector<128x256xf32>
    %13 = tpu.matmul %11, %12, %cst_9 {dimension_numbers = #tpu.dot_dimension_numbers<[1], [0], [0], [1], [0, 0, 1, 1], [], []>} : vector<128x128xbf16>, vector<128x256xbf16>, vector<128x256xf32> -> vector<128x256xf32>
    %14 = arith.addf %9, %13 : vector<128x256xf32>
    %c2 = arith.constant 2 : index
    %c0_10 = arith.constant 0 : index
    %c0_11 = arith.constant 0 : index
    %15 = vector.load %arg2[%c2, %c0_10, %c0_11] : memref<3x128x128xbf16, #tpu.memory_space<vmem>>, vector<1x128x128xbf16>
    %16 = vector.shape_cast %15 : vector<1x128x128xbf16> to vector<128x128xbf16>
    %17 = vector.extract_strided_slice %5 {offsets = [0, 512], sizes = [128, 256], strides = [1, 1]} : vector<128x768xbf16> to vector<128x256xbf16>
    %cst_12 = arith.constant dense<0.000000e+00> : vector<128x256xf32>
    %18 = tpu.matmul %16, %17, %cst_12 {dimension_numbers = #tpu.dot_dimension_numbers<[1], [0], [0], [1], [0, 0, 1, 1], [], []>} : vector<128x128xbf16>, vector<128x256xbf16>, vector<128x256xf32> -> vector<128x256xf32>
    %19 = arith.addf %14, %18 : vector<128x256xf32>
    %c0_13 = arith.constant 0 : index
    %c0_14 = arith.constant 0 : index
    %20 = vector.load %arg5[%c0_13, %c0_14] : memref<128x256xf32, #tpu.memory_space<vmem>>, vector<128x256xf32>
    %21 = arith.addf %19, %20 : vector<128x256xf32>
    %cst_15 = arith.constant 0.000000e+00 : f32
    %22 = vector.broadcast %cst_15 : f32 to vector<128x256xf32>
    %23 = arith.maximumf %21, %22 : vector<128x256xf32>
    %24 = arith.truncf %23 : vector<128x256xf32> to vector<128x256xbf16>
    %c0_16 = arith.constant 0 : index
    %c0_17 = arith.constant 0 : index
    %25 = vector.load %arg4[%c0_16, %c0_17] : memref<256x256xbf16, #tpu.memory_space<vmem>>, vector<256x256xbf16>
    %cst_18 = arith.constant dense<0.000000e+00> : vector<128x256xf32>
    %26 = tpu.matmul %24, %25, %cst_18 {dimension_numbers = #tpu.dot_dimension_numbers<[1], [0], [0], [1], [0, 0, 1, 1], [], []>} : vector<128x256xbf16>, vector<256x256xbf16>, vector<128x256xf32> -> vector<128x256xf32>
    %27 = arith.addf %26, %3 : vector<128x256xf32>
    %c0_19 = arith.constant 0 : index
    %c0_20 = arith.constant 0 : index
    %28 = vector.load %arg6[%c0_19, %c0_20] : memref<128x256xf32, #tpu.memory_space<vmem>>, vector<128x256xf32>
    %29 = arith.addf %27, %28 : vector<128x256xf32>
    %cst_21 = arith.constant 5.000000e-01 : f32
    %30 = vector.broadcast %cst_21 : f32 to vector<128x256xf32>
    %31 = arith.mulf %30, %29 : vector<128x256xf32>
    %cst_22 = arith.constant 0.707106769 : f32
    %32 = vector.broadcast %cst_22 : f32 to vector<128x256xf32>
    %33 = arith.mulf %29, %32 : vector<128x256xf32>
    %34 = math.erf %33 : vector<128x256xf32>
    %cst_23 = arith.constant 1.000000e+00 : f32
    %35 = vector.broadcast %cst_23 : f32 to vector<128x256xf32>
    %36 = arith.addf %35, %34 : vector<128x256xf32>
    %37 = arith.mulf %31, %36 : vector<128x256xf32>
    %c0_24 = arith.constant 0 : index
    %c0_25 = arith.constant 0 : index
    %38 = vector.load %arg7[%c0_24, %c0_25] : memref<128x256xf32, #tpu.memory_space<vmem>>, vector<128x256xf32>
    tpu.vector_store %arg7[%c0_24, %c0_25], %37 {strides = array<i32>} : memref<128x256xf32, #tpu.memory_space<vmem>>, vector<128x256xf32>,
    return
  }
  func.func @transform_0(%arg0: i32) -> (i32, i32) {
    %c0_i32 = arith.constant 0 : i32
    %c0_i32_0 = arith.constant 0 : i32
    return %arg0, %c0_i32 : i32, i32
  }
  func.func @transform_1(%arg0: i32) -> (i32, i32, i32) {
    %c0_i32 = arith.constant 0 : i32
    %c0_i32_0 = arith.constant 0 : i32
    %c0_i32_1 = arith.constant 0 : i32
    %c0_i32_2 = arith.constant 0 : i32
    return %c0_i32, %c0_i32_0, %c0_i32_1 : i32, i32, i32
  }
  func.func @transform_2(%arg0: i32) -> (i32, i32) {
    %c0_i32 = arith.constant 0 : i32
    %c0_i32_0 = arith.constant 0 : i32
    %c0_i32_1 = arith.constant 0 : i32
    return %c0_i32, %c0_i32_0 : i32, i32
  }
  func.func @transform_3(%arg0: i32) -> (i32, i32) {
    %c0_i32 = arith.constant 0 : i32
    %c0_i32_0 = arith.constant 0 : i32
    %c0_i32_1 = arith.constant 0 : i32
    return %c0_i32, %c0_i32_0 : i32, i32
  }
  func.func @transform_4(%arg0: i32) -> (i32, i32) {
    %c0_i32 = arith.constant 0 : i32
    %c0_i32_0 = arith.constant 0 : i32
    %c0_i32_1 = arith.constant 0 : i32
    return %c0_i32, %c0_i32_0 : i32, i32
  }
  func.func @transform_5(%arg0: i32) -> (i32, i32) {
    %c0_i32 = arith.constant 0 : i32
    %c0_i32_0 = arith.constant 0 : i32
    %c0_i32_1 = arith.constant 0 : i32
    return %c0_i32, %c0_i32_0 : i32, i32
  }
  func.func @transform_6(%arg0: i32) -> (i32, i32) {
    %c0_i32 = arith.constant 0 : i32
    %c0_i32_0 = arith.constant 0 : i32
    return %arg0, %c0_i32 : i32, i32
  }
}

module attributes {stable_mosaic.version = 11 : i64} {
  func.func @_gcn_block_kernel(%arg0: i32, %arg1: memref<128x128xbf16, #tpu.memory_space<vmem>>, %arg2: memref<3x128x128xbf16, #tpu.memory_space<vmem>>, %arg3: memref<128x1024xbf16, #tpu.memory_space<vmem>>, %arg4: memref<256x256xbf16, #tpu.memory_space<vmem>>, %arg5: memref<128x256xf32, #tpu.memory_space<vmem>>, %arg6: memref<128x256xf32, #tpu.memory_space<vmem>>, %arg7: memref<128x256xf32, #tpu.memory_space<vmem>>) attributes {dimension_semantics = [#tpu.dimension_semantics<parallel>], iteration_bounds = array<i64: 2>, scalar_prefetch = 0 : i64, scratch_operands = 0 : i64, tpu.core_type = #tpu.core_type<tc>, window_params = [{transform_indices = @transform_0, window_bounds = array<i64: 128, 128>}, {pipeline_mode = #tpu.pipeline_mode<synchronous>, transform_indices = @transform_1, window_bounds = array<i64: 3, 128, 128>}, {pipeline_mode = #tpu.pipeline_mode<synchronous>, transform_indices = @transform_2, window_bounds = array<i64: 128, 1024>}, {pipeline_mode = #tpu.pipeline_mode<synchronous>, transform_indices = @transform_3, window_bounds = array<i64: 256, 256>}, {pipeline_mode = #tpu.pipeline_mode<synchronous>, transform_indices = @transform_4, window_bounds = array<i64: 128, 256>}, {pipeline_mode = #tpu.pipeline_mode<synchronous>, transform_indices = @transform_5, window_bounds = array<i64: 128, 256>}, {transform_indices = @transform_6, window_bounds = array<i64: 128, 256>}]} {
    %c0 = arith.constant 0 : index
    %c0_0 = arith.constant 0 : index
    %0 = vector.load %arg1[%c0, %c0_0] : memref<128x128xbf16, #tpu.memory_space<vmem>>, vector<128x128xbf16>
    %c0_1 = arith.constant 0 : index
    %c0_2 = arith.constant 0 : index
    %1 = vector.load %arg3[%c0_1, %c0_2] : memref<128x1024xbf16, #tpu.memory_space<vmem>>, vector<128x1024xbf16>
    %cst = arith.constant dense<0.000000e+00> : vector<128x1024xf32>
    %2 = tpu.matmul %0, %1, %cst {dimension_numbers = #tpu.dot_dimension_numbers<[1], [0], [0], [1], [0, 0, 1, 1], [], []>} : vector<128x128xbf16>, vector<128x1024xbf16>, vector<128x1024xf32> -> vector<128x1024xf32>
    %3 = vector.extract_strided_slice %2 {offsets = [0, 768], sizes = [128, 256], strides = [1, 1]} : vector<128x1024xf32> to vector<128x256xf32>
    %4 = vector.extract_strided_slice %2 {offsets = [0, 0], sizes = [128, 768], strides = [1, 1]} : vector<128x1024xf32> to vector<128x768xf32>
    %5 = arith.truncf %4 : vector<128x768xf32> to vector<128x768xbf16>
    %c0_3 = arith.constant 0 : index
    %c0_4 = arith.constant 0 : index
    %c0_5 = arith.constant 0 : index
    %6 = vector.load %arg2[%c0_3, %c0_4, %c0_5] : memref<3x128x128xbf16, #tpu.memory_space<vmem>>, vector<1x128x128xbf16>
    %7 = vector.shape_cast %6 : vector<1x128x128xbf16> to vector<128x128xbf16>
    %8 = vector.extract_strided_slice %5 {offsets = [0, 0], sizes = [128, 256], strides = [1, 1]} : vector<128x768xbf16> to vector<128x256xbf16>
    %cst_6 = arith.constant dense<0.000000e+00> : vector<128x256xf32>
    %9 = tpu.matmul %7, %8, %cst_6 {dimension_numbers = #tpu.dot_dimension_numbers<[1], [0], [0], [1], [0, 0, 1, 1], [], []>} : vector<128x128xbf16>, vector<128x256xbf16>, vector<128x256xf32> -> vector<128x256xf32>
    %c1 = arith.constant 1 : index
    %c0_7 = arith.constant 0 : index
    %c0_8 = arith.constant 0 : index
    %10 = vector.load %arg2[%c1, %c0_7, %c0_8] : memref<3x128x128xbf16, #tpu.memory_space<vmem>>, vector<1x128x128xbf16>
    %11 = vector.shape_cast %10 : vector<1x128x128xbf16> to vector<128x128xbf16>
    %12 = vector.extract_strided_slice %5 {offsets = [0, 256], sizes = [128, 256], strides = [1, 1]} : vector<128x768xbf16> to vector<128x256xbf16>
    %cst_9 = arith.constant dense<0.000000e+00> : vector<128x256xf32>
    %13 = tpu.matmul %11, %12, %cst_9 {dimension_numbers = #tpu.dot_dimension_numbers<[1], [0], [0], [1], [0, 0, 1, 1], [], []>} : vector<128x128xbf16>, vector<128x256xbf16>, vector<128x256xf32> -> vector<128x256xf32>
    %14 = arith.addf %9, %13 : vector<128x256xf32>
    %c2 = arith.constant 2 : index
    %c0_10 = arith.constant 0 : index
    %c0_11 = arith.constant 0 : index
    %15 = vector.load %arg2[%c2, %c0_10, %c0_11] : memref<3x128x128xbf16, #tpu.memory_space<vmem>>, vector<1x128x128xbf16>
    %16 = vector.shape_cast %15 : vector<1x128x128xbf16> to vector<128x128xbf16>
    %17 = vector.extract_strided_slice %5 {offsets = [0, 512], sizes = [128, 256], strides = [1, 1]} : vector<128x768xbf16> to vector<128x256xbf16>
    %cst_12 = arith.constant dense<0.000000e+00> : vector<128x256xf32>
    %18 = tpu.matmul %16, %17, %cst_12 {dimension_numbers = #tpu.dot_dimension_numbers<[1], [0], [0], [1], [0, 0, 1, 1], [], []>} : vector<128x128xbf16>, vector<128x256xbf16>, vector<128x256xf32> -> vector<128x256xf32>
    %19 = arith.addf %14, %18 : vector<128x256xf32>
    %c0_13 = arith.constant 0 : index
    %c0_14 = arith.constant 0 : index
    %20 = vector.load %arg5[%c0_13, %c0_14] : memref<128x256xf32, #tpu.memory_space<vmem>>, vector<128x256xf32>
    %21 = arith.addf %19, %20 : vector<128x256xf32>
    %cst_15 = arith.constant 0.000000e+00 : f32
    %22 = vector.broadcast %cst_15 : f32 to vector<128x256xf32>
    %23 = arith.maximumf %21, %22 : vector<128x256xf32>
    %24 = arith.truncf %23 : vector<128x256xf32> to vector<128x256xbf16>
    %c0_16 = arith.constant 0 : index
    %c0_17 = arith.constant 0 : index
    %25 = vector.load %arg4[%c0_16, %c0_17] : memref<256x256xbf16, #tpu.memory_space<vmem>>, vector<256x256xbf16>
    %cst_18 = arith.constant dense<0.000000e+00> : vector<128x256xf32>
    %26 = tpu.matmul %24, %25, %cst_18 {dimension_numbers = #tpu.dot_dimension_numbers<[1], [0], [0], [1], [0, 0, 1, 1], [], []>} : vector<128x256xbf16>, vector<256x256xbf16>, vector<128x256xf32> -> vector<128x256xf32>
    %27 = arith.addf %26, %3 : vector<128x256xf32>
    %c0_19 = arith.constant 0 : index
    %c0_20 = arith.constant 0 : index
    %28 = vector.load %arg6[%c0_19, %c0_20] : memref<128x256xf32, #tpu.memory_space<vmem>>, vector<128x256xf32>
    %29 = arith.addf %27, %28 : vector<128x256xf32>
    %cst_21 = arith.constant 5.000000e-01 : f32
    %30 = vector.broadcast %cst_21 : f32 to vector<128x256xf32>
    %31 = arith.mulf %30, %29 : vector<128x256xf32>
    %cst_22 = arith.constant 0.707106769 : f32
    %32 = vector.broadcast %cst_22 : f32 to vector<128x256xf32>
    %33 = arith.mulf %29, %32 : vector<128x256xf32>
    %34 = math.erf %33 : vector<128x256xf32>
    %cst_23 = arith.constant 1.000000e+00 : f32
    %35 = vector.broadcast %cst_23 : f32 to vector<128x256xf32>
    %36 = arith.addf %35, %34 : vector<128x256xf32>
    %37 = arith.mulf %31, %36 : vector<128x256xf32>
    %c0_24 = arith.constant 0 : index
    %c0_25 = arith.constant 0 : index
    %38 = vector.load %arg7[%c0_24, %c0_25] : memref<128x256xf32, #tpu.memory_space<vmem>>, vector<128x256xf32>
    tpu.vector_store %arg7[%c0_24, %c0_25], %37 {strides = array<i32>} : memref<128x256xf32, #tpu.memory_space<vmem>>, vector<128x256xf32>,
    return
  }
  func.func @transform_0(%arg0: i32) -> (i32, i32) {
    %c0_i32 = arith.constant 0 : i32
    %c0_i32_0 = arith.constant 0 : i32
    return %arg0, %c0_i32 : i32, i32
  }
  func.func @transform_1(%arg0: i32) -> (i32, i32, i32) {
    %c0_i32 = arith.constant 0 : i32
    %c0_i32_0 = arith.constant 0 : i32
    %c0_i32_1 = arith.constant 0 : i32
    %c0_i32_2 = arith.constant 0 : i32
    return %c0_i32, %c0_i32_0, %c0_i32_1 : i32, i32, i32
  }
  func.func @transform_2(%arg0: i32) -> (i32, i32) {
    %c0_i32 = arith.constant 0 : i32
    %c0_i32_0 = arith.constant 0 : i32
    %c0_i32_1 = arith.constant 0 : i32
    return %c0_i32, %c0_i32_0 : i32, i32
  }
  func.func @transform_3(%arg0: i32) -> (i32, i32) {
    %c0_i32 = arith.constant 0 : i32
    %c0_i32_0 = arith.constant 0 : i32
    %c0_i32_1 = arith.constant 0 : i32
    return %c0_i32, %c0_i32_0 : i32, i32
  }
  func.func @transform_4(%arg0: i32) -> (i32, i32) {
    %c0_i32 = arith.constant 0 : i32
    %c0_i32_0 = arith.constant 0 : i32
    %c0_i32_1 = arith.constant 0 : i32
    return %c0_i32, %c0_i32_0 : i32, i32
  }
  func.func @transform_5(%arg0: i32) -> (i32, i32) {
    %c0_i32 = arith.constant 0 : i32
    %c0_i32_0 = arith.constant 0 : i32
    %c0_i32_1 = arith.constant 0 : i32
    return %c0_i32, %c0_i32_0 : i32, i32
  }
  func.func @transform_6(%arg0: i32) -> (i32, i32) {
    %c0_i32 = arith.constant 0 : i32
    %c0_i32_0 = arith.constant 0 : i32
    return %arg0, %c0_i32 : i32, i32
  }
}

</mosaic_0001>

<bundles_post_ra>
// kernel: tpu_custom_call.1
= control target key start
LH: loop header
LB: loop body
LE: loop exit
PB: predicated region body
PF: predicated region fallthrough
CT: control target
= control target key end

     0   :  { %11 = vsyncpa [#allocation3], 0  ;;  %s4275_s0 = inlined_call_operand.hbm [shape: bf16[256,128], index: 0, kind: input, shape index: {}]   ;;  %s4276_s1 = inlined_call_operand.hbm [shape: bf16[3,128,128], index: 1, kind: input, shape index: {}]   ;;  %s4277_s2 = inlined_call_operand.hbm [shape: bf16[128,1024], index: 2, kind: input, shape index: {}]   ;;  %s4278_s3 = inlined_call_operand.hbm [shape: bf16[256,256], index: 3, kind: input, shape index: {}]   ;;  %s4279_s4 = inlined_call_operand.hbm [shape: f32[128,256], index: 4, kind: input, shape index: {}]   ;;  %s4280_s5 = inlined_call_operand.hbm [shape: f32[128,256], index: 5, kind: input, shape index: {}]   ;;  %s4281_s6 = inlined_call_operand.hbm [shape: f32[256,256], index: 6, kind: output, shape index: {}]  }
   0x1   :  { %13 = vsyncpa [#allocation3 + $0x1], 0 }
   0x2   :  { %14 = vsyncpa [#allocation6], 0 }
   0x3   :  { %15 = vsyncpa [#allocation9], 0 }
   0x4   :  { %16 = vsyncpa [#allocation12], 0 }
   0x5   :  { %17 = vsyncpa [#allocation4], 0 }
   0x6   :  { %19 = vsyncpa [#allocation4 + $0x1], 0  ;;  %s3365_s21 = smov 0   ;;  %s3367_s22 = smov 0  }
   0x7   :  { %s3369_s23 = smov 0   ;;  %s3371_s24 = smov 0  }
   0x8 LB: > { %s3312_s25 = smov [#allocation5]   ;;  %s3386_s27 = sadd.s32 4294967295, %s3310_s24   ;;  %s3310_s24 = sphi %s3371_s24, %s4418_s24   ;;  %s3306_s23 = sphi %s3369_s23, %s4417_s23   ;;  %s3302_s22 = sphi %s3367_s22, %s4416_s22   ;;  %s3298_s21 = sphi %s3365_s21, %s4415_s21  }
   0x9   : > { %s199_s26 = sshll.u32 %s3312_s25, 4  ;;  %p2669_p0 = scmp.ge.s32.totalorder %s3310_s24, 1  ;;  %s200_s26 = int_to_ptr.vmem [resolvable:$true] %s199_s26 }
   0xa   : > { %p4282_p1 = scmp.eq.s32.totalorder %s3386_s27, 0  ;;  %p187_p2 = scmp.lt.s32.totalorder %s3310_s24, 3 }
   0xb   : > { %s3313_s29 = smov [#allocation8]   ;;  %s3314_s8 = smov [#allocation7]  }
   0xc   : > { %p3391_p3 = pnand %p2669_p0, %p187_p2  ;;  %s225_s30 = sshll.u32 %s3313_s29, 4  ;;  %s3404_s30 = int_to_ptr.vmem [resolvable:$true] %s225_s30 }
   0xd   : > { %s3406_s9 = sshll.u32 %s3314_s8, 4  ;;  %s3087_s11 = scalar_lea.vmem %s200_s26, 3072  ;;  %s213_s9 = int_to_ptr.vmem [resolvable:$true] %s3406_s9 }
   0xe   : > { %s4298_s28 = scalar_select %p3391_p3, 1, 0 }
   0xf   : > { %p2848_p5 = pneg %p3391_p3  ;;  %p3088_p8 = scmp.ne.s32.totalorder %s200_s26, %s3087_s11 }
  0x10   : > { %p3095_p11 = scmp.lt.s32.totalorder %s200_s26, %s200_s26  ;;  %p3096_p12 = scmp.lt.s32.totalorder %s3087_s11, %s3087_s11 }
  0x11   : > { %p3400_p6 = pnand %p2848_p5, %p4282_p1 }
  0x12   : > { %p3097_p13 = por %p3096_p12, %p3095_p11 }
  0x13   : > { %p3410_p7 = pneg %p3400_p6 }
  0x15   : > { %p3090_p9 = pnand %p3088_p8, %p3410_p7 }
  0x17   : > { %p3091_p10 = pneg %p3090_p9 }
  0x19   : > { %p3098_p0 = pnand %p3097_p13, %p3091_p10 }
  0x1b   : > { %3101 = shalt.err (!%p3098_p0)
}
  0x1c   : > { %s4283_s12 = smov 64   ;;  %s4284_s13 = smov 4  }
  0x1d   : > { %2851 = dma.hbm_to_vmem [thread:$0]  (!%p3400_p6), %s4276_s1, 3072, %s200_s26, [#allocation6], %s4283_s12, %s4283_s12, %s4284_s13  }
  0x1e   : > { %s3113_s16 = scalar_lea.vmem %s3404_s30, 4096  ;;  %p3121_p9 = scmp.lt.s32.totalorder %s3404_s30, %s3404_s30 }
  0x1f   : > { %p3114_p2 = scmp.ne.s32.totalorder %s3404_s30, %s3113_s16  ;;  %p3122_p10 = scmp.lt.s32.totalorder %s3113_s16, %s3113_s16 }
  0x21   : > { %p3116_p5 = pnand %p3114_p2, %p3410_p7  ;;  %p3123_p11 = por %p3122_p10, %p3121_p9 }
  0x23   : > { %p3117_p8 = pneg %p3116_p5 }
  0x25   : > { %p3124_p12 = pnand %p3123_p11, %p3117_p8 }
  0x27   : > { %3127 = shalt.err (!%p3124_p12)
}
  0x28   : > { %s3317_s17 = smov 128   ;;  %s3318_s18 = smov 8  }
  0x29   : > { %2857 = dma.hbm_to_vmem [thread:$0]  (!%p3400_p6), %s4278_s3, 4096, %s3404_s30, [#allocation9], %s3317_s17, %s3317_s17, %s3318_s18  }
  0x2a   : > { %s3139_s25 = scalar_lea.vmem %s213_s9, 8192  ;;  %p3147_p5 = scmp.lt.s32.totalorder %s213_s9, %s213_s9 }
  0x2b   : > { %p3140_p13 = scmp.ne.s32.totalorder %s213_s9, %s3139_s25  ;;  %p3148_p8 = scmp.lt.s32.totalorder %s3139_s25, %s3139_s25 }
  0x2d   : > { %p3142_p0 = pnand %p3140_p13, %p3410_p7  ;;  %p3149_p9 = por %p3148_p8, %p3147_p5 }
  0x2f   : > { %p3143_p2 = pneg %p3142_p0 }
  0x31   : > { %p3150_p10 = pnand %p3149_p9, %p3143_p2 }
  0x33   : > { %3153 = shalt.err (!%p3150_p10)
}
  0x34   : > { %s3319_s26 = smov 512   ;;  %s3320_s29 = smov 32  }
  0x35   : > { %2854 = dma.hbm_to_vmem [thread:$0]  (!%p3400_p6), %s4277_s2, 8192, %s213_s9, [#allocation6], %s3319_s26, %s3319_s26, %s3320_s29  }
  0x36   : > { %s3321_s30 = smov [#allocation10]  }
  0x37   : > { %s238_s14 = sshll.u32 %s3321_s30, 4  ;;  %s239_s14 = int_to_ptr.vmem [resolvable:$true] %s238_s14 }
  0x38   : > { %s3165_s15 = scalar_lea.vmem %s239_s14, 4096  ;;  %p3173_p0 = scmp.lt.s32.totalorder %s239_s14, %s239_s14 }
  0x39   : > { %p3166_p11 = scmp.ne.s32.totalorder %s239_s14, %s3165_s15  ;;  %p3174_p2 = scmp.lt.s32.totalorder %s3165_s15, %s3165_s15 }
  0x3b   : > { %p3168_p12 = pnand %p3166_p11, %p3410_p7  ;;  %p3175_p5 = por %p3174_p2, %p3173_p0 }
  0x3d   : > { %p3169_p13 = pneg %p3168_p12 }
  0x3f   : > { %p3176_p8 = pnand %p3175_p5, %p3169_p13 }
  0x41   : > { %3179 = shalt.err (!%p3176_p8)
}
  0x42   : > { %s3322_s16 = smov 256   ;;  %s3323_s17 = smov 16  }
  0x43   : > { %2860 = dma.hbm_to_vmem [thread:$0]  (!%p3400_p6), %s4279_s4, 4096, %s239_s14, [#allocation9], %s3322_s16, %s3322_s16, %s3323_s17  }
  0x44   : > { %s3324_s19 = smov [#allocation11]  }
  0x45   : > { %s251_s20 = sshll.u32 %s3324_s19, 4  ;;  %s252_s20 = int_to_ptr.vmem [resolvable:$true] %s251_s20 }
  0x46   : > { %s3191_s25 = scalar_lea.vmem %s252_s20, 4096  ;;  %p3199_p12 = scmp.lt.s32.totalorder %s252_s20, %s252_s20 }
  0x47   : > { %p3192_p9 = scmp.ne.s32.totalorder %s252_s20, %s3191_s25  ;;  %p3200_p13 = scmp.lt.s32.totalorder %s3191_s25, %s3191_s25 }
  0x49   : > { %p3194_p10 = pnand %p3192_p9, %p3410_p7  ;;  %p3201_p0 = por %p3200_p13, %p3199_p12 }
  0x4b   : > { %p3195_p11 = pneg %p3194_p10 }
  0x4d   : > { %p3202_p2 = pnand %p3201_p0, %p3195_p11 }
  0x4f   : > { %3205 = shalt.err (!%p3202_p2)
}
  0x50   : > { %2863 = dma.hbm_to_vmem [thread:$0]  (!%p3400_p6), %s4280_s5, 4096, %s252_s20, [#allocation12], %s3322_s16, %s3322_s16, %s3323_s17  }
  0x51   : > { %s2668_s10 = sadd.s32 4294967294, %s3310_s24   ;;  %s3460_s7 = sadd.s32 1, %s3310_s24  }
  0x52   : > { %s32_s8 = sadd.s32 1, %s3306_s23  ;;  %s29_s11 = ssub.s32 %s3310_s24, %s3460_s7 }
  0x53   : > { %p39_p7 = scmp.ne.s32.totalorder %s3306_s23, %s3302_s22  ;;  %p30_p5 = scmp.eq.s32.totalorder %s29_s11, 0 }
  0x54   : > { %p40_p8 = scmp.eq.s32.totalorder %s3310_s24, 0  ;;  %p45_p9 = scmp.ne.s32.totalorder %s3302_s22, %s3298_s21 }
  0x55   : > { %p174_p10 = scmp.eq.s32.totalorder %s3386_s27, 1  ;;  %p180_p13 = scmp.eq.s32.totalorder %s2668_s10, 1 }
  0x56   : > { %s3472_s30 = scalar_select %p30_p5, %s3306_s23, %s32_s8  }
  0x57   : > { %p41_p11 = por %p40_p8, %p39_p7  ;;  %p3476_p12 = por %p4282_p1, %p45_p9 }
  0x58   : > { %p3480_p6 = por %p174_p10, %p39_p7  ;;  %p2877_p0 = scmp.lt.s32.totalorder %s3310_s24, 2 }
  0x59   : > { %s4301_s14 = scalar_select %p3476_p12, 1, 0 }
  0x5a   : > { %s4302_s15 = scalar_select %p3480_p6, 1, 0 }
  0x5b   : > { %s265_s16 = sand.u32 1, %s3306_s23   ;;  %p3486_p2 = por %p180_p13, %p45_p9 }
  0x5c   : > { %s2676_s18 = sshll.u32 %s265_s16, 6  ;;  %s2821_s9 = sshll.u32 %s3310_s24, 10 }
  0x5d   : > { %s4303_s17 = scalar_select %p3486_p2, 1, 0 }
  0x5e   : > { %s3494_s25 = scalar_lea.hbm %s4275_s0, %s2821_s9  ;;  %s269_s26 = scalar_lea.vmem [#allocation2], %s2676_s18 }
  0x5f   : > { %s276_s29 = sshll.u32 %s269_s26, 4  ;;  %p3496_p7 = pnand %p2877_p0, %p41_p11  ;;  %s3500_s29 = int_to_ptr.vmem [resolvable:$true] %s276_s29 }
  0x60   : > { %s3502_s8 = scalar_lea.sflag [#allocation3], %s265_s16  ;;  %s3206_s11 = scalar_lea.hbm %s3494_s25, 1024 }
  0x61   : > { %p3207_p5 = scmp.ne.s32.totalorder %s3494_s25, %s3206_s11  ;;  %p3208_p8 = pneg %p3496_p7 }
  0x62   : > { %s3211_s18 = scalar_lea.hbm %s4275_s0, 2048  ;;  %p3212_p11 = scmp.lt.s32.totalorder %s3494_s25, %s4275_s0 }
  0x63   : > { %p3209_p9 = pnand %p3208_p8, %p3207_p5  ;;  %p3213_p13 = scmp.lt.s32.totalorder %s3211_s18, %s3206_s11 }
  0x65   : > { %p3210_p10 = pneg %p3209_p9  ;;  %p3214_p0 = por %p3213_p13, %p3212_p11 }
  0x67   : > { %p3215_p4 = pnand %p3214_p0, %p3210_p10 }
  0x69   : > { %3218 = shalt.err (!%p3215_p4)
}
  0x6a   : > { %s3219_s16 = scalar_lea.vmem %s3500_s29, 1024  ;;  %s3325_s12 = smov [#allocation2]  }
  0x6b   : > { %p3220_p1 = scmp.ne.s32.totalorder %s3500_s29, %s3219_s16  ;;  %s3224_s13 = sshll.u32 %s3325_s12, 4  ;;  %s3225_s13 = int_to_ptr.vmem [resolvable:$false] %s3224_s13 }
  0x6c   : > { %s3226_s9 = scalar_lea.vmem %s3225_s13, 2048  ;;  %p3227_p9 = scmp.lt.s32.totalorder %s3500_s29, %s3225_s13 }
  0x6d   : > { %p3222_p2 = pnand %p3220_p1, %p3208_p8  ;;  %p3228_p6 = scmp.lt.s32.totalorder %s3226_s9, %s3219_s16 }
  0x6f   : > { %p3223_p5 = pneg %p3222_p2  ;;  %p3229_p12 = por %p3228_p6, %p3227_p9 }
  0x71   : > { %p3230_p3 = pnand %p3229_p12, %p3223_p5 }
  0x73   : > { %3233 = shalt.err (!%p3230_p3)
}
  0x74   : > { %s4305_s11 = smov 4   ;;  %s4306_s19 = smov 64  }
  0x75   : > { %2867 = dma.hbm_to_vmem [thread:$0]  (!%p3496_p7), %s3494_s25, 1024, %s3500_s29, %s3502_s8, %s4306_s19, %s4306_s19, %s4305_s11  }
  0x76   : > { %p4307_p1 = scmp.ne.s32.totalorder %s4298_s28, 0 }
  0x78   : > { %288 = sbr.rel (%p4307_p1) target bundleno = 1031 (0x407), region = 44 }
  0x7d   : > { %s3529_s12 = sand.u32 1, %s3302_s22   ;;  %p4308_p3 = scmp.ne.s32.totalorder %s4301_s14, 0 }
  0x7e   : > { %s2680_s13 = sshll.u32 %s3529_s12, 6  ;;  %s291_s18 = scalar_lea.sflag [#allocation3], %s3529_s12 }
  0x7f   : > { %s3533_s20 = scalar_lea.vmem [#allocation2], %s2680_s13 }
  0x80   : > { %3277 = dma.done.wait (%p4308_p3), %s291_s18, 1024  }
  0x81   : > { %3279 = vsyncadd (%p4308_p3), %s291_s18, 4294966272  ;;  %p4309_p4 = scmp.eq.s32.totalorder %s3386_s27, 0 }
  0x83   : > { %3281 = dma.done.wait (%p4309_p4), [#allocation6], 11264   ;;  %p4310_p12 = pmov %p4309_p4 }
  0x84   : > { %p4311_p6 = pmov %p4309_p4 }
  0x85   : > { %3283 = vsyncadd (%p4310_p12), [#allocation6], 4294956032 }
  0x86   : > { %3285 = dma.done.wait (%p4311_p6), [#allocation9], 8192   ;;  %p4312_p2 = pmov %p4309_p4 }
  0x88   : > { %3287 = vsyncadd (%p4312_p2), [#allocation9], 4294959104  ;;  %p4313_p7 = pmov %p4312_p2 }
  0x89   : > { %p4314_p8 = pmov %p4312_p2 }
  0x8a   : > { %3289 = dma.done.wait (%p4313_p7), [#allocation12], 4096  }
  0x8b   : > { %3291 = vsyncadd (%p4314_p8), [#allocation12], 4294963200  ;;  %v4288_v0 = vmov 0   ;;  %v418_v1 = vld [vmem:[#allocation7 + $0x1c0] sm:$0xff]  ;;  %v419_v3 = vld [vmem:[#allocation7 + $0x1c8] sm:$0xff]  ;;  %s2686_s28 = sshll.u32 %s3529_s12, 8 }
  0x8c   : > { %826 = vmatprep.mubr.bf16.mxu0 %v4288_v0  ;;  %939 = vmatprep.mubr.bf16.mxu1 %v4288_v0  ;;  %v422_v2 = vld [vmem:[#allocation7 + $0x1e0] sm:$0xff]  ;;  %v423_v5 = vld [vmem:[#allocation7 + $0x1e8] sm:$0xff]  ;;  %v420_v60 = vld [vmem:[#allocation7 + $0x1d0] sm:$0xff]  ;;  %s4093_s14 = scalar_lea.vmem [#allocation13], %s2686_s28  ;;  %s2823_s25 = sshll.u32 %s3386_s27, 12 }
  0x8d   : > { %v2752_v4 = vcombine.high %v418_v1, %v422_v2  ;;  %v2751_v6 = vcombine.low %v418_v1, %v422_v2  ;;  %v410_v7 = vld [vmem:[#allocation7 + $0x180] sm:$0xff]  ;;  %v2754_v9 = vcombine.high %v419_v3, %v423_v5  ;;  %v2753_v10 = vcombine.low %v419_v3, %v423_v5  ;;  %v411_v12 = vld [vmem:[#allocation7 + $0x188] sm:$0xff]  ;;  %v424_v61 = vld [vmem:[#allocation7 + $0x1f0] sm:$0xff]  ;;  %s2547_s29 = sshll.u32 %s4093_s14, 4  ;;  %s4229_s26 = scalar_lea.hbm %s4281_s6, %s2823_s25  ;;  %s4231_s29 = int_to_ptr.vmem [resolvable:$true] %s2547_s29 }
  0x8e   : > { %v414_v8 = vld [vmem:[#allocation7 + $0x1a0] sm:$0xff]  ;;  %v415_v13 = vld [vmem:[#allocation7 + $0x1a8] sm:$0xff]  ;;  %v2756_v5 = vcombine.high %v420_v60, %v424_v61  ;;  %s2533_s27 = scalar_lea.sflag [#allocation4], %s3529_s12  ;;  %s3234_s16 = scalar_lea.vmem %s4231_s29, 4096 }
  0x8f   : > { %v2744_v11 = vcombine.high %v410_v7, %v414_v8  ;;  %v402_v14 = vld [vmem:[#allocation7 + $0x140] sm:$0xff]  ;;  %794 = vmatprep.subr.bf16.mxu0 %v2752_v4  ;;  %v2746_v15 = vcombine.high %v411_v12, %v415_v13  ;;  %v403_v17 = vld [vmem:[#allocation7 + $0x148] sm:$0xff]  ;;  %907 = vmatprep.subr.bf16.mxu1 %v2754_v9  ;;  %v2743_v19 = vcombine.low %v410_v7, %v414_v8  ;;  %v416_v7 = vld [vmem:[#allocation7 + $0x1b0] sm:$0xff]  ;;  %p3235_p10 = scmp.ne.s32.totalorder %s4231_s29, %s3234_s16  ;;  %p4412_p11 = scmp.ne.s32.totalorder %s4302_s15, 0 }
  0x90   : > { %v406_v16 = vld [vmem:[#allocation7 + $0x160] sm:$0xff]  ;;  %v407_v18 = vld [vmem:[#allocation7 + $0x168] sm:$0xff]  ;;  %795 = vmatpush1.bf16.msra.mxu0 %v2751_v6  ;;  %908 = vmatpush1.bf16.msra.mxu1 %v2753_v10  ;;  %v2745_v20 = vcombine.low %v411_v12, %v415_v13  ;;  %v412_v6 = vld [vmem:[#allocation7 + $0x190] sm:$0xff]  ;;  %v2755_v8 = vcombine.low %v420_v60, %v424_v61  ;;  %s3327_s9 = smov [#allocation13]  }
  0x91   : > { %796 = vmatprep.subr.bf16.mxu0 %v2744_v11  ;;  %v2736_v21 = vcombine.high %v402_v14, %v406_v16  ;;  %909 = vmatprep.subr.bf16.mxu1 %v2746_v15  ;;  %v2738_v22 = vcombine.high %v403_v17, %v407_v18  ;;  %v394_v23 = vld [vmem:[#allocation7 + $0x100] sm:$0xff]  ;;  %v395_v25 = vld [vmem:[#allocation7 + $0x108] sm:$0xff]  ;;  %v2735_v27 = vcombine.low %v402_v14, %v406_v16  ;;  %v404_v9 = vld [vmem:[#allocation7 + $0x150] sm:$0xff]  ;;  %p3236_p13 = pnand %p3235_p10, %p4412_p11  ;;  %s3238_s11 = sshll.u32 %s3327_s9, 4  ;;  %s3239_s11 = int_to_ptr.vmem [resolvable:$false] %s3238_s11 }
  0x92   : > { %v398_v24 = vld [vmem:[#allocation7 + $0x120] sm:$0xff]  ;;  %v399_v26 = vld [vmem:[#allocation7 + $0x128] sm:$0xff]  ;;  %v2737_v28 = vcombine.low %v403_v17, %v407_v18  ;;  %v408_v10 = vld [vmem:[#allocation7 + $0x170] sm:$0xff]  ;;  %v2748_v11 = vcombine.high %v412_v6, %v416_v7  ;;  %v2747_v13 = vcombine.low %v412_v6, %v416_v7  ;;  %s3240_s19 = scalar_lea.vmem %s3239_s11, 8192  ;;  %p3241_p5 = scmp.lt.s32.totalorder %s4231_s29, %s3239_s11 }
  0x93   : > { %v2728_v29 = vcombine.high %v394_v23, %v398_v24  ;;  %v386_v30 = vld [vmem:[#allocation7 + $0xc0] sm:$0xff]  ;;  %v2730_v31 = vcombine.high %v395_v25, %v399_v26  ;;  %v387_v33 = vld [vmem:[#allocation7 + $0xc8] sm:$0xff]  ;;  %v2727_v35 = vcombine.low %v394_v23, %v398_v24  ;;  %v2729_v36 = vcombine.low %v395_v25, %v399_v26  ;;  %v396_v14 = vld [vmem:[#allocation7 + $0x110] sm:$0xff]  ;;  %p3237_p0 = pneg %p3236_p13  ;;  %p3242_p9 = scmp.lt.s32.totalorder %s3240_s19, %s3234_s16 }
  0x94   : > { %797 = vmatpush1.bf16.msra.mxu0 %v2743_v19  ;;  %910 = vmatpush1.bf16.msra.mxu1 %v2745_v20  ;;  %v390_v32 = vld [vmem:[#allocation7 + $0xe0] sm:$0xff]  ;;  %v391_v34 = vld [vmem:[#allocation7 + $0xe8] sm:$0xff]  ;;  %v400_v15 = vld [vmem:[#allocation7 + $0x130] sm:$0xff]  ;;  %v2740_v16 = vcombine.high %v404_v9, %v408_v10  ;;  %v2739_v17 = vcombine.low %v404_v9, %v408_v10 }
  0x95   : > { %798 = vmatprep.subr.bf16.mxu0 %v2736_v21  ;;  %911 = vmatprep.subr.bf16.mxu1 %v2738_v22  ;;  %v2720_v37 = vcombine.high %v386_v30, %v390_v32  ;;  %v378_v38 = vld [vmem:[#allocation7 + $0x80] sm:$0xff]  ;;  %v2722_v39 = vcombine.high %v387_v33, %v391_v34  ;;  %v379_v41 = vld [vmem:[#allocation7 + $0x88] sm:$0xff]  ;;  %v2719_v43 = vcombine.low %v386_v30, %v390_v32  ;;  %v388_v18 = vld [vmem:[#allocation7 + $0xd0] sm:$0xff]  ;;  %p3243_p1 = por %p3242_p9, %p3241_p5 }
  0x96   : > { %v382_v40 = vld [vmem:[#allocation7 + $0xa0] sm:$0xff]  ;;  %v383_v42 = vld [vmem:[#allocation7 + $0xa8] sm:$0xff]  ;;  %v2721_v44 = vcombine.low %v387_v33, %v391_v34  ;;  %v392_v19 = vld [vmem:[#allocation7 + $0xf0] sm:$0xff]  ;;  %v2732_v20 = vcombine.high %v396_v14, %v400_v15  ;;  %v2731_v22 = vcombine.low %v396_v14, %v400_v15 }
  0x97   : > { %v2712_v45 = vcombine.high %v378_v38, %v382_v40  ;;  %v2714_v46 = vcombine.high %v379_v41, %v383_v42  ;;  %v370_v47 = vld [vmem:[#allocation7 + $0x40] sm:$0xff]  ;;  %v371_v49 = vld [vmem:[#allocation7 + $0x48] sm:$0xff]  ;;  %v2711_v51 = vcombine.low %v378_v38, %v382_v40  ;;  %v2713_v52 = vcombine.low %v379_v41, %v383_v42  ;;  %v3568_v21 = vld [vmem:[%s3533_s20 + $0x10] sm:$0xff]   ;;  %p3244_p3 = pnand %p3243_p1, %p3237_p0 }
  0x98   : > { %799 = vmatpush1.bf16.msra.mxu0 %v2735_v27  ;;  %912 = vmatpush1.bf16.msra.mxu1 %v2737_v28  ;;  %v374_v48 = vld [vmem:[#allocation7 + $0x60] sm:$0xff]  ;;  %v375_v50 = vld [vmem:[#allocation7 + $0x68] sm:$0xff]  ;;  %v380_v23 = vld [vmem:[#allocation7 + $0x90] sm:$0xff]  ;;  %v2724_v25 = vcombine.high %v388_v18, %v392_v19  ;;  %v2723_v26 = vcombine.low %v388_v18, %v392_v19 }
  0x99   : > { %800 = vmatprep.subr.bf16.mxu0 %v2728_v29  ;;  %913 = vmatprep.subr.bf16.mxu1 %v2730_v31  ;;  %v2704_v53 = vcombine.high %v370_v47, %v374_v48  ;;  %v2706_v54 = vcombine.high %v371_v49, %v375_v50  ;;  %v362_v55 = vld [vmem:[#allocation7] sm:$0xff]  ;;  %v363_v57 = vld [vmem:[#allocation7 + $0x8] sm:$0xff]  ;;  %v2703_v59 = vcombine.low %v370_v47, %v374_v48  ;;  %v384_v24 = vld [vmem:[#allocation7 + $0xb0] sm:$0xff] }
  0x9a   : > { %v366_v56 = vld [vmem:[#allocation7 + $0x20] sm:$0xff]  ;;  %v367_v58 = vld [vmem:[#allocation7 + $0x28] sm:$0xff]  ;;  %v2705_v62 = vcombine.low %v371_v49, %v375_v50  ;;  %v2716_v27 = vcombine.high %v380_v23, %v384_v24  ;;  %v372_v28 = vld [vmem:[#allocation7 + $0x50] sm:$0xff]  ;;  %v2715_v30 = vcombine.low %v380_v23, %v384_v24 }
  0x9b   : > { %v2696_v63 = vcombine.high %v362_v55, %v366_v56  ;;  %v2698_v1 = vcombine.high %v363_v57, %v367_v58  ;;  %v2695_v2 = vcombine.low %v362_v55, %v366_v56  ;;  %v2697_v3 = vcombine.low %v363_v57, %v367_v58  ;;  %v3554_v4 = vld [vmem:[%s3533_s20] sm:$0xff]   ;;  %v3561_v12 = vld [vmem:[%s3533_s20 + $0x8] sm:$0xff]   ;;  %v376_v29 = vld [vmem:[#allocation7 + $0x70] sm:$0xff] }
  0x9c   : > { %801 = vmatpush1.bf16.msra.mxu0 %v2727_v35  ;;  %914 = vmatpush1.bf16.msra.mxu1 %v2729_v36  ;;  %v2708_v31 = vcombine.high %v372_v28, %v376_v29  ;;  %v3575_v32 = vld [vmem:[%s3533_s20 + $0x18] sm:$0xff]   ;;  %v364_v33 = vld [vmem:[#allocation7 + $0x10] sm:$0xff]  ;;  %v2707_v35 = vcombine.low %v372_v28, %v376_v29  ;;  %v3582_v38 = vld [vmem:[%s3533_s20 + $0x20] sm:$0xff]  }
  0x9d   : > { %802 = vmatprep.subr.bf16.mxu0 %v2720_v37  ;;  %915 = vmatprep.subr.bf16.mxu1 %v2722_v39  ;;  %v368_v34 = vld [vmem:[#allocation7 + $0x30] sm:$0xff]  ;;  %v3589_v39 = vld [vmem:[%s3533_s20 + $0x28] sm:$0xff]   ;;  %v3603_v41 = vld [vmem:[%s3533_s20 + $0x38] sm:$0xff]  }
  0x9e   : > { %v2700_v36 = vcombine.high %v364_v33, %v368_v34  ;;  %v2699_v37 = vcombine.low %v364_v33, %v368_v34  ;;  %v3596_v40 = vld [vmem:[%s3533_s20 + $0x30] sm:$0xff]   ;;  %v421_v42 = vld [vmem:[#allocation7 + $0x1d8] sm:$0xff] }
  0x9f   : > { %v417_v47 = vld [vmem:[#allocation7 + $0x1b8] sm:$0xff] }
  0xa0   : > { %803 = vmatpush1.bf16.msra.mxu0 %v2719_v43  ;;  %916 = vmatpush1.bf16.msra.mxu1 %v2721_v44  ;;  %v425_v43 = vld [vmem:[#allocation7 + $0x1f8] sm:$0xff] }
  0xa1   : > { %804 = vmatprep.subr.bf16.mxu0 %v2712_v45  ;;  %917 = vmatprep.subr.bf16.mxu1 %v2714_v46  ;;  %v2758_v44 = vcombine.high %v421_v42, %v425_v43  ;;  %v2757_v45 = vcombine.low %v421_v42, %v425_v43  ;;  %v413_v46 = vld [vmem:[#allocation7 + $0x198] sm:$0xff] }
  0xa2   : > { %v2750_v48 = vcombine.high %v413_v46, %v417_v47  ;;  %v2749_v49 = vcombine.low %v413_v46, %v417_v47  ;;  %v405_v50 = vld [vmem:[#allocation7 + $0x158] sm:$0xff] }
  0xa3   : > { %v401_v55 = vld [vmem:[#allocation7 + $0x138] sm:$0xff] }
  0xa4   : > { %805 = vmatpush1.bf16.msra.mxu0 %v2711_v51  ;;  %918 = vmatpush1.bf16.msra.mxu1 %v2713_v52  ;;  %v409_v51 = vld [vmem:[#allocation7 + $0x178] sm:$0xff] }
  0xa5   : > { %806 = vmatprep.subr.bf16.mxu0 %v2704_v53  ;;  %919 = vmatprep.subr.bf16.mxu1 %v2706_v54  ;;  %v2742_v52 = vcombine.high %v405_v50, %v409_v51  ;;  %v2741_v53 = vcombine.low %v405_v50, %v409_v51  ;;  %v397_v54 = vld [vmem:[#allocation7 + $0x118] sm:$0xff] }
  0xa6   : > { %v2734_v56 = vcombine.high %v397_v54, %v401_v55  ;;  %v2733_v57 = vcombine.low %v397_v54, %v401_v55  ;;  %v389_v58 = vld [vmem:[#allocation7 + $0xd8] sm:$0xff] }
  0xa7   : > { %v369_v9 = vld [vmem:[#allocation7 + $0x38] sm:$0xff] }
  0xa8   : > { %807 = vmatpush1.bf16.msra.mxu0 %v2703_v59  ;;  %920 = vmatpush1.bf16.msra.mxu1 %v2705_v62  ;;  %v393_v59 = vld [vmem:[#allocation7 + $0xf8] sm:$0xff] }
  0xa9   : > { %808 = vmatprep.subr.bf16.mxu0 %v2696_v63  ;;  %921 = vmatprep.subr.bf16.mxu1 %v2698_v1  ;;  %v2726_v60 = vcombine.high %v389_v58, %v393_v59  ;;  %v2725_v61 = vcombine.low %v389_v58, %v393_v59  ;;  %v381_v62 = vld [vmem:[#allocation7 + $0x98] sm:$0xff] }
  0xaa   : > { %v385_v63 = vld [vmem:[#allocation7 + $0xb8] sm:$0xff] }
  0xab   : > { %v2718_v1 = vcombine.high %v381_v62, %v385_v63 }
  0xac   : > { %809 = vmatpush1.bf16.msra.mxu0 %v2695_v2  ;;  %922 = vmatpush1.bf16.msra.mxu1 %v2697_v3  ;;  %v2717_v2 = vcombine.low %v381_v62, %v385_v63  ;;  %v373_v3 = vld [vmem:[#allocation7 + $0x58] sm:$0xff] }
  0xad   : > { %1020 = vmatprep.subr.bf16.mxu0 %v2756_v5  ;;  %1133 = vmatprep.subr.bf16.mxu1 %v2758_v44  ;;  %v377_v5 = vld [vmem:[#allocation7 + $0x78] sm:$0xff] }
  0xae   : > { %v2710_v6 = vcombine.high %v373_v3, %v377_v5  ;;  %v2709_v7 = vcombine.low %v373_v3, %v377_v5 }
  0xaf   : > { %827 = vmatmul.mubr.bf16.vlgmr.msra.gmra.mxu0 %v3554_v4  ;;  %940 = vmatmul.mubr.bf16.vlgmr.msra.gmra.mxu1 %v3554_v4 }
  0xb0   : > { %836 = vmatprep.mubr.bf16.mxu0 %v4288_v0  ;;  %949 = vmatprep.mubr.bf16.mxu1 %v4288_v0 }
  0xb1   : > { %1021 = vmatpush1.bf16.msra.mxu0 %v2755_v8  ;;  %1134 = vmatpush1.bf16.msra.mxu1 %v2757_v45  ;;  %v365_v8 = vld [vmem:[#allocation7 + $0x18] sm:$0xff] }
  0xb2   : > { %1022 = vmatprep.subr.bf16.mxu0 %v2748_v11  ;;  %1135 = vmatprep.subr.bf16.mxu1 %v2750_v48  ;;  %v2702_v10 = vcombine.high %v365_v8, %v369_v9  ;;  %v2701_v11 = vcombine.low %v365_v8, %v369_v9 }
  0xb5   : > { %1023 = vmatpush1.bf16.msra.mxu0 %v2747_v13  ;;  %1136 = vmatpush1.bf16.msra.mxu1 %v2749_v49 }
  0xb6   : > { %1024 = vmatprep.subr.bf16.mxu0 %v2740_v16  ;;  %1137 = vmatprep.subr.bf16.mxu1 %v2742_v52 }
  0xb7   : > { %837 = vmatmul.mubr.bf16.gmra.mxu0 %v3561_v12  ;;  %950 = vmatmul.mubr.bf16.gmra.mxu1 %v3561_v12 }
  0xb8   : > { %846 = vmatprep.mubr.bf16.mxu0 %v4288_v0  ;;  %959 = vmatprep.mubr.bf16.mxu1 %v4288_v0 }
  0xb9   : > { %1025 = vmatpush1.bf16.msra.mxu0 %v2739_v17  ;;  %1138 = vmatpush1.bf16.msra.mxu1 %v2741_v53 }
  0xba   : > { %1026 = vmatprep.subr.bf16.mxu0 %v2732_v20  ;;  %1139 = vmatprep.subr.bf16.mxu1 %v2734_v56 }
  0xbd   : > { %1027 = vmatpush1.bf16.msra.mxu0 %v2731_v22  ;;  %1140 = vmatpush1.bf16.msra.mxu1 %v2733_v57 }
  0xbe   : > { %1028 = vmatprep.subr.bf16.mxu0 %v2724_v25  ;;  %1141 = vmatprep.subr.bf16.mxu1 %v2726_v60 }
  0xbf   : > { %847 = vmatmul.mubr.bf16.gmra.mxu0 %v3568_v21  ;;  %960 = vmatmul.mubr.bf16.gmra.mxu1 %v3568_v21 }
  0xc0   : > { %856 = vmatprep.mubr.bf16.mxu0 %v4288_v0  ;;  %969 = vmatprep.mubr.bf16.mxu1 %v4288_v0 }
  0xc1   : > { %1029 = vmatpush1.bf16.msra.mxu0 %v2723_v26  ;;  %1142 = vmatpush1.bf16.msra.mxu1 %v2725_v61 }
  0xc2   : > { %1030 = vmatprep.subr.bf16.mxu0 %v2716_v27  ;;  %1143 = vmatprep.subr.bf16.mxu1 %v2718_v1 }
  0xc5   : > { %1031 = vmatpush1.bf16.msra.mxu0 %v2715_v30  ;;  %1144 = vmatpush1.bf16.msra.mxu1 %v2717_v2 }
  0xc6   : > { %1032 = vmatprep.subr.bf16.mxu0 %v2708_v31  ;;  %1145 = vmatprep.subr.bf16.mxu1 %v2710_v6 }
  0xc7   : > { %857 = vmatmul.mubr.bf16.gmra.mxu0 %v3575_v32  ;;  %970 = vmatmul.mubr.bf16.gmra.mxu1 %v3575_v32 }
  0xc8   : > { %866 = vmatprep.mubr.bf16.mxu0 %v4288_v0  ;;  %979 = vmatprep.mubr.bf16.mxu1 %v4288_v0 }
  0xc9   : > { %1033 = vmatpush1.bf16.msra.mxu0 %v2707_v35  ;;  %1146 = vmatpush1.bf16.msra.mxu1 %v2709_v7 }
  0xca   : > { %1034 = vmatprep.subr.bf16.mxu0 %v2700_v36  ;;  %1147 = vmatprep.subr.bf16.mxu1 %v2702_v10 }
  0xcd   : > { %1035 = vmatpush1.bf16.msra.mxu0 %v2699_v37  ;;  %1148 = vmatpush1.bf16.msra.mxu1 %v2701_v11 }
  0xcf   : > { %867 = vmatmul.mubr.bf16.gmra.mxu0 %v3582_v38  ;;  %980 = vmatmul.mubr.bf16.gmra.mxu1 %v3582_v38 }
  0xd0   : > { %876 = vmatprep.mubr.bf16.mxu0 %v4288_v0  ;;  %989 = vmatprep.mubr.bf16.mxu1 %v4288_v0 }
  0xd7   : > { %877 = vmatmul.mubr.bf16.gmra.mxu0 %v3589_v39  ;;  %990 = vmatmul.mubr.bf16.gmra.mxu1 %v3589_v39 }
  0xd8   : > { %886 = vmatprep.mubr.bf16.mxu0 %v4288_v0  ;;  %999 = vmatprep.mubr.bf16.mxu1 %v4288_v0 }
  0xdf   : > { %887 = vmatmul.mubr.bf16.gmra.mxu0 %v3596_v40  ;;  %1000 = vmatmul.mubr.bf16.gmra.mxu1 %v3596_v40 }
  0xe0   : > { %896 = vmatprep.mubr.bf16.mxu0 %v4288_v0  ;;  %1009 = vmatprep.mubr.bf16.mxu1 %v4288_v0 }
  0xe7   : > { %897 = vmatmul.mubr.bf16.gmra.mxu0 %v3603_v41  ;;  %1010 = vmatmul.mubr.bf16.gmra.mxu1 %v3603_v41 }
  0xe8   : > { %1052 = vmatprep.mubr.bf16.mxu0 %v4288_v0  ;;  %1165 = vmatprep.mubr.bf16.mxu1 %v4288_v0 }
  0xef   : > { %1053 = vmatmul.mubr.bf16.vlgmr.msra.gmra.mxu0 %v3554_v4  ;;  %1166 = vmatmul.mubr.bf16.vlgmr.msra.gmra.mxu1 %v3554_v4 }
  0xf0   : > { %1062 = vmatprep.mubr.bf16.mxu0 %v4288_v0  ;;  %1175 = vmatprep.mubr.bf16.mxu1 %v4288_v0 }
  0xf7   : > { %1063 = vmatmul.mubr.bf16.gmra.mxu0 %v3561_v12  ;;  %1176 = vmatmul.mubr.bf16.gmra.mxu1 %v3561_v12 }
  0xf8   : > { %1072 = vmatprep.mubr.bf16.mxu0 %v4288_v0  ;;  %1185 = vmatprep.mubr.bf16.mxu1 %v4288_v0 }
  0xff   : > { %1073 = vmatmul.mubr.bf16.gmra.mxu0 %v3568_v21  ;;  %1186 = vmatmul.mubr.bf16.gmra.mxu1 %v3568_v21 }
 0x100   : > { %1082 = vmatprep.mubr.bf16.mxu0 %v4288_v0  ;;  %1195 = vmatprep.mubr.bf16.mxu1 %v4288_v0 }
 0x107   : > { %1083 = vmatmul.mubr.bf16.gmra.mxu0 %v3575_v32  ;;  %1196 = vmatmul.mubr.bf16.gmra.mxu1 %v3575_v32 }
 0x108   : > { %1092 = vmatprep.mubr.bf16.mxu0 %v4288_v0  ;;  %1205 = vmatprep.mubr.bf16.mxu1 %v4288_v0 }
 0x10f   : > { %1093 = vmatmul.mubr.bf16.gmra.mxu0 %v3582_v38  ;;  %1206 = vmatmul.mubr.bf16.gmra.mxu1 %v3582_v38 }
 0x110   : > { %1102 = vmatprep.mubr.bf16.mxu0 %v4288_v0  ;;  %1215 = vmatprep.mubr.bf16.mxu1 %v4288_v0 }
 0x117   : > { %1103 = vmatmul.mubr.bf16.gmra.mxu0 %v3589_v39  ;;  %1216 = vmatmul.mubr.bf16.gmra.mxu1 %v3589_v39 }
 0x118   : > { %1112 = vmatprep.mubr.bf16.mxu0 %v4288_v0  ;;  %1225 = vmatprep.mubr.bf16.mxu1 %v4288_v0 }
 0x11f   : > { %1113 = vmatmul.mubr.bf16.gmra.mxu0 %v3596_v40  ;;  %1226 = vmatmul.mubr.bf16.gmra.mxu1 %v3596_v40 }
 0x120   : > { %1122 = vmatprep.mubr.bf16.mxu0 %v4288_v0  ;;  %1235 = vmatprep.mubr.bf16.mxu1 %v4288_v0 }
 0x127   : > { %1123 = vmatmul.mubr.bf16.gmra.mxu0 %v3603_v41  ;;  %1236 = vmatmul.mubr.bf16.gmra.mxu1 %v3603_v41 }
 0x128   : > { %1407 = vmatprep.mubr.bf16.mxu0 %v4288_v0  ;;  %1568 = vmatprep.mubr.bf16.mxu1 %v4288_v0 }
 0x16f   : > { %v3641_v4 = vpop.f32.mrf.mxu0  ;;  %v3643_v12 = vpop.f32.mrf.mxu1 }
 0x170   : > { %4315 = vst [vmem:[#allocation19_spill] sm:$0xff] %v3641_v4  ;;  %4316 = vst [vmem:[#allocation20_spill] sm:$0xff] %v3643_v12 }
 0x171   : > { %v3645_v13 = vpop.f32.mrf.mxu0  ;;  %v3647_v14 = vpop.f32.mrf.mxu1 }
 0x172   : > { %4317 = vst [vmem:[#allocation21_spill] sm:$0xff] %v3647_v14 }
 0x173   : > { %v3649_v15 = vpop.f32.mrf.mxu0  ;;  %v3653_v17 = vpop.f32.mrf.mxu1 }
 0x174   : > { %4318 = vst [vmem:[#allocation22_spill] sm:$0xff] %v3649_v15  ;;  %4319 = vst [vmem:[#allocation23_spill] sm:$0xff] %v3653_v17 }
 0x175   : > { %v3657_v19 = vpop.f32.mrf.mxu0  ;;  %v3659_v20 = vpop.f32.mrf.mxu1 }
 0x176   : > { %4320 = vst [vmem:[#allocation24_spill] sm:$0xff] %v3659_v20 }
 0x177   : > { %v3661_v21 = vpop.f32.mrf.mxu0  ;;  %v3663_v22 = vpop.f32.mrf.mxu1 }
 0x178   : > { %4321 = vst [vmem:[#allocation25_spill] sm:$0xff] %v3661_v21  ;;  %4322 = vst [vmem:[#allocation26_spill] sm:$0xff] %v3663_v22 }
 0x179   : > { %v3665_v23 = vpop.f32.mrf.mxu0  ;;  %v3667_v24 = vpop.f32.mrf.mxu1 }
 0x17b   : > { %v3669_v25 = vpop.f32.mrf.mxu0  ;;  %v3673_v27 = vpop.f32.mrf.mxu1 }
 0x17c   : > { %4323 = vst [vmem:[#allocation27_spill] sm:$0xff] %v3669_v25  ;;  %4324 = vst [vmem:[#allocation28_spill] sm:$0xff] %v3673_v27 }
 0x17d   : > { %v3677_v29 = vpop.f32.mrf.mxu0  ;;  %v3679_v30 = vpop.f32.mrf.mxu1 }
 0x17f   : > { %v3681_v31 = vpop.f32.mrf.mxu0  ;;  %v3683_v32 = vpop.f32.mrf.mxu1 }
 0x181   : > { %v3685_v33 = vpop.f32.mrf.mxu0  ;;  %v3687_v34 = vpop.f32.mrf.mxu1 }
 0x183   : > { %v3689_v35 = vpop.f32.mrf.mxu0  ;;  %v3691_v36 = vpop.f32.mrf.mxu1 }
 0x185   : > { %v3693_v37 = vpop.f32.mrf.mxu0  ;;  %v3695_v38 = vpop.f32.mrf.mxu1 }
 0x187   : > { %v3697_v39 = vpop.f32.mrf.mxu0  ;;  %v3699_v40 = vpop.f32.mrf.mxu1 }
 0x189   : > { %v3701_v41 = vpop.f32.mrf.mxu0  ;;  %v3703_v42 = vpop.f32.mrf.mxu1 }
 0x18b   : > { %v3705_v43 = vpop.f32.mrf.mxu0  ;;  %v3707_v44 = vpop.f32.mrf.mxu1 }
 0x18d   : > { %v3709_v45 = vpop.f32.mrf.mxu0  ;;  %v3711_v46 = vpop.f32.mrf.mxu1 }
 0x18f   : > { %v3713_v47 = vpop.f32.mrf.mxu0  ;;  %v3715_v48 = vpop.f32.mrf.mxu1 }
 0x191   : > { %v3717_v49 = vpop.f32.mrf.mxu0  ;;  %v3719_v50 = vpop.f32.mrf.mxu1 }
 0x193   : > { %v3721_v51 = vpop.f32.mrf.mxu0  ;;  %v3723_v52 = vpop.f32.mrf.mxu1 }
 0x195   : > { %v874_v53 = vpop.f32.mrf.mxu0  ;;  %v987_v54 = vpop.f32.mrf.mxu1 }
 0x197   : > { %v878_v55 = vpop.f32.mrf.mxu0  ;;  %v991_v56 = vpop.f32.mrf.mxu1 }
 0x199   : > { %v880_v57 = vpop.f32.mrf.mxu0  ;;  %v993_v58 = vpop.f32.mrf.mxu1 }
 0x19b   : > { %v882_v59 = vpop.f32.mrf.mxu0  ;;  %v995_v60 = vpop.f32.mrf.mxu1 }
 0x19d   : > { %v884_v61 = vpop.f32.mrf.mxu0  ;;  %v997_v62 = vpop.f32.mrf.mxu1 }
 0x19f   : > { %v888_v63 = vpop.f32.mrf.mxu0  ;;  %v1001_v1 = vpop.f32.mrf.mxu1 }
 0x1a1   : > { %v890_v2 = vpop.f32.mrf.mxu0  ;;  %v1003_v3 = vpop.f32.mrf.mxu1 }
 0x1a3   : > { %v892_v5 = vpop.f32.mrf.mxu0  ;;  %v1005_v6 = vpop.f32.mrf.mxu1 }
 0x1a4   : > { %v1282_v20 = vpack.c.bf16 %v892_v5, %v888_v63  ;;  %v2940_v63 = vld [vmem:[#allocation5 + $0x40] sm:$0xff]  }
 0x1a5   : > { %v894_v7 = vpop.f32.mrf.mxu0  ;;  %v1007_v8 = vpop.f32.mrf.mxu1 }
 0x1a6   : > { %v1283_v22 = vpack.c.bf16 %v894_v7, %v890_v2  ;;  %v1285_v21 = vpack.c.bf16 %v1007_v8, %v1003_v3  ;;  %v4337_v2 = vld [vmem:[#allocation20_spill] sm:$0xff]  ;;  %v4339_v7 = vmov 0  }
 0x1a7   : > { %v898_v9 = vpop.f32.mrf.mxu0  ;;  %v1011_v10 = vpop.f32.mrf.mxu1 }
 0x1a9   : > { %v900_v11 = vpop.f32.mrf.mxu0  ;;  %v1013_v0 = vpop.f32.mrf.mxu1 }
 0x1ab   : > { %v902_v18 = vpop.f32.mrf.mxu0  ;;  %v1015_v16 = vpop.f32.mrf.mxu1 }
 0x1ac   : > { %v1288_v17 = vpack.c.bf16 %v902_v18, %v898_v9  ;;  %v1290_v27 = vpack.c.bf16 %v1015_v16, %v1011_v10  ;;  %v1276_v16 = vpack.c.bf16 %v882_v59, %v878_v55  ;;  %v1265_v55 = vpack.c.bf16 %v3709_v45, %v3701_v41  ;;  %v2946_v9 = vld [vmem:[#allocation5 + $0x8] sm:$0xff]  }
 0x1ad   : > { %v904_v28 = vpop.f32.mrf.mxu0  ;;  %v1017_v12 = vpop.f32.mrf.mxu1  ;;  %v1264_v41 = vpack.c.bf16 %v3705_v43, %v3697_v39  ;;  %v1258_v39 = vpack.c.bf16 %v3689_v35, %v3681_v31  ;;  %v4326_v35 = vld [vmem:[#allocation24_spill] sm:$0xff] }
 0x1ae   : > { %v1289_v26 = vpack.c.bf16 %v904_v28, %v900_v11  ;;  %v1291_v4 = vpack.c.bf16 %v1017_v12, %v1013_v0  ;;  %v1277_v28 = vpack.c.bf16 %v884_v61, %v880_v57  ;;  %v1284_v11 = vpack.c.bf16 %v1005_v6, %v1001_v1  ;;  %v4336_v1 = vld [vmem:[#allocation23_spill] sm:$0xff] }
 0x1af   : > { %v3725_v15 = vpop.f32.mrf.mxu0  ;;  %v1279_v12 = vpack.c.bf16 %v997_v62, %v993_v58  ;;  %v4338_v3 = vpack.c.bf16 %v4336_v1, %v4337_v2  ;;  %v2958_v1 = vld [vmem:[#allocation5 + $0x38] sm:$0xff]  }
 0x1b0   : > { %1536 = vmatprep.subr.bf16.mxu1 %v1289_v26  ;;  %1375 = vmatprep.subr.bf16.mxu0 %v1291_v4  ;;  %v1273_v26 = vpack.c.bf16 %v987_v54, %v3719_v50  ;;  %v2951_v2 = vld [vmem:[#allocation5 + $0x78] sm:$0xff]  }
 0x1b1   : > { %v3727_v25 = vpop.f32.mrf.mxu0  ;;  %1537 = vmatpush1.bf16.msra.mxu1 %v1288_v17  ;;  %1376 = vmatpush1.bf16.msra.mxu0 %v1290_v27 }
 0x1b2   : > { %1538 = vmatprep.subr.bf16.mxu1 %v1283_v22  ;;  %1377 = vmatprep.subr.bf16.mxu0 %v1285_v21  ;;  %v1271_v21 = vpack.c.bf16 %v874_v53, %v3717_v49  ;;  %v1278_v22 = vpack.c.bf16 %v995_v60, %v991_v56  ;;  %v1272_v49 = vpack.c.bf16 %v3723_v52, %v3715_v48  ;;  %v4328_v52 = vld [vmem:[#allocation25_spill] sm:$0xff]  ;;  %v2944_v60 = vld [vmem:[#allocation5] sm:$0xff]  }
 0x1b3   : > { %v3729_v14 = vpop.f32.mrf.mxu0  ;;  %v1267_v53 = vpack.c.bf16 %v3711_v46, %v3703_v42  ;;  %v1259_v48 = vpack.c.bf16 %v3693_v37, %v3685_v33  ;;  %v1266_v42 = vpack.c.bf16 %v3707_v44, %v3699_v40  ;;  %v1261_v46 = vpack.c.bf16 %v3695_v38, %v3687_v34  ;;  %v4327_v44 = vld [vmem:[#allocation27_spill] sm:$0xff] }
 0x1b4   : > { %v1250_v0 = vpack.c.bf16 %v3729_v14, %v3725_v15  ;;  %v1253_v33 = vpack.c.bf16 %v3677_v29, %v3665_v23  ;;  %v1260_v37 = vpack.c.bf16 %v3691_v36, %v3683_v32  ;;  %v1255_v38 = vpack.c.bf16 %v3679_v30, %v3667_v24  ;;  %v4325_v29 = vld [vmem:[#allocation21_spill] sm:$0xff]  ;;  %v4330_v24 = vld [vmem:[#allocation28_spill] sm:$0xff]  ;;  %v4331_v30 = vld [vmem:[#allocation26_spill] sm:$0xff] }
 0x1b5   : > { %v3733_v18 = vpop.f32.mrf.mxu0  ;;  %1539 = vmatpush1.bf16.msra.mxu1 %v1282_v20  ;;  %1378 = vmatpush1.bf16.msra.mxu0 %v1284_v11  ;;  %v1270_v20 = vpack.c.bf16 %v3721_v51, %v3713_v47  ;;  %v1247_v23 = vpack.c.bf16 %v3657_v19, %v3645_v13  ;;  %v1249_v32 = vpack.c.bf16 %v4326_v35, %v4325_v29  ;;  %v4333_v13 = vld [vmem:[#allocation22_spill] sm:$0xff]  ;;  %v4334_v19 = vld [vmem:[#allocation19_spill] sm:$0xff] }
 0x1b6   : > { %v1251_v4 = vpack.c.bf16 %v3733_v18, %v3727_v25  ;;  %1540 = vmatprep.subr.bf16.mxu1 %v1277_v28  ;;  %1379 = vmatprep.subr.bf16.mxu0 %v1279_v12  ;;  %v4329_v56 = vpack.c.bf16 %v4327_v44, %v4328_v52  ;;  %v4332_v58 = vpack.c.bf16 %v4330_v24, %v4331_v30  ;;  %v2941_v28 = vld [vmem:[#allocation5 + $0x48] sm:$0xff]   ;;  %v2957_v18 = vld [vmem:[#allocation5 + $0x90] sm:$0xff]  }
 0x1b7   : > { %v3737_v17 = vpop.f32.mrf.mxu0  ;;  %v4335_v62 = vpack.c.bf16 %v4333_v13, %v4334_v19  ;;  %v2954_v44 = vld [vmem:[#allocation5 + $0x28] sm:$0xff]   ;;  %v2949_v19 = vld [vmem:[#allocation5 + $0x70] sm:$0xff]  }
 0x1b8   : > { %v2964_v14 = vld [vmem:[#allocation8 + $0x70] ss:$8 sps:$4 sm:$0xff]   ;;  %v2969_v15 = vld [vmem:[#allocation8 + $0x64] ss:$8 sps:$4 sm:$0xff]  }
 0x1b9   : > { %v3741_v27 = vpop.f32.mrf.mxu0  ;;  %1541 = vmatpush1.bf16.msra.mxu1 %v1276_v16  ;;  %1380 = vmatpush1.bf16.msra.mxu0 %v1278_v22 }
 0x1ba   : > { %1542 = vmatprep.subr.bf16.mxu1 %v1271_v21  ;;  %1381 = vmatprep.subr.bf16.mxu0 %v1273_v26  ;;  %v2948_v21 = vld [vmem:[#allocation5 + $0x10] sm:$0xff]  }
 0x1bb   : > { %v3745_v57 = vpop.f32.mrf.mxu0  ;;  %v2942_v26 = vld [vmem:[#allocation5 + $0x50] sm:$0xff]  }
 0x1bc   : > { %v1256_v50 = vpack.c.bf16 %v3745_v57, %v3737_v17  ;;  %v2955_v17 = vld [vmem:[#allocation5 + $0x88] sm:$0xff]  }
 0x1bd   : > { %v3755_v54 = vpop.f32.mrf.mxu0  ;;  %1543 = vmatpush1.bf16.msra.mxu1 %v1270_v20  ;;  %1382 = vmatpush1.bf16.msra.mxu0 %v1272_v49 }
 0x1be   : > { %v1257_v47 = vpack.c.bf16 %v3755_v54, %v3741_v27  ;;  %1544 = vmatprep.subr.bf16.mxu1 %v1265_v55  ;;  %1383 = vmatprep.subr.bf16.mxu0 %v1267_v53  ;;  %v2950_v53 = vld [vmem:[#allocation5 + $0x18] sm:$0xff]   ;;  %v2967_v54 = vld [vmem:[#allocation8 + $0x60] ss:$8 sps:$4 sm:$0xff]  }
 0x1bf   : > { %v3761_v45 = vpop.f32.mrf.mxu0 }
 0x1c1   : > { %v3769_v51 = vpop.f32.mrf.mxu0  ;;  %1545 = vmatpush1.bf16.msra.mxu1 %v1264_v41  ;;  %1384 = vmatpush1.bf16.msra.mxu0 %v1266_v42 }
 0x1c2   : > { %1546 = vmatprep.subr.bf16.mxu1 %v1259_v48  ;;  %1385 = vmatprep.subr.bf16.mxu0 %v1261_v46  ;;  %v2943_v48 = vld [vmem:[#allocation5 + $0x58] sm:$0xff]  }
 0x1c3   : > { %v3773_v43 = vpop.f32.mrf.mxu0 }
 0x1c4   : > { %v1262_v34 = vpack.c.bf16 %v3773_v43, %v3761_v45  ;;  %v3848_v45 = vpop.f32.mrf.mxu1  ;;  %v2972_v43 = vld [vmem:[#allocation8 + $0x54] ss:$8 sps:$4 sm:$0xff]  }
 0x1c5   : > { %v3783_v40 = vpop.f32.mrf.mxu0  ;;  %1547 = vmatpush1.bf16.msra.mxu1 %v1258_v39  ;;  %1386 = vmatpush1.bf16.msra.mxu0 %v1260_v37  ;;  %4340 = vst [vmem:[#allocation21_spill] sm:$0xff] %v3848_v45 }
 0x1c6   : > { %1548 = vmatprep.subr.bf16.mxu1 %v1253_v33  ;;  %1387 = vmatprep.subr.bf16.mxu0 %v1255_v38  ;;  %v2952_v33 = vld [vmem:[#allocation5 + $0x20] sm:$0xff]   ;;  %v3851_v27 = vpop.f32.mrf.mxu1 }
 0x1c7   : > { %v3785_v31 = vpop.f32.mrf.mxu0  ;;  %v2945_v38 = vld [vmem:[#allocation5 + $0x60] sm:$0xff]   ;;  %4341 = vst [vmem:[#allocation24_spill] sm:$0xff] %v3851_v27 }
 0x1c8   : > { %v3853_v57 = vpop.f32.mrf.mxu1 }
 0x1c9   : > { %v3791_v36 = vpop.f32.mrf.mxu0  ;;  %1549 = vmatpush1.bf16.msra.mxu1 %v4329_v56  ;;  %1388 = vmatpush1.bf16.msra.mxu0 %v4332_v58  ;;  %v2947_v56 = vld [vmem:[#allocation5 + $0x68] sm:$0xff]   ;;  %4342 = vst [vmem:[#allocation27_spill] sm:$0xff] %v3853_v57 }
 0x1ca   : > { %1550 = vmatprep.subr.bf16.mxu1 %v1247_v23  ;;  %1389 = vmatprep.subr.bf16.mxu0 %v1249_v32  ;;  %v3856_v25 = vpop.f32.mrf.mxu1 }
 0x1cb   : > { %v3799_v59 = vpop.f32.mrf.mxu0  ;;  %4343 = vst [vmem:[#allocation25_spill] sm:$0xff] %v3856_v25  ;;  %v1861_v25 = vld [vmem:[#allocation10 + $0x10] sm:$0xff] }
 0x1cd   : > { %v3801_v61 = vpop.f32.mrf.mxu0  ;;  %1551 = vmatpush1.bf16.msra.mxu1 %v4335_v62  ;;  %1390 = vmatpush1.bf16.msra.mxu0 %v4338_v3  ;;  %v1268_v62 = vpack.c.bf16 %v3799_v59, %v3785_v31  ;;  %v2975_v31 = vld [vmem:[#allocation8 + $0x44] ss:$8 sps:$4 sm:$0xff]   ;;  %v2973_v59 = vld [vmem:[#allocation8 + $0x40] ss:$8 sps:$4 sm:$0xff]   ;;  %v2978_v3 = vld [vmem:[#allocation8 + $0x34] ss:$8 sps:$4 sm:$0xff]  }
 0x1ce   : > { %v1269_v13 = vpack.c.bf16 %v3801_v61, %v3791_v36  ;;  %v2960_v61 = vld [vmem:[#allocation5 + $0xa0] sm:$0xff]  }
 0x1cf   : > { %v3809_v5 = vpop.f32.mrf.mxu0 }
 0x1d0   : > { %1569 = vmatmul.mubr.bf16.vlgmr.msra.gmra.mxu1 %v2944_v60  ;;  %1408 = vmatmul.mubr.bf16.vlgmr.msra.gmra.mxu0 %v2940_v63  ;;  %v2956_v60 = vld [vmem:[#allocation5 + $0x30] sm:$0xff]   ;;  %v1263_v63 = vpack.c.bf16 %v3783_v40, %v3769_v51  ;;  %v2953_v51 = vld [vmem:[#allocation5 + $0x80] sm:$0xff]  }
 0x1d1   : > { %v1096_v6 = vpop.f32.mrf.mxu0  ;;  %1578 = vmatprep.mubr.bf16.mxu1 %v4339_v7  ;;  %1417 = vmatprep.mubr.bf16.mxu0 %v4339_v7  ;;  %v2970_v40 = vld [vmem:[#allocation8 + $0x50] ss:$8 sps:$4 sm:$0xff]  }
 0x1d3   : > { %v1098_v8 = vpop.f32.mrf.mxu0 }
 0x1d4   : > { %v1274_v58 = vpack.c.bf16 %v1098_v8, %v3809_v5  ;;  %v2981_v8 = vld [vmem:[#allocation8 + $0x24] ss:$8 sps:$4 sm:$0xff]  }
 0x1d5   : > { %v1100_v10 = vpop.f32.mrf.mxu0 }
 0x1d6   : > { %v1275_v30 = vpack.c.bf16 %v1100_v10, %v1096_v6  ;;  %v2976_v6 = vld [vmem:[#allocation8 + $0x30] ss:$8 sps:$4 sm:$0xff]   ;;  %v2979_v10 = vld [vmem:[#allocation8 + $0x20] ss:$8 sps:$4 sm:$0xff]  }
 0x1d7   : > { %v1104_v11 = vpop.f32.mrf.mxu0 }
 0x1d8   : > { %1579 = vmatmul.mubr.bf16.gmra.mxu1 %v2946_v9  ;;  %1418 = vmatmul.mubr.bf16.gmra.mxu0 %v2941_v28  ;;  %v2961_v28 = vld [vmem:[#allocation5 + $0xa8] sm:$0xff]  }
 0x1d9   : > { %v1106_v12 = vpop.f32.mrf.mxu0  ;;  %1588 = vmatprep.mubr.bf16.mxu1 %v4339_v7  ;;  %1427 = vmatprep.mubr.bf16.mxu0 %v4339_v7 }
 0x1db   : > { %v1108_v16 = vpop.f32.mrf.mxu0 }
 0x1dc   : > { %v1280_v24 = vpack.c.bf16 %v1108_v16, %v1104_v11  ;;  %v2984_v11 = vld [vmem:[#allocation8 + $0x14] ss:$8 sps:$4 sm:$0xff]   ;;  %v2982_v16 = vld [vmem:[#allocation8 + $0x10] ss:$8 sps:$4 sm:$0xff]  }
 0x1dd   : > { %v1110_v22 = vpop.f32.mrf.mxu0 }
 0x1de   : > { %v1281_v52 = vpack.c.bf16 %v1110_v22, %v1106_v12 }
 0x1df   : > { %v1114_v20 = vpop.f32.mrf.mxu0 }
 0x1e0   : > { %1589 = vmatmul.mubr.bf16.gmra.mxu1 %v2948_v21  ;;  %1428 = vmatmul.mubr.bf16.gmra.mxu0 %v2942_v26  ;;  %v2987_v21 = vld [vmem:[#allocation8 + $0x4] ss:$8 sps:$4 sm:$0xff]   ;;  %v2985_v26 = vld [vmem:[#allocation8] ss:$8 sps:$4 sm:$0xff]  }
 0x1e1   : > { %v1116_v55 = vpop.f32.mrf.mxu0  ;;  %1598 = vmatprep.mubr.bf16.mxu1 %v4339_v7  ;;  %1437 = vmatprep.mubr.bf16.mxu0 %v4339_v7 }
 0x1e3   : > { %v1118_v49 = vpop.f32.mrf.mxu0 }
 0x1e4   : > { %v1286_v32 = vpack.c.bf16 %v1118_v49, %v1114_v20  ;;  %v2962_v20 = vld [vmem:[#allocation5 + $0xb0] sm:$0xff]  }
 0x1e5   : > { %v1120_v41 = vpop.f32.mrf.mxu0 }
 0x1e6   : > { %v1287_v35 = vpack.c.bf16 %v1120_v41, %v1116_v55  ;;  %v2990_v55 = vld [vmem:[#allocation8 + $0xf4] ss:$8 sps:$4 sm:$0xff]   ;;  %v2993_v41 = vld [vmem:[#allocation8 + $0xe4] ss:$8 sps:$4 sm:$0xff]  }
 0x1e7   : > { %v1124_v42 = vpop.f32.mrf.mxu0 }
 0x1e8   : > { %1599 = vmatmul.mubr.bf16.gmra.mxu1 %v2950_v53  ;;  %1438 = vmatmul.mubr.bf16.gmra.mxu0 %v2943_v48  ;;  %v2988_v53 = vld [vmem:[#allocation8 + $0xf0] ss:$8 sps:$4 sm:$0xff]  }
 0x1e9   : > { %v1126_v46 = vpop.f32.mrf.mxu0  ;;  %1608 = vmatprep.mubr.bf16.mxu1 %v4339_v7  ;;  %1447 = vmatprep.mubr.bf16.mxu0 %v4339_v7 }
 0x1eb   : > { %v1128_v39 = vpop.f32.mrf.mxu0 }
 0x1ec   : > { %v1292_v29 = vpack.c.bf16 %v1128_v39, %v1124_v42  ;;  %v2991_v42 = vld [vmem:[#allocation8 + $0xe0] ss:$8 sps:$4 sm:$0xff]   ;;  %v2996_v39 = vld [vmem:[#allocation8 + $0xd4] ss:$8 sps:$4 sm:$0xff]  }
 0x1ed   : > { %v1130_v37 = vpop.f32.mrf.mxu0 }
 0x1ee   : > { %v1293_v23 = vpack.c.bf16 %v1130_v37, %v1126_v46  ;;  %v2963_v46 = vld [vmem:[#allocation5 + $0xb8] sm:$0xff]  }
 0x1ef   : > { %v2994_v37 = vld [vmem:[#allocation8 + $0xd0] ss:$8 sps:$4 sm:$0xff]  }
 0x1f0   : > { %1714 = vmatprep.subr.bf16.mxu0 %v1293_v23  ;;  %1609 = vmatmul.mubr.bf16.gmra.mxu1 %v2952_v33 }
 0x1f1   : > { %1448 = vmatmul.mubr.bf16.gmra.mxu0 %v2945_v38  ;;  %1618 = vmatprep.mubr.bf16.mxu1 %v4339_v7  ;;  %v2999_v38 = vld [vmem:[#allocation8 + $0xc4] ss:$8 sps:$4 sm:$0xff]  }
 0x1f2   : > { %1715 = vmatpush1.bf16.msra.mxu0 %v1292_v29  ;;  %1457 = vmatprep.mubr.bf16.mxu0 %v4339_v7  ;;  %v2997_v29 = vld [vmem:[#allocation8 + $0xc0] ss:$8 sps:$4 sm:$0xff]  }
 0x1f3   : > { %1716 = vmatprep.subr.bf16.mxu0 %v1287_v35 }
 0x1f6   : > { %1717 = vmatpush1.bf16.msra.mxu0 %v1286_v32  ;;  %v3000_v32 = vld [vmem:[#allocation8 + $0xb0] ss:$8 sps:$4 sm:$0xff]  }
 0x1f7   : > { %1718 = vmatprep.subr.bf16.mxu0 %v1281_v52 }
 0x1f8   : > { %1619 = vmatmul.mubr.bf16.gmra.mxu1 %v2954_v44  ;;  %v3005_v44 = vld [vmem:[#allocation8 + $0xa4] ss:$8 sps:$4 sm:$0xff]  }
 0x1f9   : > { %1458 = vmatmul.mubr.bf16.gmra.mxu0 %v2947_v56  ;;  %1628 = vmatprep.mubr.bf16.mxu1 %v4339_v7  ;;  %v3003_v56 = vld [vmem:[#allocation8 + $0xa0] ss:$8 sps:$4 sm:$0xff]  }
 0x1fa   : > { %1719 = vmatpush1.bf16.msra.mxu0 %v1280_v24  ;;  %1467 = vmatprep.mubr.bf16.mxu0 %v4339_v7  ;;  %v3008_v24 = vld [vmem:[#allocation8 + $0x94] ss:$8 sps:$4 sm:$0xff]  }
 0x1fb   : > { %1720 = vmatprep.subr.bf16.mxu0 %v1275_v30 }
 0x1fe   : > { %1721 = vmatpush1.bf16.msra.mxu0 %v1274_v58  ;;  %v3006_v58 = vld [vmem:[#allocation8 + $0x90] ss:$8 sps:$4 sm:$0xff]  }
 0x1ff   : > { %1722 = vmatprep.subr.bf16.mxu0 %v1269_v13 }
 0x200   : > { %1629 = vmatmul.mubr.bf16.gmra.mxu1 %v2956_v60  ;;  %v3011_v60 = vld [vmem:[#allocation8 + $0x84] ss:$8 sps:$4 sm:$0xff]  }
 0x201   : > { %1468 = vmatmul.mubr.bf16.gmra.mxu0 %v2949_v19  ;;  %1638 = vmatprep.mubr.bf16.mxu1 %v4339_v7  ;;  %v3009_v19 = vld [vmem:[#allocation8 + $0x80] ss:$8 sps:$4 sm:$0xff]  }
 0x202   : > { %1723 = vmatpush1.bf16.msra.mxu0 %v1268_v62  ;;  %1477 = vmatprep.mubr.bf16.mxu0 %v4339_v7 }
 0x203   : > { %1724 = vmatprep.subr.bf16.mxu0 %v1263_v63 }
 0x206   : > { %1725 = vmatpush1.bf16.msra.mxu0 %v1262_v34 }
 0x207   : > { %1726 = vmatprep.subr.bf16.mxu0 %v1257_v47  ;;  %v2959_v47 = vld [vmem:[#allocation5 + $0x98] sm:$0xff]  }
 0x208   : > { %1639 = vmatmul.mubr.bf16.gmra.mxu1 %v2958_v1 }
 0x209   : > { %1478 = vmatmul.mubr.bf16.gmra.mxu0 %v2951_v2 }
 0x20a   : > { %1727 = vmatpush1.bf16.msra.mxu0 %v1256_v50  ;;  %1746 = vmatprep.mubr.bf16.mxu0 %v4339_v7  ;;  %v3858_v50 = vpop.f32.mrf.mxu1 }
 0x20b   : > { %1728 = vmatprep.subr.bf16.mxu0 %v1251_v4  ;;  %v2966_v4 = vld [vmem:[#allocation8 + $0x74] ss:$8 sps:$4 sm:$0xff]   ;;  %4344 = vst [vmem:[#allocation28_spill] sm:$0xff] %v3858_v50 }
 0x20c   : > { %2163 = vmatprep.subr.bf16.mxu1 %v2966_v4 }
 0x20d   : > { %2164 = vmatpush1.bf16.msra.mxu1 %v2964_v14 }
 0x20e   : > { %1729 = vmatpush1.bf16.msra.mxu0 %v1250_v0  ;;  %v3861_v0 = vpop.f32.mrf.mxu1  ;;  %2165 = vmatprep.subr.bf16.mxu1 %v2969_v15 }
 0x20f   : > { %4345 = vst [vmem:[#allocation26_spill] sm:$0xff] %v3861_v0  ;;  %v1860_v0 = vld [vmem:[#allocation10 + $0x8] sm:$0xff] }
 0x210   : > { %v3863_v34 = vpop.f32.mrf.mxu1 }
 0x211   : > { %1747 = vmatmul.mubr.bf16.vlgmr.msra.gmra.mxu0 %v2953_v51  ;;  %2166 = vmatpush1.bf16.msra.mxu1 %v2967_v54  ;;  %4346 = vst [vmem:[#allocation22_spill] sm:$0xff] %v3863_v34 }
 0x212   : > { %1756 = vmatprep.mubr.bf16.mxu0 %v4339_v7  ;;  %2167 = vmatprep.subr.bf16.mxu1 %v2972_v43  ;;  %v3866_v36 = vpop.f32.mrf.mxu1 }
 0x213   : > { %4347 = vst [vmem:[#allocation19_spill] sm:$0xff] %v3866_v36 }
 0x214   : > { %v3868_v5 = vpop.f32.mrf.mxu1 }
 0x215   : > { %2168 = vmatpush1.bf16.msra.mxu1 %v2970_v40  ;;  %4348 = vst [vmem:[#allocation23_spill] sm:$0xff] %v3868_v5 }
 0x216   : > { %2169 = vmatprep.subr.bf16.mxu1 %v2975_v31  ;;  %v3871_v9 = vpop.f32.mrf.mxu1 }
 0x217   : > { %4349 = vst [vmem:[#allocation20_spill] sm:$0xff] %v3871_v9  ;;  %v1859_v9 = vld [vmem:[#allocation10] sm:$0xff] }
 0x218   : > { %v3873_v12 = vpop.f32.mrf.mxu1 }
 0x219   : > { %1757 = vmatmul.mubr.bf16.gmra.mxu0 %v2955_v17  ;;  %2170 = vmatpush1.bf16.msra.mxu1 %v2973_v59  ;;  %4350 = vst [vmem:[#allocation29_spill] sm:$0xff] %v3873_v12 }
 0x21a   : > { %1766 = vmatprep.mubr.bf16.mxu0 %v4339_v7  ;;  %2171 = vmatprep.subr.bf16.mxu1 %v2978_v3  ;;  %v3876_v22 = vpop.f32.mrf.mxu1 }
 0x21b   : > { %4351 = vst [vmem:[#allocation30_spill] sm:$0xff] %v3876_v22 }
 0x21c   : > { %v3878_v49 = vpop.f32.mrf.mxu1 }
 0x21d   : > { %2172 = vmatpush1.bf16.msra.mxu1 %v2976_v6  ;;  %4352 = vst [vmem:[#allocation31_spill] sm:$0xff] %v3878_v49 }
 0x21e   : > { %2173 = vmatprep.subr.bf16.mxu1 %v2981_v8  ;;  %v3881_v48 = vpop.f32.mrf.mxu1 }
 0x21f   : > { %4353 = vst [vmem:[#allocation32_spill] sm:$0xff] %v3881_v48 }
 0x220   : > { %v3883_v33 = vpop.f32.mrf.mxu1 }
 0x221   : > { %1767 = vmatmul.mubr.bf16.gmra.mxu0 %v2957_v18  ;;  %2174 = vmatpush1.bf16.msra.mxu1 %v2979_v10  ;;  %4354 = vst [vmem:[#allocation33_spill] sm:$0xff] %v3883_v33 }
 0x222   : > { %1776 = vmatprep.mubr.bf16.mxu0 %v4339_v7  ;;  %2175 = vmatprep.subr.bf16.mxu1 %v2984_v11  ;;  %v3885_v23 = vpop.f32.mrf.mxu1 }
 0x223   : > { %4355 = vst [vmem:[#allocation34_spill] sm:$0xff] %v3885_v23 }
 0x224   : > { %v3887_v35 = vpop.f32.mrf.mxu1 }
 0x225   : > { %2176 = vmatpush1.bf16.msra.mxu1 %v2982_v16  ;;  %4356 = vst [vmem:[#allocation35_spill] sm:$0xff] %v3887_v35 }
 0x226   : > { %2177 = vmatprep.subr.bf16.mxu1 %v2987_v21  ;;  %v3889_v52 = vpop.f32.mrf.mxu1 }
 0x227   : > { %4357 = vst [vmem:[#allocation36_spill] sm:$0xff] %v3889_v52 }
 0x228   : > { %v3891_v30 = vpop.f32.mrf.mxu1 }
 0x229   : > { %1777 = vmatmul.mubr.bf16.gmra.mxu0 %v2959_v47  ;;  %2178 = vmatpush1.bf16.msra.mxu1 %v2985_v26  ;;  %4358 = vst [vmem:[#allocation37_spill] sm:$0xff] %v3891_v30 }
 0x22a   : > { %1786 = vmatprep.mubr.bf16.mxu0 %v4339_v7  ;;  %2179 = vmatprep.subr.bf16.mxu1 %v2990_v55  ;;  %v3893_v13 = vpop.f32.mrf.mxu1 }
 0x22b   : > { %4359 = vst [vmem:[#allocation38_spill] sm:$0xff] %v3893_v13 }
 0x22c   : > { %v3895_v62 = vpop.f32.mrf.mxu1 }
 0x22d   : > { %2180 = vmatpush2.bf16.msra.mxu1 %v2988_v53  ;;  %4360 = vst [vmem:[#allocation39_spill] sm:$0xff] %v3895_v62 }
 0x22e   : > { %2181 = vmatprep.subr.bf16.mxu1 %v2993_v41  ;;  %v3897_v63 = vpop.f32.mrf.mxu1 }
 0x22f   : > { %4361 = vst [vmem:[#allocation40_spill] sm:$0xff] %v3897_v63 }
 0x230   : > { %v3899_v1 = vpop.f32.mrf.mxu1 }
 0x231   : > { %1787 = vmatmul.mubr.bf16.gmra.mxu0 %v2960_v61  ;;  %2182 = vmatpush2.bf16.msra.mxu1 %v2991_v42  ;;  %4362 = vst [vmem:[#allocation41_spill] sm:$0xff] %v3899_v1 }
 0x232   : > { %1796 = vmatprep.mubr.bf16.mxu0 %v4339_v7  ;;  %2183 = vmatprep.subr.bf16.mxu1 %v2996_v39  ;;  %v3901_v2 = vpop.f32.mrf.mxu1 }
 0x233   : > { %4363 = vst [vmem:[#allocation42_spill] sm:$0xff] %v3901_v2 }
 0x234   : > { %v3903_v51 = vpop.f32.mrf.mxu1 }
 0x235   : > { %2184 = vmatpush2.bf16.msra.mxu1 %v2994_v37  ;;  %4364 = vst [vmem:[#allocation43_spill] sm:$0xff] %v3903_v51 }
 0x236   : > { %2185 = vmatprep.subr.bf16.mxu1 %v2999_v38  ;;  %v3905_v17 = vpop.f32.mrf.mxu1 }
 0x237   : > { %4365 = vst [vmem:[#allocation44_spill] sm:$0xff] %v3905_v17 }
 0x238   : > { %v3907_v18 = vpop.f32.mrf.mxu1 }
 0x239   : > { %1797 = vmatmul.mubr.bf16.gmra.mxu0 %v2961_v28  ;;  %2186 = vmatpush2.bf16.msra.mxu1 %v2997_v29  ;;  %4366 = vst [vmem:[#allocation45_spill] sm:$0xff] %v3907_v18 }
 0x23a   : > { %1806 = vmatprep.mubr.bf16.mxu0 %v4339_v7  ;;  %v3909_v4 = vpop.f32.mrf.mxu1 }
 0x23b   : > { %4367 = vst [vmem:[#allocation46_spill] sm:$0xff] %v3909_v4 }
 0x23c   : > { %v3911_v14 = vpop.f32.mrf.mxu1 }
 0x23d   : > { %4368 = vst [vmem:[#allocation47_spill] sm:$0xff] %v3911_v14 }
 0x23e   : > { %v3913_v15 = vpop.f32.mrf.mxu1 }
 0x23f   : > { %4369 = vst [vmem:[#allocation48_spill] sm:$0xff] %v3913_v15 }
 0x240   : > { %v3915_v54 = vpop.f32.mrf.mxu1 }
 0x241   : > { %1807 = vmatmul.mubr.bf16.gmra.mxu0 %v2962_v20  ;;  %4370 = vst [vmem:[#allocation49_spill] sm:$0xff] %v3915_v54 }
 0x242   : > { %1816 = vmatprep.mubr.bf16.mxu0 %v4339_v7  ;;  %v3002_v7 = vld [vmem:[#allocation8 + $0xb4] ss:$8 sps:$4 sm:$0xff]   ;;  %v3917_v47 = vpop.f32.mrf.mxu1 }
 0x243   : > { %2187 = vmatprep.subr.bf16.mxu1 %v3002_v7  ;;  %4371 = vst [vmem:[#allocation50_spill] sm:$0xff] %v3917_v47 }
 0x244   : > { %2188 = vmatpush2.bf16.msra.mxu1 %v3000_v32 }
 0x245   : > { %2189 = vmatprep.subr.bf16.mxu1 %v3005_v44 }
 0x248   : > { %2190 = vmatpush2.bf16.msra.mxu1 %v3003_v56 }
 0x249   : > { %1817 = vmatmul.mubr.bf16.gmra.mxu0 %v2963_v46  ;;  %2191 = vmatprep.subr.bf16.mxu1 %v3008_v24 }
 0x24c   : > { %2192 = vmatpush2.bf16.msra.mxu1 %v3006_v58 }
 0x24d   : > { %2193 = vmatprep.subr.bf16.mxu1 %v3011_v60 }
 0x250   : > { %2194 = vmatpush2.bf16.msra.mxu1 %v3009_v19 }
 0x290   : > { %v1570_v43 = vpop.f32.mrf.mxu1  ;;  %v1409_v40 = vpop.f32.mrf.mxu0 }
 0x291   : > { %v1571_v33 = vadd.f32 %v1570_v43, %v1409_v40 }
 0x292   : > { %v1411_v31 = vpop.f32.mrf.mxu0  ;;  %v1572_v59 = vpop.f32.mrf.mxu1 }
 0x293   : > { %v1573_v49 = vadd.f32 %v1572_v59, %v1411_v31 }
 0x294   : > { %v1413_v61 = vpop.f32.mrf.mxu0  ;;  %v1574_v6 = vpop.f32.mrf.mxu1 }
 0x295   : > { %v1575_v36 = vadd.f32 %v1574_v6, %v1413_v61 }
 0x296   : > { %v1415_v3 = vpop.f32.mrf.mxu0  ;;  %v1576_v28 = vpop.f32.mrf.mxu1 }
 0x297   : > { %v1577_v57 = vadd.f32 %v1576_v28, %v1415_v3 }
 0x298   : > { %v1419_v8 = vpop.f32.mrf.mxu0  ;;  %v1580_v21 = vpop.f32.mrf.mxu1 }
 0x299   : > { %v1581_v43 = vadd.f32 %v1580_v21, %v1419_v8 }
 0x29a   : > { %v3919_v10 = vpop.f32.mrf.mxu0  ;;  %v1582_v55 = vpop.f32.mrf.mxu1 }
 0x29c   : > { %v3921_v11 = vpop.f32.mrf.mxu0  ;;  %v1584_v42 = vpop.f32.mrf.mxu1 }
 0x29d   : > { %v1585_v6 = vadd.f32 %v1584_v42, %v3921_v11  ;;  %v1866_v11 = vld [vmem:[#allocation10 + $0x38] sm:$0xff] }
 0x29e   : > { %v3923_v16 = vpop.f32.mrf.mxu0  ;;  %v3937_v37 = vpop.f32.mrf.mxu1 }
 0x2a0   : > { %v3925_v26 = vpop.f32.mrf.mxu0  ;;  %v3943_v7 = vpop.f32.mrf.mxu1 }
 0x2a1   : > { %v1591_v21 = vadd.f32 %v3943_v7, %v3925_v26 }
 0x2a2   : > { %v3927_v20 = vpop.f32.mrf.mxu0  ;;  %v3949_v56 = vpop.f32.mrf.mxu1 }
 0x2a4   : > { %v3929_v53 = vpop.f32.mrf.mxu0  ;;  %v3955_v60 = vpop.f32.mrf.mxu1 }
 0x2a6   : > { %v3931_v41 = vpop.f32.mrf.mxu0  ;;  %v3961_v54 = vpop.f32.mrf.mxu1 }
 0x2a8   : > { %v3933_v46 = vpop.f32.mrf.mxu0  ;;  %v3967_v4 = vpop.f32.mrf.mxu1 }
 0x2aa   : > { %v3935_v39 = vpop.f32.mrf.mxu0  ;;  %v3973_v51 = vpop.f32.mrf.mxu1 }
 0x2ac   : > { %v3939_v38 = vpop.f32.mrf.mxu0  ;;  %v3979_v63 = vpop.f32.mrf.mxu1 }
 0x2ae   : > { %v3941_v29 = vpop.f32.mrf.mxu0  ;;  %v3983_v13 = vpop.f32.mrf.mxu1 }
 0x2b0   : > { %v3989_v35 = vpop.f32.mrf.mxu1 }
 0x2b1   : > { %v3945_v32 = vpop.f32.mrf.mxu0 }
 0x2b2   : > { %v3993_v12 = vpop.f32.mrf.mxu1 }
 0x2b3   : > { %v3947_v44 = vpop.f32.mrf.mxu0 }
 0x2b5   : > { %v3951_v24 = vpop.f32.mrf.mxu0 }
 0x2b7   : > { %v3953_v58 = vpop.f32.mrf.mxu0 }
 0x2b9   : > { %v3957_v19 = vpop.f32.mrf.mxu0 }
 0x2bb   : > { %v3959_v47 = vpop.f32.mrf.mxu0 }
 0x2bd   : > { %v3963_v15 = vpop.f32.mrf.mxu0 }
 0x2bf   : > { %v3965_v14 = vpop.f32.mrf.mxu0 }
 0x2c1   : > { %v3969_v18 = vpop.f32.mrf.mxu0 }
 0x2c3   : > { %v3971_v17 = vpop.f32.mrf.mxu0 }
 0x2c5   : > { %v3975_v2 = vpop.f32.mrf.mxu0 }
 0x2c7   : > { %v3977_v1 = vpop.f32.mrf.mxu0 }
 0x2c9   : > { %v3981_v62 = vpop.f32.mrf.mxu0 }
 0x2ca   : > { %4372 = vst [vmem:[#allocation51_spill] sm:$0xff] %v3981_v62 }
 0x2cb   : > { %v3985_v30 = vpop.f32.mrf.mxu0 }
 0x2cc   : > { %4373 = vst [vmem:[#allocation52_spill] sm:$0xff] %v3985_v30 }
 0x2cd   : > { %v3987_v52 = vpop.f32.mrf.mxu0 }
 0x2ce   : > { %4374 = vst [vmem:[#allocation53_spill] sm:$0xff] %v3987_v52  ;;  %v3995_v52 = vpop.f32.mrf.mxu1 }
 0x2cf   : > { %v3991_v23 = vpop.f32.mrf.mxu0 }
 0x2d0   : > { %4375 = vst [vmem:[#allocation54_spill] sm:$0xff] %v3991_v23  ;;  %v1862_v23 = vld [vmem:[#allocation10 + $0x18] sm:$0xff]  ;;  %v3999_v3 = vpop.f32.mrf.mxu1 }
 0x2d1   : > { %v1748_v48 = vpop.f32.mrf.mxu0 }
 0x2d2   : > { %v1827_v22 = vadd.f32 %v1748_v48, %v1571_v33  ;;  %v1583_v33 = vadd.f32 %v1582_v55, %v3919_v10 }
 0x2d3   : > { %v1750_v5 = vpop.f32.mrf.mxu0 }
 0x2d4   : > { %v1828_v34 = vadd.f32 %v1750_v5, %v1573_v49  ;;  %v1891_v27 = vadd.f32 %v1859_v9, %v1827_v22 }
 0x2d5   : > { %v1752_v50 = vpop.f32.mrf.mxu0 }
 0x2d6   : > { %v1829_v45 = vadd.f32 %v1752_v50, %v1575_v36  ;;  %v1892_v40 = vadd.f32 %v1860_v0, %v1828_v34  ;;  %v1923_v62 = vmax.f32 %v1891_v27, 0.0  ;;  %v1863_v50 = vld [vmem:[#allocation10 + $0x20] sm:$0xff]  ;;  %v1864_v0 = vld [vmem:[#allocation10 + $0x28] sm:$0xff] }
 0x2d7   : > { %v1754_v30 = vpop.f32.mrf.mxu0 }
 0x2d8   : > { %v1893_v31 = vadd.f32 %v1861_v25, %v1829_v45  ;;  %v1830_v48 = vadd.f32 %v1754_v30, %v1577_v57  ;;  %v1924_v9 = vmax.f32 %v1892_v40, 0.0  ;;  %v1865_v57 = vld [vmem:[#allocation10 + $0x30] sm:$0xff]  ;;  %v1587_v25 = vadd.f32 %v3937_v37, %v3923_v16  ;;  %v4003_v30 = vpop.f32.mrf.mxu1 }
 0x2d9   : > { %v1758_v59 = vpop.f32.mrf.mxu0 }
 0x2da   : > { %v1925_v61 = vmax.f32 %v1893_v31, 0.0  ;;  %v1894_v5 = vadd.f32 %v1862_v23, %v1830_v48  ;;  %v1831_v49 = vadd.f32 %v1758_v59, %v1581_v43  ;;  %v1593_v43 = vadd.f32 %v3949_v56, %v3927_v20  ;;  %v4011_v59 = vpop.f32.mrf.mxu1  ;;  %v1869_v20 = vld [vmem:[#allocation10 + $0x50] sm:$0xff] }
 0x2db   : > { %v1760_v36 = vpop.f32.mrf.mxu0  ;;  %v1597_v56 = vadd.f32 %v3961_v54, %v3931_v41 }
 0x2dc   : > { %v1955_v22 = vpack.c.bf16 %v1925_v61, %v1923_v62  ;;  %v1926_v28 = vmax.f32 %v1894_v5, 0.0  ;;  %v1832_v8 = vadd.f32 %v1760_v36, %v1583_v33  ;;  %v1895_v27 = vadd.f32 %v1863_v50, %v1831_v49  ;;  %v1867_v61 = vld [vmem:[#allocation10 + $0x40] sm:$0xff]  ;;  %v1868_v50 = vld [vmem:[#allocation10 + $0x48] sm:$0xff] }
 0x2dd   : > { %v1762_v45 = vpop.f32.mrf.mxu0  ;;  %v1595_v33 = vadd.f32 %v3955_v60, %v3929_v53  ;;  %v1870_v60 = vld [vmem:[#allocation10 + $0x58] sm:$0xff] }
 0x2de   : > { %v1833_v34 = vadd.f32 %v1762_v45, %v1585_v6  ;;  %v1956_v23 = vpack.c.bf16 %v1926_v28, %v1924_v9  ;;  %v1896_v55 = vadd.f32 %v1864_v0, %v1832_v8  ;;  %v1927_v16 = vmax.f32 %v1895_v27, 0.0  ;;  %v4015_v8 = vpop.f32.mrf.mxu1 }
 0x2df   : > { %v1764_v10 = vpop.f32.mrf.mxu0  ;;  %v1601_v0 = vadd.f32 %v3967_v4, %v3933_v46  ;;  %v1603_v27 = vadd.f32 %v3973_v51, %v3935_v39  ;;  %v1873_v51 = vld [vmem:[#allocation10 + $0x70] sm:$0xff]  ;;  %v1607_v39 = vadd.f32 %v3983_v13, %v3941_v29 }
 0x2e0   : > { %v1897_v62 = vadd.f32 %v1865_v57, %v1833_v34  ;;  %v1834_v42 = vadd.f32 %v1764_v10, %v1587_v25  ;;  %2195 = vmatprep.mubr.bf16.mxu1 %v1956_v23  ;;  %v1928_v7 = vmax.f32 %v1896_v55, 0.0  ;;  %v1871_v55 = vld [vmem:[#allocation10 + $0x60] sm:$0xff] }
 0x2e1   : > { %v1768_v40 = vpop.f32.mrf.mxu0  ;;  %2196 = vmatmul.mubr.bf16.vlgmr.msra.gmra.mxu1 %v1955_v22 }
 0x2e2   : > { %v1929_v37 = vmax.f32 %v1897_v62, 0.0  ;;  %v1898_v31 = vadd.f32 %v1866_v11, %v1834_v42  ;;  %v1835_v48 = vadd.f32 %v1768_v40, %v1591_v21  ;;  %v1605_v11 = vadd.f32 %v3979_v63, %v3939_v38  ;;  %v4023_v21 = vpop.f32.mrf.mxu1  ;;  %v1872_v40 = vld [vmem:[#allocation10 + $0x68] sm:$0xff]  ;;  %v1874_v38 = vld [vmem:[#allocation10 + $0x78] sm:$0xff] }
 0x2e3   : > { %v1770_v26 = vpop.f32.mrf.mxu0 }
 0x2e4   : > { %v1930_v5 = vmax.f32 %v1898_v31, 0.0  ;;  %v1836_v49 = vadd.f32 %v1770_v26, %v1593_v43  ;;  %v1957_v6 = vpack.c.bf16 %v1929_v37, %v1927_v16  ;;  %v1899_v9 = vadd.f32 %v1867_v61, %v1835_v48 }
 0x2e5   : > { %v1772_v36 = vpop.f32.mrf.mxu0  ;;  %v1611_v61 = vadd.f32 %v3989_v35, %v3945_v32 }
 0x2e6   : > { %v1837_v22 = vadd.f32 %v1772_v36, %v1595_v33  ;;  %v1958_v28 = vpack.c.bf16 %v1930_v5, %v1928_v7  ;;  %v1900_v45 = vadd.f32 %v1868_v50, %v1836_v49  ;;  %v1931_v54 = vmax.f32 %v1899_v9, 0.0  ;;  %v4027_v33 = vpop.f32.mrf.mxu1  ;;  %v1875_v9 = vld [vmem:[#allocation10 + $0x80] sm:$0xff] }
 0x2e7   : > { %v1774_v53 = vpop.f32.mrf.mxu0  ;;  %v1613_v49 = vadd.f32 %v3993_v12, %v3947_v44  ;;  %v1617_v12 = vadd.f32 %v3999_v3, %v3953_v58 }
 0x2e8   : > { %v1901_v57 = vadd.f32 %v1869_v20, %v1837_v22  ;;  %v1838_v25 = vadd.f32 %v1774_v53, %v1597_v56  ;;  %2205 = vmatprep.mubr.bf16.mxu1 %v1958_v28  ;;  %v1932_v46 = vmax.f32 %v1900_v45, 0.0  ;;  %v1615_v20 = vadd.f32 %v3995_v52, %v3951_v24  ;;  %v1632_v56 = vpop.f32.mrf.mxu1  ;;  %v1877_v45 = vld [vmem:[#allocation10 + $0x90] sm:$0xff] }
 0x2e9   : > { %v1778_v34 = vpop.f32.mrf.mxu0  ;;  %2206 = vmatmul.mubr.bf16.gmra.mxu1 %v1957_v6  ;;  %v1621_v52 = vadd.f32 %v4003_v30, %v3957_v19 }
 0x2ea   : > { %v1933_v41 = vmax.f32 %v1901_v57, 0.0  ;;  %v1902_v23 = vadd.f32 %v1870_v60, %v1838_v25  ;;  %v1839_v10 = vadd.f32 %v1778_v34, %v1601_v0  ;;  %v1876_v60 = vld [vmem:[#allocation10 + $0x88] sm:$0xff] }
 0x2eb   : > { %v1780_v4 = vpop.f32.mrf.mxu0 }
 0x2ec   : > { %v1934_v62 = vmax.f32 %v1902_v23, 0.0  ;;  %v1840_v42 = vadd.f32 %v1780_v4, %v1603_v27  ;;  %v1959_v43 = vpack.c.bf16 %v1933_v41, %v1931_v54  ;;  %v1903_v37 = vadd.f32 %v1871_v55, %v1839_v10  ;;  %v1634_v27 = vpop.f32.mrf.mxu1  ;;  %v1878_v54 = vld [vmem:[#allocation10 + $0x98] sm:$0xff] }
 0x2ed   : > { %v1782_v16 = vpop.f32.mrf.mxu0  ;;  %v1623_v10 = vadd.f32 %v4011_v59, %v3959_v47  ;;  %v1627_v47 = vadd.f32 %v4023_v21, %v3965_v14 }
 0x2ee   : > { %v1841_v31 = vadd.f32 %v1782_v16, %v1605_v11  ;;  %v1960_v48 = vpack.c.bf16 %v1934_v62, %v1932_v46  ;;  %v1904_v26 = vadd.f32 %v1872_v40, %v1840_v42  ;;  %v1935_v13 = vmax.f32 %v1903_v37, 0.0  ;;  %v1636_v62 = vpop.f32.mrf.mxu1  ;;  %v1879_v42 = vld [vmem:[#allocation10 + $0xa0] sm:$0xff]  ;;  %v1881_v37 = vld [vmem:[#allocation10 + $0xb0] sm:$0xff] }
 0x2ef   : > { %v1784_v63 = vpop.f32.mrf.mxu0  ;;  %v1625_v46 = vadd.f32 %v4015_v8, %v3963_v15  ;;  %v1631_v15 = vadd.f32 %v4027_v33, %v3969_v18 }
 0x2f0   : > { %v1905_v7 = vadd.f32 %v1873_v51, %v1841_v31  ;;  %v1842_v5 = vadd.f32 %v1784_v63, %v1607_v39  ;;  %2215 = vmatprep.mubr.bf16.mxu1 %v1960_v48  ;;  %v1936_v35 = vmax.f32 %v1904_v26, 0.0  ;;  %v1880_v51 = vld [vmem:[#allocation10 + $0xa8] sm:$0xff]  ;;  %v1640_v63 = vpop.f32.mrf.mxu1 }
 0x2f1   : > { %v1788_v6 = vpop.f32.mrf.mxu0  ;;  %2216 = vmatmul.mubr.bf16.gmra.mxu1 %v1959_v43 }
 0x2f2   : > { %v1937_v29 = vmax.f32 %v1905_v7, 0.0  ;;  %v1906_v50 = vadd.f32 %v1874_v38, %v1842_v5  ;;  %v1843_v36 = vadd.f32 %v1788_v6, %v1611_v61  ;;  %v1882_v61 = vld [vmem:[#allocation10 + $0xb8] sm:$0xff]  ;;  %v1633_v5 = vadd.f32 %v1632_v56, %v3971_v17 }
 0x2f3   : > { %v1790_v22 = vpop.f32.mrf.mxu0  ;;  %v1637_v17 = vadd.f32 %v1636_v62, %v3977_v1 }
 0x2f4   : > { %v1938_v32 = vmax.f32 %v1906_v50, 0.0  ;;  %v1844_v28 = vadd.f32 %v1790_v22, %v1613_v49  ;;  %v1961_v53 = vpack.c.bf16 %v1937_v29, %v1935_v13  ;;  %v1907_v44 = vadd.f32 %v1875_v9, %v1843_v36  ;;  %v1642_v50 = vpop.f32.mrf.mxu1  ;;  %v1883_v36 = vld [vmem:[#allocation10 + $0xc0] sm:$0xff] }
 0x2f5   : > { %v1792_v0 = vpop.f32.mrf.mxu0  ;;  %v1635_v29 = vadd.f32 %v1634_v27, %v3975_v2 }
 0x2f6   : > { %v1845_v57 = vadd.f32 %v1792_v0, %v1615_v20  ;;  %v1962_v25 = vpack.c.bf16 %v1938_v32, %v1936_v35  ;;  %v1908_v24 = vadd.f32 %v1876_v60, %v1844_v28  ;;  %v1939_v55 = vmax.f32 %v1907_v44, 0.0  ;;  %v1884_v35 = vld [vmem:[#allocation10 + $0xc8] sm:$0xff]  ;;  %v1885_v28 = vld [vmem:[#allocation10 + $0xd0] sm:$0xff]  ;;  %v1644_v0 = vpop.f32.mrf.mxu1  ;;  %v4376_v44 = vld [vmem:[#allocation51_spill] sm:$0xff] }
 0x2f7   : > { %v1794_v34 = vpop.f32.mrf.mxu0  ;;  %v1641_v2 = vadd.f32 %v1640_v63, %v4376_v44 }
 0x2f8   : > { %v1909_v41 = vadd.f32 %v1877_v45, %v1845_v57  ;;  %v1846_v23 = vadd.f32 %v1794_v34, %v1617_v12  ;;  %2225 = vmatprep.mubr.bf16.mxu1 %v1962_v25  ;;  %v1940_v19 = vmax.f32 %v1908_v24, 0.0  ;;  %v1886_v12 = vld [vmem:[#allocation10 + $0xd8] sm:$0xff]  ;;  %v4377_v34 = vld [vmem:[#allocation52_spill] sm:$0xff] }
 0x2f9   : > { %v1798_v11 = vpop.f32.mrf.mxu0  ;;  %2226 = vmatmul.mubr.bf16.gmra.mxu1 %v1961_v53 }
 0x2fa   : > { %v1941_v58 = vmax.f32 %v1909_v41, 0.0  ;;  %v1910_v3 = vadd.f32 %v1878_v54, %v1846_v23  ;;  %v1847_v4 = vadd.f32 %v1798_v11, %v1621_v52  ;;  %v1643_v54 = vadd.f32 %v1642_v50, %v4377_v34  ;;  %v2281_v34 = vld [vmem:[#allocation11 + $0x28] sm:$0xff] }
 0x2fb   : > { %v1800_v43 = vpop.f32.mrf.mxu0 }
 0x2fc   : > { %v1963_v30 = vpack.c.bf16 %v1941_v58, %v1939_v55  ;;  %v1942_v40 = vmax.f32 %v1910_v3, 0.0  ;;  %v1848_v16 = vadd.f32 %v1800_v43, %v1623_v10  ;;  %v1911_v59 = vadd.f32 %v1879_v42, %v1847_v4  ;;  %v4378_v10 = vld [vmem:[#allocation53_spill] sm:$0xff]  ;;  %v1646_v55 = vpop.f32.mrf.mxu1  ;;  %v1887_v58 = vld [vmem:[#allocation10 + $0xe0] sm:$0xff]  ;;  %v1888_v43 = vld [vmem:[#allocation10 + $0xe8] sm:$0xff] }
 0x2fd   : > { %v1802_v39 = vpop.f32.mrf.mxu0  ;;  %v1645_v11 = vadd.f32 %v1644_v0, %v4378_v10 }
 0x2fe   : > { %v1849_v31 = vadd.f32 %v1802_v39, %v1625_v46  ;;  %v1964_v48 = vpack.c.bf16 %v1942_v40, %v1940_v19  ;;  %v1912_v8 = vadd.f32 %v1880_v51, %v1848_v16  ;;  %v1943_v6 = vmax.f32 %v1911_v59, 0.0  ;;  %v4379_v40 = vld [vmem:[#allocation54_spill] sm:$0xff] }
 0x2ff   : > { %v1804_v38 = vpop.f32.mrf.mxu0  ;;  %v1647_v16 = vadd.f32 %v1646_v55, %v4379_v40  ;;  %v1890_v59 = vld [vmem:[#allocation10 + $0xf8] sm:$0xff] }
 0x300   : > { %v1913_v26 = vadd.f32 %v1881_v37, %v1849_v31  ;;  %v1850_v7 = vadd.f32 %v1804_v38, %v1627_v47  ;;  %2235 = vmatprep.mubr.bf16.mxu1 %v1964_v48  ;;  %v1944_v9 = vmax.f32 %v1912_v8, 0.0  ;;  %v4386_v55 = vld [vmem:[#allocation22_spill] sm:$0xff] }
 0x301   : > { %v1808_v49 = vpop.f32.mrf.mxu0  ;;  %2236 = vmatmul.mubr.bf16.gmra.mxu1 %v1963_v30  ;;  %v1889_v30 = vld [vmem:[#allocation10 + $0xf0] sm:$0xff] }
 0x302   : > { %v1945_v13 = vmax.f32 %v1913_v26, 0.0  ;;  %v1914_v14 = vadd.f32 %v1882_v61, %v1850_v7  ;;  %v1851_v21 = vadd.f32 %v1808_v49, %v1631_v15 }
 0x303   : > { %v1810_v20 = vpop.f32.mrf.mxu0 }
 0x304   : > { %v1965_v22 = vpack.c.bf16 %v1945_v13, %v1943_v6  ;;  %v1946_v18 = vmax.f32 %v1914_v14, 0.0  ;;  %v1852_v33 = vadd.f32 %v1810_v20, %v1633_v5  ;;  %v1915_v56 = vadd.f32 %v1883_v36, %v1851_v21  ;;  %v2276_v6 = vld [vmem:[#allocation11] sm:$0xff]  ;;  %v4380_v13 = vld [vmem:[#allocation21_spill] sm:$0xff]  ;;  %v4381_v36 = vld [vmem:[#allocation24_spill] sm:$0xff] }
 0x305   : > { %v1812_v32 = vpop.f32.mrf.mxu0 }
 0x306   : > { %v1853_v53 = vadd.f32 %v1812_v32, %v1635_v29  ;;  %v1966_v60 = vpack.c.bf16 %v1946_v18, %v1944_v9  ;;  %v1916_v57 = vadd.f32 %v1884_v35, %v1852_v33  ;;  %v1947_v24 = vmax.f32 %v1915_v56, 0.0  ;;  %v2277_v29 = vld [vmem:[#allocation11 + $0x8] sm:$0xff]  ;;  %v4382_v35 = vld [vmem:[#allocation27_spill] sm:$0xff] }
 0x307   : > { %v1814_v45 = vpop.f32.mrf.mxu0 }
 0x308   : > { %v1917_v25 = vadd.f32 %v1885_v28, %v1853_v53  ;;  %v1854_v27 = vadd.f32 %v1814_v45, %v1637_v17  ;;  %2245 = vmatprep.mubr.bf16.mxu1 %v1966_v60  ;;  %v1948_v4 = vmax.f32 %v1916_v57, 0.0  ;;  %v2279_v53 = vld [vmem:[#allocation11 + $0x18] sm:$0xff]  ;;  %v4383_v60 = vld [vmem:[#allocation25_spill] sm:$0xff] }
 0x309   : > { %v1818_v52 = vpop.f32.mrf.mxu0  ;;  %2246 = vmatmul.mubr.bf16.gmra.mxu1 %v1965_v22  ;;  %v2278_v22 = vld [vmem:[#allocation11 + $0x10] sm:$0xff] }
 0x30a   : > { %v1949_v41 = vmax.f32 %v1917_v25, 0.0  ;;  %v1918_v23 = vadd.f32 %v1886_v12, %v1854_v27  ;;  %v1855_v1 = vadd.f32 %v1818_v52, %v1641_v2  ;;  %v2280_v12 = vld [vmem:[#allocation11 + $0x20] sm:$0xff]  ;;  %v4384_v2 = vld [vmem:[#allocation28_spill] sm:$0xff]  ;;  %v4385_v52 = vld [vmem:[#allocation26_spill] sm:$0xff] }
 0x30b   : > { %v1820_v3 = vpop.f32.mrf.mxu0 }
 0x30c   : > { %v1967_v46 = vpack.c.bf16 %v1949_v41, %v1947_v24  ;;  %v1950_v62 = vmax.f32 %v1918_v23, 0.0  ;;  %v1856_v42 = vadd.f32 %v1820_v3, %v1643_v54  ;;  %v1919_v51 = vadd.f32 %v1887_v58, %v1855_v1  ;;  %v2282_v1 = vld [vmem:[#allocation11 + $0x30] sm:$0xff] }
 0x30d   : > { %v1822_v19 = vpop.f32.mrf.mxu0 }
 0x30e   : > { %v1857_v39 = vadd.f32 %v1822_v19, %v1645_v11  ;;  %v1968_v37 = vpack.c.bf16 %v1950_v62, %v1948_v4  ;;  %v1920_v31 = vadd.f32 %v1888_v43, %v1856_v42  ;;  %v1951_v38 = vmax.f32 %v1919_v51, 0.0  ;;  %v2283_v62 = vld [vmem:[#allocation11 + $0x38] sm:$0xff]  ;;  %v4387_v42 = vld [vmem:[#allocation19_spill] sm:$0xff] }
 0x30f   : > { %v1824_v47 = vpop.f32.mrf.mxu0 }
 0x310   : > { %v1921_v48 = vadd.f32 %v1889_v30, %v1857_v39  ;;  %v1858_v63 = vadd.f32 %v1824_v47, %v1647_v16  ;;  %2255 = vmatprep.mubr.bf16.mxu1 %v1968_v37  ;;  %v1952_v8 = vmax.f32 %v1920_v31, 0.0  ;;  %v2284_v30 = vld [vmem:[#allocation11 + $0x40] sm:$0xff]  ;;  %v2285_v47 = vld [vmem:[#allocation11 + $0x48] sm:$0xff] }
 0x311   : > { %2256 = vmatmul.mubr.bf16.gmra.mxu1 %v1967_v46  ;;  %v4388_v16 = vld [vmem:[#allocation23_spill] sm:$0xff]  ;;  %v4389_v31 = vld [vmem:[#allocation20_spill] sm:$0xff] }
 0x312   : > { %v1953_v61 = vmax.f32 %v1921_v48, 0.0  ;;  %v1922_v15 = vadd.f32 %v1890_v59, %v1858_v63 }
 0x314   : > { %v1969_v26 = vpack.c.bf16 %v1953_v61, %v1951_v38  ;;  %v1954_v7 = vmax.f32 %v1922_v15, 0.0 }
 0x316   : > { %v1970_v5 = vpack.c.bf16 %v1954_v7, %v1952_v8 }
 0x318   : > { %2265 = vmatprep.mubr.bf16.mxu1 %v1970_v5  ;;  %v2286_v5 = vld [vmem:[#allocation11 + $0x50] sm:$0xff] }
 0x319   : > { %2266 = vmatmul.mubr.bf16.gmra.mxu1 %v1969_v26 }
 0x3a1   : > { %v2197_v49 = vpop.f32.mrf.mxu1 }
 0x3a2   : > { %v2198_v14 = vadd.f32 %v2197_v49, %v4380_v13 }
 0x3a3   : > { %v2199_v21 = vpop.f32.mrf.mxu1 }
 0x3a4   : > { %v2308_v50 = vadd.f32 %v2276_v6, %v2198_v14  ;;  %v2200_v20 = vadd.f32 %v2199_v21, %v4381_v36  ;;  %v4390_v6 = vld [vmem:[#allocation29_spill] sm:$0xff] }
 0x3a5   : > { %v2201_v9 = vpop.f32.mrf.mxu1 }
 0x3a6   : > { %v2372_v18 = vmul.f32 0.70710677, %v2308_v50  ;;  %v2309_v33 = vadd.f32 %v2277_v29, %v2200_v20  ;;  %v2202_v32 = vadd.f32 %v2201_v9, %v4382_v35  ;;  %v2340_v15 = vmul.f32 0.5, %v2308_v50  ;;  %v2287_v20 = vld [vmem:[#allocation11 + $0x58] sm:$0xff] }
 0x3a7   : > { %v2203_v28 = vpop.f32.mrf.mxu1 }
 0x3a8   : > { %3012 = verf.f32 %v2372_v18  ;;  %v2373_v17 = vmul.f32 0.70710677, %v2309_v33  ;;  %v4057_v56 = vadd.f32 %v2278_v22, %v2202_v32  ;;  %v2204_v0 = vadd.f32 %v2203_v28, %v4383_v60  ;;  %v4391_v18 = vld [vmem:[#allocation30_spill] sm:$0xff]  ;;  %v2288_v28 = vld [vmem:[#allocation11 + $0x60] sm:$0xff] }
 0x3a9   : > { %v2207_v45 = vpop.f32.mrf.mxu1  ;;  %v2341_v29 = vmul.f32 0.5, %v2309_v33  ;;  %v4392_v60 = vld [vmem:[#allocation31_spill] sm:$0xff] }
 0x3aa   : > { %3014 = verf.f32 %v2373_v17  ;;  %v2374_v44 = vmul.f32 0.70710677, %v4057_v56  ;;  %v2208_v57 = vadd.f32 %v2207_v45, %v4384_v2  ;;  %v4062_v25 = vadd.f32 %v2279_v53, %v2204_v0  ;;  %v2289_v2 = vld [vmem:[#allocation11 + $0x68] sm:$0xff] }
 0x3ab   : > { %v2209_v27 = vpop.f32.mrf.mxu1  ;;  %v2342_v33 = vmul.f32 0.5, %v4057_v56 }
 0x3ac   : > { %3016 = verf.f32 %v2374_v44  ;;  %v4064_v54 = vadd.f32 %v2280_v12, %v2208_v57  ;;  %v2210_v24 = vadd.f32 %v2209_v27, %v4385_v52  ;;  %v2375_v41 = vmul.f32 0.70710677, %v4062_v25  ;;  %v4393_v52 = vld [vmem:[#allocation32_spill] sm:$0xff] }
 0x3ad   : > { %v2211_v23 = vpop.f32.mrf.mxu1  ;;  %v2343_v56 = vmul.f32 0.5, %v4062_v25  ;;  %v4394_v25 = vld [vmem:[#allocation33_spill] sm:$0xff] }
 0x3ae   : > { %v2376_v10 = vmul.f32 0.70710677, %v4064_v54  ;;  %v4069_v11 = vadd.f32 %v2281_v34, %v2210_v24  ;;  %v2212_v58 = vadd.f32 %v2211_v23, %v4386_v55  ;;  %3018 = verf.f32 %v2375_v41 }
 0x3af   : > { %v2213_v3 = vpop.f32.mrf.mxu1  ;;  %v2344_v55 = vmul.f32 0.5, %v4064_v54  ;;  %v2291_v54 = vld [vmem:[#allocation11 + $0x78] sm:$0xff] }
 0x3b0   : > { %3020 = verf.f32 %v2376_v10  ;;  %v2377_v4 = vmul.f32 0.70710677, %v4069_v11  ;;  %v4073_v46 = vadd.f32 %v2282_v1, %v2212_v58  ;;  %v2214_v43 = vadd.f32 %v2213_v3, %v4387_v42 }
 0x3b1   : > { %v2217_v19 = vpop.f32.mrf.mxu1 }
 0x3b2   : > { %3022 = verf.f32 %v2377_v4  ;;  %v2378_v40 = vmul.f32 0.70710677, %v4073_v46  ;;  %v2218_v51 = vadd.f32 %v2217_v19, %v4388_v16  ;;  %v4078_v39 = vadd.f32 %v2283_v62, %v2214_v43  ;;  %v2290_v62 = vld [vmem:[#allocation11 + $0x70] sm:$0xff] }
 0x3b3   : > { %v2219_v37 = vpop.f32.mrf.mxu1  ;;  %v2345_v16 = vmul.f32 0.5, %v4069_v11  ;;  %v4396_v11 = vld [vmem:[#allocation35_spill] sm:$0xff] }
 0x3b4   : > { %3024 = verf.f32 %v2378_v40  ;;  %v4081_v59 = vadd.f32 %v2284_v30, %v2218_v51  ;;  %v2220_v48 = vadd.f32 %v2219_v37, %v4389_v31  ;;  %v2379_v38 = vmul.f32 0.70710677, %v4078_v39 }
 0x3b5   : > { %v3013_v63 = vpop.eup %3012  ;;  %v2221_v61 = vpop.f32.mrf.mxu1 }
 0x3b6   : > { %v2436_v8 = vadd.f32 1.0, %v3013_v63  ;;  %v2380_v26 = vmul.f32 0.70710677, %v4081_v59  ;;  %v4086_v7 = vadd.f32 %v2285_v47, %v2220_v48  ;;  %3026 = verf.f32 %v2379_v38  ;;  %v4395_v48 = vld [vmem:[#allocation34_spill] sm:$0xff] }
 0x3b7   : > { %v3015_v49 = vpop.eup %3014  ;;  %v2222_v13 = vadd.f32 %v2221_v61, %v4390_v6  ;;  %v2223_v14 = vpop.f32.mrf.mxu1  ;;  %v2292_v61 = vld [vmem:[#allocation11 + $0x80] sm:$0xff] }
 0x3b8   : > { %v2468_v21 = vmul.f32 %v2436_v8, %v2340_v15  ;;  %v2437_v36 = vadd.f32 1.0, %v3015_v49  ;;  %3028 = verf.f32 %v2380_v26  ;;  %v2381_v22 = vmul.f32 0.70710677, %v4086_v7 }
 0x3b9   : > { %v3017_v9 = vpop.eup %3016  ;;  %v4090_v50 = vadd.f32 %v2286_v5, %v2222_v13  ;;  %v2224_v35 = vadd.f32 %v2223_v14, %v4391_v18  ;;  %v2227_v32 = vpop.f32.mrf.mxu1  ;;  %v2346_v8 = vmul.f32 0.5, %v4073_v46  ;;  %v2293_v14 = vld [vmem:[#allocation11 + $0x88] sm:$0xff]  ;;  %v2347_v46 = vmul.f32 0.5, %v4078_v39 }
 0x3ba   : > { %2500 = vst [vmem:[%s4093_s14] sm:$0xff] %v2468_v21  ;;  %v2469_v17 = vmul.f32 %v2437_v36, %v2341_v29  ;;  %v2438_v53 = vadd.f32 1.0, %v3017_v9  ;;  %v2228_v0 = vadd.f32 %v2227_v32, %v4392_v60  ;;  %3030 = verf.f32 %v2381_v22  ;;  %v2294_v60 = vld [vmem:[#allocation11 + $0x90] sm:$0xff] }
 0x3bb   : > { %v2382_v45 = vmul.f32 0.70710677, %v4090_v50  ;;  %v4099_v12 = vadd.f32 %v2287_v20, %v2224_v35  ;;  %v2229_v44 = vpop.f32.mrf.mxu1  ;;  %v3019_v57 = vpop.eup %3018  ;;  %v4397_v20 = vld [vmem:[#allocation36_spill] sm:$0xff] }
 0x3bc   : > { %2501 = vst [vmem:[%s4093_s14 + $0x8] sm:$0xff] %v2469_v17  ;;  %v2470_v27 = vmul.f32 %v2438_v53, %v2342_v33  ;;  %v4102_v34 = vadd.f32 %v2288_v28, %v2228_v0  ;;  %v2230_v24 = vadd.f32 %v2229_v44, %v4393_v52  ;;  %v2439_v23 = vadd.f32 1.0, %v3019_v57 }
 0x3bd   : > { %v3021_v41 = vpop.eup %3020  ;;  %3032 = verf.f32 %v2382_v45  ;;  %v2383_v1 = vmul.f32 0.70710677, %v4099_v12  ;;  %v2231_v10 = vpop.f32.mrf.mxu1  ;;  %v2348_v28 = vmul.f32 0.5, %v4081_v59  ;;  %v4398_v45 = vld [vmem:[#allocation37_spill] sm:$0xff]  ;;  %v2349_v59 = vmul.f32 0.5, %v4086_v7 }
 0x3be   : > { %2502 = vst [vmem:[%s4093_s14 + $0x10] sm:$0xff] %v2470_v27  ;;  %v2440_v58 = vadd.f32 1.0, %v3021_v41  ;;  %v2384_v3 = vmul.f32 0.70710677, %v4102_v34  ;;  %v4110_v4 = vadd.f32 %v2289_v2, %v2230_v24  ;;  %v2471_v43 = vmul.f32 %v2439_v23, %v2343_v56  ;;  %v4399_v41 = vld [vmem:[#allocation38_spill] sm:$0xff] }
 0x3bf   : > { %v3023_v42 = vpop.eup %3022  ;;  %3034 = verf.f32 %v2383_v1  ;;  %v2232_v19 = vadd.f32 %v2231_v10, %v4394_v25  ;;  %v2233_v30 = vpop.f32.mrf.mxu1  ;;  %v2295_v23 = vld [vmem:[#allocation11 + $0x98] sm:$0xff]  ;;  %v2296_v10 = vld [vmem:[#allocation11 + $0xa0] sm:$0xff] }
 0x3c0   : > { %v2472_v40 = vmul.f32 %v2440_v58, %v2344_v55  ;;  %v2441_v51 = vadd.f32 1.0, %v3023_v42  ;;  %3036 = verf.f32 %v2384_v3  ;;  %2503 = vst [vmem:[%s4093_s14 + $0x18] sm:$0xff] %v2471_v43  ;;  %v2385_v47 = vmul.f32 0.70710677, %v4110_v4  ;;  %v4400_v58 = vld [vmem:[#allocation39_spill] sm:$0xff] }
 0x3c1   : > { %v3025_v37 = vpop.eup %3024  ;;  %v4116_v31 = vadd.f32 %v2290_v62, %v2232_v19  ;;  %v2234_v63 = vadd.f32 %v2233_v30, %v4395_v48  ;;  %v2237_v38 = vpop.f32.mrf.mxu1  ;;  %v2350_v42 = vmul.f32 0.5, %v4090_v50  ;;  %v2351_v48 = vmul.f32 0.5, %v4099_v12 }
 0x3c2   : > { %2504 = vst [vmem:[%s4093_s14 + $0x20] sm:$0xff] %v2472_v40  ;;  %v2473_v15 = vmul.f32 %v2441_v51, %v2345_v16  ;;  %v2442_v26 = vadd.f32 1.0, %v3025_v37  ;;  %v2238_v5 = vadd.f32 %v2237_v38, %v4396_v11  ;;  %3038 = verf.f32 %v2385_v47  ;;  %v4401_v16 = vld [vmem:[#allocation40_spill] sm:$0xff] }
 0x3c3   : > { %v2386_v49 = vmul.f32 0.70710677, %v4116_v31  ;;  %v4123_v6 = vadd.f32 %v2291_v54, %v2234_v63  ;;  %v2239_v13 = vpop.f32.mrf.mxu1  ;;  %v3027_v21 = vpop.eup %3026  ;;  %v2297_v54 = vld [vmem:[#allocation11 + $0xa8] sm:$0xff]  ;;  %v2352_v38 = vmul.f32 0.5, %v4102_v34 }
 0x3c4   : > { %2505 = vst [vmem:[%s4093_s14 + $0x28] sm:$0xff] %v2473_v15  ;;  %v2474_v29 = vmul.f32 %v2442_v26, %v2346_v8  ;;  %v4126_v36 = vadd.f32 %v2292_v61, %v2238_v5  ;;  %v2240_v9 = vadd.f32 %v2239_v13, %v4397_v20  ;;  %v2443_v18 = vadd.f32 1.0, %v3027_v21  ;;  %v4402_v5 = vld [vmem:[#allocation41_spill] sm:$0xff]  ;;  %v4403_v20 = vld [vmem:[#allocation42_spill] sm:$0xff] }
 0x3c5   : > { %v3029_v22 = vpop.eup %3028  ;;  %3040 = verf.f32 %v2386_v49  ;;  %v2387_v35 = vmul.f32 0.70710677, %v4123_v6  ;;  %v2241_v32 = vpop.f32.mrf.mxu1  ;;  %v2298_v13 = vld [vmem:[#allocation11 + $0xb0] sm:$0xff] }
 0x3c6   : > { %2506 = vst [vmem:[%s4093_s14 + $0x30] sm:$0xff] %v2474_v29  ;;  %v2444_v17 = vadd.f32 1.0, %v3029_v22  ;;  %v2388_v33 = vmul.f32 0.70710677, %v4126_v36  ;;  %v4134_v53 = vadd.f32 %v2293_v14, %v2240_v9  ;;  %v2475_v0 = vmul.f32 %v2443_v18, %v2347_v46  ;;  %v2299_v14 = vld [vmem:[#allocation11 + $0xb8] sm:$0xff] }
 0x3c7   : > { %3042 = verf.f32 %v2387_v35  ;;  %v2242_v39 = vadd.f32 %v2241_v32, %v4398_v45  ;;  %v2243_v44 = vpop.f32.mrf.mxu1  ;;  %v3031_v2 = vpop.eup %3030  ;;  %v2353_v9 = vmul.f32 0.5, %v4110_v4  ;;  %v2354_v45 = vmul.f32 0.5, %v4116_v31  ;;  %v2301_v31 = vld [vmem:[#allocation11 + $0xc8] sm:$0xff] }
 0x3c8   : > { %v2476_v57 = vmul.f32 %v2444_v17, %v2348_v28  ;;  %3044 = verf.f32 %v2388_v33  ;;  %v2389_v27 = vmul.f32 0.70710677, %v4134_v53  ;;  %2507 = vst [vmem:[%s4093_s14 + $0x38] sm:$0xff] %v2475_v0  ;;  %v2445_v52 = vadd.f32 1.0, %v3031_v2  ;;  %v4404_v17 = vld [vmem:[#allocation43_spill] sm:$0xff] }
 0x3c9   : > { %v4140_v24 = vadd.f32 %v2294_v60, %v2242_v39  ;;  %v2244_v56 = vadd.f32 %v2243_v44, %v4399_v41  ;;  %v2247_v1 = vpop.f32.mrf.mxu1  ;;  %v2300_v60 = vld [vmem:[#allocation11 + $0xc0] sm:$0xff]  ;;  %v2355_v2 = vmul.f32 0.5, %v4123_v6 }
 0x3ca   : > { %v3033_v55 = vpop.eup %3032  ;;  %2508 = vst [vmem:[%s4093_s14 + $0x40] sm:$0xff] %v2476_v57  ;;  %3046 = verf.f32 %v2389_v27  ;;  %v2248_v3 = vadd.f32 %v2247_v1, %v4400_v58  ;;  %v2477_v62 = vmul.f32 %v2445_v52, %v2349_v59  ;;  %v2356_v58 = vmul.f32 0.5, %v4126_v36 }
 0x3cb   : > { %v2446_v43 = vadd.f32 1.0, %v3033_v55  ;;  %v2390_v7 = vmul.f32 0.70710677, %v4140_v24  ;;  %v2249_v25 = vpop.f32.mrf.mxu1  ;;  %v4147_v30 = vadd.f32 %v2295_v23, %v2244_v56  ;;  %v4405_v23 = vld [vmem:[#allocation44_spill] sm:$0xff]  ;;  %v2302_v55 = vld [vmem:[#allocation11 + $0xd0] sm:$0xff] }
 0x3cc   : > { %v3035_v19 = vpop.eup %3034  ;;  %v4149_v40 = vadd.f32 %v2296_v10, %v2248_v3  ;;  %v2250_v51 = vadd.f32 %v2249_v25, %v4401_v16  ;;  %2509 = vst [vmem:[%s4093_s14 + $0x48] sm:$0xff] %v2477_v62  ;;  %v4406_v3 = vld [vmem:[#allocation45_spill] sm:$0xff] }
 0x3cd   : > { %v3037_v37 = vpop.eup %3036  ;;  %v2478_v47 = vmul.f32 %v2446_v43, %v2350_v42  ;;  %v2447_v63 = vadd.f32 1.0, %v3035_v19  ;;  %3048 = verf.f32 %v2390_v7  ;;  %v2251_v50 = vpop.f32.mrf.mxu1  ;;  %v2391_v15 = vmul.f32 0.70710677, %v4147_v30 }
 0x3ce   : > { %v2448_v61 = vadd.f32 1.0, %v3037_v37  ;;  %v2392_v26 = vmul.f32 0.70710677, %v4149_v40  ;;  %v4158_v11 = vadd.f32 %v2297_v54, %v2250_v51  ;;  %v2252_v49 = vadd.f32 %v2251_v50, %v4402_v5  ;;  %v2303_v37 = vld [vmem:[#allocation11 + $0xd8] sm:$0xff]  ;;  %v4408_v5 = vld [vmem:[#allocation47_spill] sm:$0xff] }
 0x3cf   : > { %2510 = vst [vmem:[%s4093_s14 + $0x50] sm:$0xff] %v2478_v47  ;;  %v2479_v8 = vmul.f32 %v2447_v63, %v2351_v48  ;;  %v2253_v12 = vpop.f32.mrf.mxu1  ;;  %v3039_v21 = vpop.eup %3038  ;;  %3050 = verf.f32 %v2391_v15  ;;  %v2357_v7 = vmul.f32 0.5, %v4134_v53  ;;  %v4407_v47 = vld [vmem:[#allocation46_spill] sm:$0xff] }
 0x3d0   : > { %v2480_v29 = vmul.f32 %v2448_v61, %v2352_v38  ;;  %v2254_v34 = vadd.f32 %v2253_v12, %v4403_v20  ;;  %v2449_v22 = vadd.f32 1.0, %v3039_v21  ;;  %3052 = verf.f32 %v2392_v26  ;;  %v4409_v21 = vld [vmem:[#allocation48_spill] sm:$0xff] }
 0x3d1   : > { %2511 = vst [vmem:[%s4093_s14 + $0x58] sm:$0xff] %v2479_v8  ;;  %v2393_v46 = vmul.f32 0.70710677, %v4158_v11  ;;  %v2257_v18 = vpop.f32.mrf.mxu1  ;;  %v4166_v32 = vadd.f32 %v2298_v13, %v2252_v49  ;;  %v2358_v38 = vmul.f32 0.5, %v4140_v24  ;;  %v2304_v13 = vld [vmem:[#allocation11 + $0xe0] sm:$0xff]  ;;  %v2359_v24 = vmul.f32 0.5, %v4147_v30 }
 0x3d2   : > { %v3041_v35 = vpop.eup %3040  ;;  %2512 = vst [vmem:[%s4093_s14 + $0x60] sm:$0xff] %v2480_v29  ;;  %v4168_v28 = vadd.f32 %v2299_v14, %v2254_v34  ;;  %v2258_v33 = vadd.f32 %v2257_v18, %v4404_v17  ;;  %v2481_v0 = vmul.f32 %v2449_v22, %v2353_v9  ;;  %v2305_v14 = vld [vmem:[#allocation11 + $0xe8] sm:$0xff] }
 0x3d3   : > { %v2450_v39 = vadd.f32 1.0, %v3041_v35  ;;  %3054 = verf.f32 %v2393_v46  ;;  %v2259_v4 = vpop.f32.mrf.mxu1  ;;  %v2394_v57 = vmul.f32 0.70710677, %v4166_v32 }
 0x3d4   : > { %v3043_v44 = vpop.eup %3042  ;;  %v2395_v27 = vmul.f32 0.70710677, %v4168_v28  ;;  %2513 = vst [vmem:[%s4093_s14 + $0x68] sm:$0xff] %v2481_v0  ;;  %v4176_v56 = vadd.f32 %v2300_v60, %v2258_v33  ;;  %v2260_v1 = vadd.f32 %v2259_v4, %v4405_v23  ;;  %v4410_v33 = vld [vmem:[#allocation49_spill] sm:$0xff]  ;;  %v2307_v23 = vld [vmem:[#allocation11 + $0xf8] sm:$0xff] }
 0x3d5   : > { %v3045_v59 = vpop.eup %3044  ;;  %v2482_v52 = vmul.f32 %v2450_v39, %v2354_v45  ;;  %v2451_v41 = vadd.f32 1.0, %v3043_v44  ;;  %v2261_v10 = vpop.f32.mrf.mxu1  ;;  %3056 = verf.f32 %v2394_v57  ;;  %v2306_v0 = vld [vmem:[#allocation11 + $0xf0] sm:$0xff]  ;;  %v2360_v45 = vmul.f32 0.5, %v4149_v40 }
 0x3d6   : > { %v2452_v6 = vadd.f32 1.0, %v3045_v59  ;;  %v2262_v62 = vadd.f32 %v2261_v10, %v4406_v3  ;;  %3058 = verf.f32 %v2395_v27  ;;  %v2396_v25 = vmul.f32 0.70710677, %v4176_v56 }
 0x3d7   : > { %v3047_v42 = vpop.eup %3046  ;;  %2514 = vst [vmem:[%s4093_s14 + $0x70] sm:$0xff] %v2482_v52  ;;  %v2483_v43 = vmul.f32 %v2451_v41, %v2355_v2  ;;  %v2263_v19 = vpop.f32.mrf.mxu1  ;;  %v4184_v54 = vadd.f32 %v2301_v31, %v2260_v1  ;;  %v2361_v2 = vmul.f32 0.5, %v4158_v11  ;;  %v4411_v1 = vld [vmem:[#allocation50_spill] sm:$0xff]  ;;  %v2362_v11 = vmul.f32 0.5, %v4166_v32 }
 0x3d8   : > { %v2484_v16 = vmul.f32 %v2452_v6, %v2356_v58  ;;  %v2453_v51 = vadd.f32 1.0, %v3047_v42  ;;  %v4186_v36 = vadd.f32 %v2302_v55, %v2262_v62  ;;  %3060 = verf.f32 %v2396_v25 }
 0x3d9   : > { %2515 = vst [vmem:[%s4093_s14 + $0x78] sm:$0xff] %v2483_v43  ;;  %v2264_v48 = vadd.f32 %v2263_v19, %v4407_v47  ;;  %v2267_v63 = vpop.f32.mrf.mxu1  ;;  %v2397_v61 = vmul.f32 0.70710677, %v4184_v54  ;;  %v2363_v62 = vmul.f32 0.5, %v4168_v28  ;;  %v2365_v28 = vmul.f32 0.5, %v4184_v54 }
 0x3da   : > { %v3049_v50 = vpop.eup %3048  ;;  %2516 = vst [vmem:[%s4093_s14 + $0x80] sm:$0xff] %v2484_v16  ;;  %v2485_v53 = vmul.f32 %v2453_v51, %v2357_v7  ;;  %v2398_v8 = vmul.f32 0.70710677, %v4186_v36  ;;  %v2268_v49 = vadd.f32 %v2267_v63, %v4408_v5  ;;  %v2364_v16 = vmul.f32 0.5, %v4176_v56 }
 0x3db   : > { %v2454_v15 = vadd.f32 1.0, %v3049_v50  ;;  %v4194_v26 = vadd.f32 %v2303_v37, %v2264_v48  ;;  %v2269_v12 = vpop.f32.mrf.mxu1  ;;  %3062 = verf.f32 %v2397_v61  ;;  %v2366_v63 = vmul.f32 0.5, %v4186_v36 }
 0x3dc   : > { %2517 = vst [vmem:[%s4093_s14 + $0x88] sm:$0xff] %v2485_v53  ;;  %v2270_v29 = vadd.f32 %v2269_v12, %v4409_v21  ;;  %v3051_v20 = vpop.eup %3050  ;;  %3064 = verf.f32 %v2398_v8  ;;  %v2336_v35 = vadd.f32 %v2304_v13, %v2268_v49 }
 0x3dd   : > { %v2486_v34 = vmul.f32 %v2454_v15, %v2358_v38  ;;  %v2399_v9 = vmul.f32 0.70710677, %v4194_v26  ;;  %v2271_v22 = vpop.f32.mrf.mxu1  ;;  %v3053_v46 = vpop.eup %3052  ;;  %v2455_v18 = vadd.f32 1.0, %v3051_v20  ;;  %v2367_v61 = vmul.f32 0.5, %v4194_v26 }
 0x3de   : > { %v2337_v17 = vadd.f32 %v2305_v14, %v2270_v29  ;;  %v2272_v60 = vadd.f32 %v2271_v22, %v4410_v33  ;;  %v2456_v39 = vadd.f32 1.0, %v3053_v46  ;;  %v2400_v57 = vmul.f32 0.70710677, %v2336_v35 }
 0x3df   : > { %2518 = vst [vmem:[%s4093_s14 + $0x90] sm:$0xff] %v2486_v34  ;;  %3066 = verf.f32 %v2399_v9  ;;  %v2273_v4 = vpop.f32.mrf.mxu1  ;;  %v2487_v44 = vmul.f32 %v2455_v18, %v2359_v24  ;;  %v2368_v49 = vmul.f32 0.5, %v2336_v35 }
 0x3e0   : > { %v3055_v30 = vpop.eup %3054  ;;  %v2488_v27 = vmul.f32 %v2456_v39, %v2360_v45  ;;  %v2401_v52 = vmul.f32 0.70710677, %v2337_v17  ;;  %v2338_v41 = vadd.f32 %v2306_v0, %v2272_v60  ;;  %3068 = verf.f32 %v2400_v57 }
 0x3e1   : > { %v2457_v59 = vadd.f32 1.0, %v3055_v30  ;;  %2519 = vst [vmem:[%s4093_s14 + $0x98] sm:$0xff] %v2487_v44  ;;  %v2274_v31 = vadd.f32 %v2273_v4, %v4411_v1  ;;  %v2369_v36 = vmul.f32 0.5, %v2337_v17 }
 0x3e2   : > { %v3057_v40 = vpop.eup %3056  ;;  %2520 = vst [vmem:[%s4093_s14 + $0xa0] sm:$0xff] %v2488_v27  ;;  %3070 = verf.f32 %v2401_v52  ;;  %v2402_v55 = vmul.f32 0.70710677, %v2338_v41  ;;  %v2370_v29 = vmul.f32 0.5, %v2338_v41 }
 0x3e3   : > { %v2489_v10 = vmul.f32 %v2457_v59, %v2361_v2  ;;  %v3059_v58 = vpop.eup %3058  ;;  %v2458_v6 = vadd.f32 1.0, %v3057_v40  ;;  %v2339_v3 = vadd.f32 %v2307_v23, %v2274_v31 }
 0x3e4   : > { %v2459_v42 = vadd.f32 1.0, %v3059_v58  ;;  %3072 = verf.f32 %v2402_v55 }
 0x3e5   : > { %2521 = vst [vmem:[%s4093_s14 + $0xa8] sm:$0xff] %v2489_v10  ;;  %v3061_v43 = vpop.eup %3060  ;;  %v2490_v7 = vmul.f32 %v2458_v6, %v2362_v11  ;;  %v2403_v25 = vmul.f32 0.70710677, %v2339_v3  ;;  %v2371_v9 = vmul.f32 0.5, %v2339_v3 }
 0x3e6   : > { %v2491_v19 = vmul.f32 %v2459_v42, %v2363_v62  ;;  %v2460_v51 = vadd.f32 1.0, %v3061_v43 }
 0x3e7   : > { %2522 = vst [vmem:[%s4093_s14 + $0xb0] sm:$0xff] %v2490_v7  ;;  %3074 = verf.f32 %v2403_v25 }
 0x3e8   : > { %v3063_v32 = vpop.eup %3062  ;;  %2523 = vst [vmem:[%s4093_s14 + $0xb8] sm:$0xff] %v2491_v19  ;;  %v2492_v37 = vmul.f32 %v2460_v51, %v2364_v16 }
 0x3e9   : > { %v3065_v47 = vpop.eup %3064  ;;  %v2461_v48 = vadd.f32 1.0, %v3063_v32 }
 0x3ea   : > { %2524 = vst [vmem:[%s4093_s14 + $0xc0] sm:$0xff] %v2492_v37  ;;  %v2462_v50 = vadd.f32 1.0, %v3065_v47 }
 0x3eb   : > { %v2493_v38 = vmul.f32 %v2461_v48, %v2365_v28 }
 0x3ec   : > { %v3067_v53 = vpop.eup %3066  ;;  %v2494_v56 = vmul.f32 %v2462_v50, %v2366_v63 }
 0x3ed   : > { %v2463_v15 = vadd.f32 1.0, %v3067_v53  ;;  %2525 = vst [vmem:[%s4093_s14 + $0xc8] sm:$0xff] %v2493_v38  ;;  %v3069_v8 = vpop.eup %3068 }
 0x3ee   : > { %2526 = vst [vmem:[%s4093_s14 + $0xd0] sm:$0xff] %v2494_v56  ;;  %v2464_v13 = vadd.f32 1.0, %v3069_v8 }
 0x3ef   : > { %v2495_v5 = vmul.f32 %v2463_v15, %v2367_v61  ;;  %v3071_v54 = vpop.eup %3070 }
 0x3f0   : > { %v2465_v12 = vadd.f32 1.0, %v3071_v54  ;;  %v2496_v21 = vmul.f32 %v2464_v13, %v2368_v49 }
 0x3f1   : > { %2527 = vst [vmem:[%s4093_s14 + $0xd8] sm:$0xff] %v2495_v5  ;;  %v3073_v14 = vpop.eup %3072 }
 0x3f2   : > { %v2497_v26 = vmul.f32 %v2465_v12, %v2369_v36  ;;  %v2466_v20 = vadd.f32 1.0, %v3073_v14  ;;  %2528 = vst [vmem:[%s4093_s14 + $0xe0] sm:$0xff] %v2496_v21 }
 0x3f4   : > { %v3075_v34 = vpop.eup %3074  ;;  %2529 = vst [vmem:[%s4093_s14 + $0xe8] sm:$0xff] %v2497_v26  ;;  %v2498_v24 = vmul.f32 %v2466_v20, %v2370_v29 }
 0x3f5   : > { %v2467_v22 = vadd.f32 1.0, %v3075_v34 }
 0x3f6   : > { %2530 = vst [vmem:[%s4093_s14 + $0xf0] sm:$0xff] %v2498_v24 }
 0x3f7   : > { %v2499_v46 = vmul.f32 %v2467_v22, %v2371_v9 }
 0x3f9   : > { %2531 = vst [vmem:[%s4093_s14 + $0xf8] sm:$0xff] %v2499_v46 }
 0x3fa   : > { %3247 = shalt.err (!%p3244_p3)
}
 0x3fb   : > { %s3248_s13 = scalar_lea.hbm %s4229_s26, 4096  ;;  %s3252_s28 = scalar_lea.hbm %s4281_s6, 8192 }
 0x3fc   : > { %p3249_p4 = scmp.ne.s32.totalorder %s4229_s26, %s3248_s13  ;;  %p3253_p2 = scmp.lt.s32.totalorder %s4229_s26, %s4281_s6 }
 0x3fd   : > { %p3254_p7 = scmp.lt.s32.totalorder %s3252_s28, %s3248_s13 }
 0x3fe   : > { %p3250_p12 = pnand %p3249_p4, %p4412_p11 }
 0x3ff   : > { %p3255_p8 = por %p3254_p7, %p3253_p2 }
 0x400   : > { %p3251_p6 = pneg %p3250_p12 }
 0x402   : > { %p3256_p10 = pnand %p3255_p8, %p3251_p6 }
 0x404   : > { %3259 = shalt.err (!%p3256_p10)
}
 0x405   : > { %s3328_s10 = smov 256   ;;  %s3329_s8 = smov 16  }
 0x406   : > { %2846 = dma.vmem_to_hbm [thread:$0]  (%p4412_p11), %s4231_s29, 4096, %s4229_s26, %s2533_s27, %s3328_s10, %s3328_s10, %s3329_s8  }
 0x407 PF: > { %s2562_s16 = sand.u32 1, %s3298_s21   ;;  %p4413_p13 = scmp.ne.s32.totalorder %s4303_s17, 0 }
 0x408   : > { %p4414_p0 = scmp.ge.s32.totalorder %s3310_s24, 2  ;;  %s2563_s9 = scalar_lea.sflag [#allocation4], %s2562_s16 }
 0x40a   : > { %p2869_p5 = pnand %p4414_p0, %p4413_p13 }
 0x40c   : > { %p2870_p9 = pneg %p2869_p5 }
 0x40e   : > { %3293 = dma.done.wait (%p2870_p9), %s2563_s9, 4096  }
 0x40f   : > { %3295 = vsyncadd (%p2870_p9), %s2563_s9, 4294963200  ;;  %p22_p1 = scmp.ge.s32.totalorder %s3460_s7, 4   ;;  %s4415_s21 = smov %s3302_s22 }
 0x410   : > { %s4416_s22 = smov %s3306_s23  ;;  %s4417_s23 = smov %s3472_s30 }
 0x411   : > { %s4418_s24 = smov %s3460_s7  ;;  %24 = sbr.rel (!%p22_p1) target bundleno = 8 (0x8), region = 111 }
 0x416   :  { %2568 = vsyncpa [#allocation3], 1 }
 0x417   :  { %2570 = vsyncpa [#allocation3 + $0x1], 1 }
 0x418   :  { %2571 = vsyncpa [#allocation6], 1 }
 0x419   :  { %2572 = vsyncpa [#allocation9], 1 }
 0x41a   :  { %2573 = vsyncpa [#allocation12], 1 }
 0x41b   :  { %2574 = vsyncpa [#allocation4], 1 }
 0x41c   :  { %2576 = vsyncpa [#allocation4 + $0x1], 1 }

// kernel: tpu_custom_call.1
= control target key start
LH: loop header
LB: loop body
LE: loop exit
PB: predicated region body
PF: predicated region fallthrough
CT: control target
= control target key end

     0   :  { %11 = vsyncpa [#allocation3], 0  ;;  %s4275_s0 = inlined_call_operand.hbm [shape: bf16[256,128], index: 0, kind: input, shape index: {}]   ;;  %s4276_s1 = inlined_call_operand.hbm [shape: bf16[3,128,128], index: 1, kind: input, shape index: {}]   ;;  %s4277_s2 = inlined_call_operand.hbm [shape: bf16[128,1024], index: 2, kind: input, shape index: {}]   ;;  %s4278_s3 = inlined_call_operand.hbm [shape: bf16[256,256], index: 3, kind: input, shape index: {}]   ;;  %s4279_s4 = inlined_call_operand.hbm [shape: f32[128,256], index: 4, kind: input, shape index: {}]   ;;  %s4280_s5 = inlined_call_operand.hbm [shape: f32[128,256], index: 5, kind: input, shape index: {}]   ;;  %s4281_s6 = inlined_call_operand.hbm [shape: f32[256,256], index: 6, kind: output, shape index: {}]  }
   0x1   :  { %13 = vsyncpa [#allocation3 + $0x1], 0 }
   0x2   :  { %14 = vsyncpa [#allocation6], 0 }
   0x3   :  { %15 = vsyncpa [#allocation9], 0 }
   0x4   :  { %16 = vsyncpa [#allocation12], 0 }
   0x5   :  { %17 = vsyncpa [#allocation4], 0 }
   0x6   :  { %19 = vsyncpa [#allocation4 + $0x1], 0  ;;  %s3365_s21 = smov 0   ;;  %s3367_s22 = smov 0  }
   0x7   :  { %s3369_s23 = smov 0   ;;  %s3371_s24 = smov 0  }
   0x8 LB: > { %s3312_s25 = smov [#allocation5]   ;;  %s3386_s27 = sadd.s32 4294967295, %s3310_s24   ;;  %s3310_s24 = sphi %s3371_s24, %s4418_s24   ;;  %s3306_s23 = sphi %s3369_s23, %s4417_s23   ;;  %s3302_s22 = sphi %s3367_s22, %s4416_s22   ;;  %s3298_s21 = sphi %s3365_s21, %s4415_s21  }
   0x9   : > { %s199_s26 = sshll.u32 %s3312_s25, 4  ;;  %p2669_p0 = scmp.ge.s32.totalorder %s3310_s24, 1  ;;  %s200_s26 = int_to_ptr.vmem [resolvable:$true] %s199_s26 }
   0xa   : > { %p4282_p1 = scmp.eq.s32.totalorder %s3386_s27, 0  ;;  %p187_p2 = scmp.lt.s32.totalorder %s3310_s24, 3 }
   0xb   : > { %s3313_s29 = smov [#allocation8]   ;;  %s3314_s8 = smov [#allocation7]  }
   0xc   : > { %p3391_p3 = pnand %p2669_p0, %p187_p2  ;;  %s225_s30 = sshll.u32 %s3313_s29, 4  ;;  %s3404_s30 = int_to_ptr.vmem [resolvable:$true] %s225_s30 }
   0xd   : > { %s3406_s9 = sshll.u32 %s3314_s8, 4  ;;  %s3087_s11 = scalar_lea.vmem %s200_s26, 3072  ;;  %s213_s9 = int_to_ptr.vmem [resolvable:$true] %s3406_s9 }
   0xe   : > { %s4298_s28 = scalar_select %p3391_p3, 1, 0 }
   0xf   : > { %p2848_p5 = pneg %p3391_p3  ;;  %p3088_p8 = scmp.ne.s32.totalorder %s200_s26, %s3087_s11 }
  0x10   : > { %p3095_p11 = scmp.lt.s32.totalorder %s200_s26, %s200_s26  ;;  %p3096_p12 = scmp.lt.s32.totalorder %s3087_s11, %s3087_s11 }
  0x11   : > { %p3400_p6 = pnand %p2848_p5, %p4282_p1 }
  0x12   : > { %p3097_p13 = por %p3096_p12, %p3095_p11 }
  0x13   : > { %p3410_p7 = pneg %p3400_p6 }
  0x15   : > { %p3090_p9 = pnand %p3088_p8, %p3410_p7 }
  0x17   : > { %p3091_p10 = pneg %p3090_p9 }
  0x19   : > { %p3098_p0 = pnand %p3097_p13, %p3091_p10 }
  0x1b   : > { %3101 = shalt.err (!%p3098_p0)
}
  0x1c   : > { %s4283_s12 = smov 64   ;;  %s4284_s13 = smov 4  }
  0x1d   : > { %2851 = dma.hbm_to_vmem [thread:$0]  (!%p3400_p6), %s4276_s1, 3072, %s200_s26, [#allocation6], %s4283_s12, %s4283_s12, %s4284_s13  }
  0x1e   : > { %s3113_s16 = scalar_lea.vmem %s3404_s30, 4096  ;;  %p3121_p9 = scmp.lt.s32.totalorder %s3404_s30, %s3404_s30 }
  0x1f   : > { %p3114_p2 = scmp.ne.s32.totalorder %s3404_s30, %s3113_s16  ;;  %p3122_p10 = scmp.lt.s32.totalorder %s3113_s16, %s3113_s16 }
  0x21   : > { %p3116_p5 = pnand %p3114_p2, %p3410_p7  ;;  %p3123_p11 = por %p3122_p10, %p3121_p9 }
  0x23   : > { %p3117_p8 = pneg %p3116_p5 }
  0x25   : > { %p3124_p12 = pnand %p3123_p11, %p3117_p8 }
  0x27   : > { %3127 = shalt.err (!%p3124_p12)
}
  0x28   : > { %s3317_s17 = smov 128   ;;  %s3318_s18 = smov 8  }
  0x29   : > { %2857 = dma.hbm_to_vmem [thread:$0]  (!%p3400_p6), %s4278_s3, 4096, %s3404_s30, [#allocation9], %s3317_s17, %s3317_s17, %s3318_s18  }
  0x2a   : > { %s3139_s25 = scalar_lea.vmem %s213_s9, 8192  ;;  %p3147_p5 = scmp.lt.s32.totalorder %s213_s9, %s213_s9 }
  0x2b   : > { %p3140_p13 = scmp.ne.s32.totalorder %s213_s9, %s3139_s25  ;;  %p3148_p8 = scmp.lt.s32.totalorder %s3139_s25, %s3139_s25 }
  0x2d   : > { %p3142_p0 = pnand %p3140_p13, %p3410_p7  ;;  %p3149_p9 = por %p3148_p8, %p3147_p5 }
  0x2f   : > { %p3143_p2 = pneg %p3142_p0 }
  0x31   : > { %p3150_p10 = pnand %p3149_p9, %p3143_p2 }
  0x33   : > { %3153 = shalt.err (!%p3150_p10)
}
  0x34   : > { %s3319_s26 = smov 512   ;;  %s3320_s29 = smov 32  }
  0x35   : > { %2854 = dma.hbm_to_vmem [thread:$0]  (!%p3400_p6), %s4277_s2, 8192, %s213_s9, [#allocation6], %s3319_s26, %s3319_s26, %s3320_s29  }
  0x36   : > { %s3321_s30 = smov [#allocation10]  }
  0x37   : > { %s238_s14 = sshll.u32 %s3321_s30, 4  ;;  %s239_s14 = int_to_ptr.vmem [resolvable:$true] %s238_s14 }
  0x38   : > { %s3165_s15 = scalar_lea.vmem %s239_s14, 4096  ;;  %p3173_p0 = scmp.lt.s32.totalorder %s239_s14, %s239_s14 }
  0x39   : > { %p3166_p11 = scmp.ne.s32.totalorder %s239_s14, %s3165_s15  ;;  %p3174_p2 = scmp.lt.s32.totalorder %s3165_s15, %s3165_s15 }
  0x3b   : > { %p3168_p12 = pnand %p3166_p11, %p3410_p7  ;;  %p3175_p5 = por %p3174_p2, %p3173_p0 }
  0x3d   : > { %p3169_p13 = pneg %p3168_p12 }
  0x3f   : > { %p3176_p8 = pnand %p3175_p5, %p3169_p13 }
  0x41   : > { %3179 = shalt.err (!%p3176_p8)
}
  0x42   : > { %s3322_s16 = smov 256   ;;  %s3323_s17 = smov 16  }
  0x43   : > { %2860 = dma.hbm_to_vmem [thread:$0]  (!%p3400_p6), %s4279_s4, 4096, %s239_s14, [#allocation9], %s3322_s16, %s3322_s16, %s3323_s17  }
  0x44   : > { %s3324_s19 = smov [#allocation11]  }
  0x45   : > { %s251_s20 = sshll.u32 %s3324_s19, 4  ;;  %s252_s20 = int_to_ptr.vmem [resolvable:$true] %s251_s20 }
  0x46   : > { %s3191_s25 = scalar_lea.vmem %s252_s20, 4096  ;;  %p3199_p12 = scmp.lt.s32.totalorder %s252_s20, %s252_s20 }
  0x47   : > { %p3192_p9 = scmp.ne.s32.totalorder %s252_s20, %s3191_s25  ;;  %p3200_p13 = scmp.lt.s32.totalorder %s3191_s25, %s3191_s25 }
  0x49   : > { %p3194_p10 = pnand %p3192_p9, %p3410_p7  ;;  %p3201_p0 = por %p3200_p13, %p3199_p12 }
  0x4b   : > { %p3195_p11 = pneg %p3194_p10 }
  0x4d   : > { %p3202_p2 = pnand %p3201_p0, %p3195_p11 }
  0x4f   : > { %3205 = shalt.err (!%p3202_p2)
}
  0x50   : > { %2863 = dma.hbm_to_vmem [thread:$0]  (!%p3400_p6), %s4280_s5, 4096, %s252_s20, [#allocation12], %s3322_s16, %s3322_s16, %s3323_s17  }
  0x51   : > { %s2668_s10 = sadd.s32 4294967294, %s3310_s24   ;;  %s3460_s7 = sadd.s32 1, %s3310_s24  }
  0x52   : > { %s32_s8 = sadd.s32 1, %s3306_s23  ;;  %s29_s11 = ssub.s32 %s3310_s24, %s3460_s7 }
  0x53   : > { %p39_p7 = scmp.ne.s32.totalorder %s3306_s23, %s3302_s22  ;;  %p30_p5 = scmp.eq.s32.totalorder %s29_s11, 0 }
  0x54   : > { %p40_p8 = scmp.eq.s32.totalorder %s3310_s24, 0  ;;  %p45_p9 = scmp.ne.s32.totalorder %s3302_s22, %s3298_s21 }
  0x55   : > { %p174_p10 = scmp.eq.s32.totalorder %s3386_s27, 1  ;;  %p180_p13 = scmp.eq.s32.totalorder %s2668_s10, 1 }
  0x56   : > { %s3472_s30 = scalar_select %p30_p5, %s3306_s23, %s32_s8  }
  0x57   : > { %p41_p11 = por %p40_p8, %p39_p7  ;;  %p3476_p12 = por %p4282_p1, %p45_p9 }
  0x58   : > { %p3480_p6 = por %p174_p10, %p39_p7  ;;  %p2877_p0 = scmp.lt.s32.totalorder %s3310_s24, 2 }
  0x59   : > { %s4301_s14 = scalar_select %p3476_p12, 1, 0 }
  0x5a   : > { %s4302_s15 = scalar_select %p3480_p6, 1, 0 }
  0x5b   : > { %s265_s16 = sand.u32 1, %s3306_s23   ;;  %p3486_p2 = por %p180_p13, %p45_p9 }
  0x5c   : > { %s2676_s18 = sshll.u32 %s265_s16, 6  ;;  %s2821_s9 = sshll.u32 %s3310_s24, 10 }
  0x5d   : > { %s4303_s17 = scalar_select %p3486_p2, 1, 0 }
  0x5e   : > { %s3494_s25 = scalar_lea.hbm %s4275_s0, %s2821_s9  ;;  %s269_s26 = scalar_lea.vmem [#allocation2], %s2676_s18 }
  0x5f   : > { %s276_s29 = sshll.u32 %s269_s26, 4  ;;  %p3496_p7 = pnand %p2877_p0, %p41_p11  ;;  %s3500_s29 = int_to_ptr.vmem [resolvable:$true] %s276_s29 }
  0x60   : > { %s3502_s8 = scalar_lea.sflag [#allocation3], %s265_s16  ;;  %s3206_s11 = scalar_lea.hbm %s3494_s25, 1024 }
  0x61   : > { %p3207_p5 = scmp.ne.s32.totalorder %s3494_s25, %s3206_s11  ;;  %p3208_p8 = pneg %p3496_p7 }
  0x62   : > { %s3211_s18 = scalar_lea.hbm %s4275_s0, 2048  ;;  %p3212_p11 = scmp.lt.s32.totalorder %s3494_s25, %s4275_s0 }
  0x63   : > { %p3209_p9 = pnand %p3208_p8, %p3207_p5  ;;  %p3213_p13 = scmp.lt.s32.totalorder %s3211_s18, %s3206_s11 }
  0x65   : > { %p3210_p10 = pneg %p3209_p9  ;;  %p3214_p0 = por %p3213_p13, %p3212_p11 }
  0x67   : > { %p3215_p4 = pnand %p3214_p0, %p3210_p10 }
  0x69   : > { %3218 = shalt.err (!%p3215_p4)
}
  0x6a   : > { %s3219_s16 = scalar_lea.vmem %s3500_s29, 1024  ;;  %s3325_s12 = smov [#allocation2]  }
  0x6b   : > { %p3220_p1 = scmp.ne.s32.totalorder %s3500_s29, %s3219_s16  ;;  %s3224_s13 = sshll.u32 %s3325_s12, 4  ;;  %s3225_s13 = int_to_ptr.vmem [resolvable:$false] %s3224_s13 }
  0x6c   : > { %s3226_s9 = scalar_lea.vmem %s3225_s13, 2048  ;;  %p3227_p9 = scmp.lt.s32.totalorder %s3500_s29, %s3225_s13 }
  0x6d   : > { %p3222_p2 = pnand %p3220_p1, %p3208_p8  ;;  %p3228_p6 = scmp.lt.s32.totalorder %s3226_s9, %s3219_s16 }
  0x6f   : > { %p3223_p5 = pneg %p3222_p2  ;;  %p3229_p12 = por %p3228_p6, %p3227_p9 }
  0x71   : > { %p3230_p3 = pnand %p3229_p12, %p3223_p5 }
  0x73   : > { %3233 = shalt.err (!%p3230_p3)
}
  0x74   : > { %s4305_s11 = smov 4   ;;  %s4306_s19 = smov 64  }
  0x75   : > { %2867 = dma.hbm_to_vmem [thread:$0]  (!%p3496_p7), %s3494_s25, 1024, %s3500_s29, %s3502_s8, %s4306_s19, %s4306_s19, %s4305_s11  }
  0x76   : > { %p4307_p1 = scmp.ne.s32.totalorder %s4298_s28, 0 }
  0x78   : > { %288 = sbr.rel (%p4307_p1) target bundleno = 1031 (0x407), region = 44 }
  0x7d   : > { %s3529_s12 = sand.u32 1, %s3302_s22   ;;  %p4308_p3 = scmp.ne.s32.totalorder %s4301_s14, 0 }
  0x7e   : > { %s2680_s13 = sshll.u32 %s3529_s12, 6  ;;  %s291_s18 = scalar_lea.sflag [#allocation3], %s3529_s12 }
  0x7f   : > { %s3533_s20 = scalar_lea.vmem [#allocation2], %s2680_s13 }
  0x80   : > { %3277 = dma.done.wait (%p4308_p3), %s291_s18, 1024  }
  0x81   : > { %3279 = vsyncadd (%p4308_p3), %s291_s18, 4294966272  ;;  %p4309_p4 = scmp.eq.s32.totalorder %s3386_s27, 0 }
  0x83   : > { %3281 = dma.done.wait (%p4309_p4), [#allocation6], 11264   ;;  %p4310_p12 = pmov %p4309_p4 }
  0x84   : > { %p4311_p6 = pmov %p4309_p4 }
  0x85   : > { %3283 = vsyncadd (%p4310_p12), [#allocation6], 4294956032 }
  0x86   : > { %3285 = dma.done.wait (%p4311_p6), [#allocation9], 8192   ;;  %p4312_p2 = pmov %p4309_p4 }
  0x88   : > { %3287 = vsyncadd (%p4312_p2), [#allocation9], 4294959104  ;;  %p4313_p7 = pmov %p4312_p2 }
  0x89   : > { %p4314_p8 = pmov %p4312_p2 }
  0x8a   : > { %3289 = dma.done.wait (%p4313_p7), [#allocation12], 4096  }
  0x8b   : > { %3291 = vsyncadd (%p4314_p8), [#allocation12], 4294963200  ;;  %v4288_v0 = vmov 0   ;;  %v418_v1 = vld [vmem:[#allocation7 + $0x1c0] sm:$0xff]  ;;  %v419_v3 = vld [vmem:[#allocation7 + $0x1c8] sm:$0xff]  ;;  %s2686_s28 = sshll.u32 %s3529_s12, 8 }
  0x8c   : > { %826 = vmatprep.mubr.bf16.mxu0 %v4288_v0  ;;  %939 = vmatprep.mubr.bf16.mxu1 %v4288_v0  ;;  %v422_v2 = vld [vmem:[#allocation7 + $0x1e0] sm:$0xff]  ;;  %v423_v5 = vld [vmem:[#allocation7 + $0x1e8] sm:$0xff]  ;;  %v420_v60 = vld [vmem:[#allocation7 + $0x1d0] sm:$0xff]  ;;  %s4093_s14 = scalar_lea.vmem [#allocation13], %s2686_s28  ;;  %s2823_s25 = sshll.u32 %s3386_s27, 12 }
  0x8d   : > { %v2752_v4 = vcombine.high %v418_v1, %v422_v2  ;;  %v2751_v6 = vcombine.low %v418_v1, %v422_v2  ;;  %v410_v7 = vld [vmem:[#allocation7 + $0x180] sm:$0xff]  ;;  %v2754_v9 = vcombine.high %v419_v3, %v423_v5  ;;  %v2753_v10 = vcombine.low %v419_v3, %v423_v5  ;;  %v411_v12 = vld [vmem:[#allocation7 + $0x188] sm:$0xff]  ;;  %v424_v61 = vld [vmem:[#allocation7 + $0x1f0] sm:$0xff]  ;;  %s2547_s29 = sshll.u32 %s4093_s14, 4  ;;  %s4229_s26 = scalar_lea.hbm %s4281_s6, %s2823_s25  ;;  %s4231_s29 = int_to_ptr.vmem [resolvable:$true] %s2547_s29 }
  0x8e   : > { %v414_v8 = vld [vmem:[#allocation7 + $0x1a0] sm:$0xff]  ;;  %v415_v13 = vld [vmem:[#allocation7 + $0x1a8] sm:$0xff]  ;;  %v2756_v5 = vcombine.high %v420_v60, %v424_v61  ;;  %s2533_s27 = scalar_lea.sflag [#allocation4], %s3529_s12  ;;  %s3234_s16 = scalar_lea.vmem %s4231_s29, 4096 }
  0x8f   : > { %v2744_v11 = vcombine.high %v410_v7, %v414_v8  ;;  %v402_v14 = vld [vmem:[#allocation7 + $0x140] sm:$0xff]  ;;  %794 = vmatprep.subr.bf16.mxu0 %v2752_v4  ;;  %v2746_v15 = vcombine.high %v411_v12, %v415_v13  ;;  %v403_v17 = vld [vmem:[#allocation7 + $0x148] sm:$0xff]  ;;  %907 = vmatprep.subr.bf16.mxu1 %v2754_v9  ;;  %v2743_v19 = vcombine.low %v410_v7, %v414_v8  ;;  %v416_v7 = vld [vmem:[#allocation7 + $0x1b0] sm:$0xff]  ;;  %p3235_p10 = scmp.ne.s32.totalorder %s4231_s29, %s3234_s16  ;;  %p4412_p11 = scmp.ne.s32.totalorder %s4302_s15, 0 }
  0x90   : > { %v406_v16 = vld [vmem:[#allocation7 + $0x160] sm:$0xff]  ;;  %v407_v18 = vld [vmem:[#allocation7 + $0x168] sm:$0xff]  ;;  %795 = vmatpush1.bf16.msra.mxu0 %v2751_v6  ;;  %908 = vmatpush1.bf16.msra.mxu1 %v2753_v10  ;;  %v2745_v20 = vcombine.low %v411_v12, %v415_v13  ;;  %v412_v6 = vld [vmem:[#allocation7 + $0x190] sm:$0xff]  ;;  %v2755_v8 = vcombine.low %v420_v60, %v424_v61  ;;  %s3327_s9 = smov [#allocation13]  }
  0x91   : > { %796 = vmatprep.subr.bf16.mxu0 %v2744_v11  ;;  %v2736_v21 = vcombine.high %v402_v14, %v406_v16  ;;  %909 = vmatprep.subr.bf16.mxu1 %v2746_v15  ;;  %v2738_v22 = vcombine.high %v403_v17, %v407_v18  ;;  %v394_v23 = vld [vmem:[#allocation7 + $0x100] sm:$0xff]  ;;  %v395_v25 = vld [vmem:[#allocation7 + $0x108] sm:$0xff]  ;;  %v2735_v27 = vcombine.low %v402_v14, %v406_v16  ;;  %v404_v9 = vld [vmem:[#allocation7 + $0x150] sm:$0xff]  ;;  %p3236_p13 = pnand %p3235_p10, %p4412_p11  ;;  %s3238_s11 = sshll.u32 %s3327_s9, 4  ;;  %s3239_s11 = int_to_ptr.vmem [resolvable:$false] %s3238_s11 }
  0x92   : > { %v398_v24 = vld [vmem:[#allocation7 + $0x120] sm:$0xff]  ;;  %v399_v26 = vld [vmem:[#allocation7 + $0x128] sm:$0xff]  ;;  %v2737_v28 = vcombine.low %v403_v17, %v407_v18  ;;  %v408_v10 = vld [vmem:[#allocation7 + $0x170] sm:$0xff]  ;;  %v2748_v11 = vcombine.high %v412_v6, %v416_v7  ;;  %v2747_v13 = vcombine.low %v412_v6, %v416_v7  ;;  %s3240_s19 = scalar_lea.vmem %s3239_s11, 8192  ;;  %p3241_p5 = scmp.lt.s32.totalorder %s4231_s29, %s3239_s11 }
  0x93   : > { %v2728_v29 = vcombine.high %v394_v23, %v398_v24  ;;  %v386_v30 = vld [vmem:[#allocation7 + $0xc0] sm:$0xff]  ;;  %v2730_v31 = vcombine.high %v395_v25, %v399_v26  ;;  %v387_v33 = vld [vmem:[#allocation7 + $0xc8] sm:$0xff]  ;;  %v2727_v35 = vcombine.low %v394_v23, %v398_v24  ;;  %v2729_v36 = vcombine.low %v395_v25, %v399_v26  ;;  %v396_v14 = vld [vmem:[#allocation7 + $0x110] sm:$0xff]  ;;  %p3237_p0 = pneg %p3236_p13  ;;  %p3242_p9 = scmp.lt.s32.totalorder %s3240_s19, %s3234_s16 }
  0x94   : > { %797 = vmatpush1.bf16.msra.mxu0 %v2743_v19  ;;  %910 = vmatpush1.bf16.msra.mxu1 %v2745_v20  ;;  %v390_v32 = vld [vmem:[#allocation7 + $0xe0] sm:$0xff]  ;;  %v391_v34 = vld [vmem:[#allocation7 + $0xe8] sm:$0xff]  ;;  %v400_v15 = vld [vmem:[#allocation7 + $0x130] sm:$0xff]  ;;  %v2740_v16 = vcombine.high %v404_v9, %v408_v10  ;;  %v2739_v17 = vcombine.low %v404_v9, %v408_v10 }
  0x95   : > { %798 = vmatprep.subr.bf16.mxu0 %v2736_v21  ;;  %911 = vmatprep.subr.bf16.mxu1 %v2738_v22  ;;  %v2720_v37 = vcombine.high %v386_v30, %v390_v32  ;;  %v378_v38 = vld [vmem:[#allocation7 + $0x80] sm:$0xff]  ;;  %v2722_v39 = vcombine.high %v387_v33, %v391_v34  ;;  %v379_v41 = vld [vmem:[#allocation7 + $0x88] sm:$0xff]  ;;  %v2719_v43 = vcombine.low %v386_v30, %v390_v32  ;;  %v388_v18 = vld [vmem:[#allocation7 + $0xd0] sm:$0xff]  ;;  %p3243_p1 = por %p3242_p9, %p3241_p5 }
  0x96   : > { %v382_v40 = vld [vmem:[#allocation7 + $0xa0] sm:$0xff]  ;;  %v383_v42 = vld [vmem:[#allocation7 + $0xa8] sm:$0xff]  ;;  %v2721_v44 = vcombine.low %v387_v33, %v391_v34  ;;  %v392_v19 = vld [vmem:[#allocation7 + $0xf0] sm:$0xff]  ;;  %v2732_v20 = vcombine.high %v396_v14, %v400_v15  ;;  %v2731_v22 = vcombine.low %v396_v14, %v400_v15 }
  0x97   : > { %v2712_v45 = vcombine.high %v378_v38, %v382_v40  ;;  %v2714_v46 = vcombine.high %v379_v41, %v383_v42  ;;  %v370_v47 = vld [vmem:[#allocation7 + $0x40] sm:$0xff]  ;;  %v371_v49 = vld [vmem:[#allocation7 + $0x48] sm:$0xff]  ;;  %v2711_v51 = vcombine.low %v378_v38, %v382_v40  ;;  %v2713_v52 = vcombine.low %v379_v41, %v383_v42  ;;  %v3568_v21 = vld [vmem:[%s3533_s20 + $0x10] sm:$0xff]   ;;  %p3244_p3 = pnand %p3243_p1, %p3237_p0 }
  0x98   : > { %799 = vmatpush1.bf16.msra.mxu0 %v2735_v27  ;;  %912 = vmatpush1.bf16.msra.mxu1 %v2737_v28  ;;  %v374_v48 = vld [vmem:[#allocation7 + $0x60] sm:$0xff]  ;;  %v375_v50 = vld [vmem:[#allocation7 + $0x68] sm:$0xff]  ;;  %v380_v23 = vld [vmem:[#allocation7 + $0x90] sm:$0xff]  ;;  %v2724_v25 = vcombine.high %v388_v18, %v392_v19  ;;  %v2723_v26 = vcombine.low %v388_v18, %v392_v19 }
  0x99   : > { %800 = vmatprep.subr.bf16.mxu0 %v2728_v29  ;;  %913 = vmatprep.subr.bf16.mxu1 %v2730_v31  ;;  %v2704_v53 = vcombine.high %v370_v47, %v374_v48  ;;  %v2706_v54 = vcombine.high %v371_v49, %v375_v50  ;;  %v362_v55 = vld [vmem:[#allocation7] sm:$0xff]  ;;  %v363_v57 = vld [vmem:[#allocation7 + $0x8] sm:$0xff]  ;;  %v2703_v59 = vcombine.low %v370_v47, %v374_v48  ;;  %v384_v24 = vld [vmem:[#allocation7 + $0xb0] sm:$0xff] }
  0x9a   : > { %v366_v56 = vld [vmem:[#allocation7 + $0x20] sm:$0xff]  ;;  %v367_v58 = vld [vmem:[#allocation7 + $0x28] sm:$0xff]  ;;  %v2705_v62 = vcombine.low %v371_v49, %v375_v50  ;;  %v2716_v27 = vcombine.high %v380_v23, %v384_v24  ;;  %v372_v28 = vld [vmem:[#allocation7 + $0x50] sm:$0xff]  ;;  %v2715_v30 = vcombine.low %v380_v23, %v384_v24 }
  0x9b   : > { %v2696_v63 = vcombine.high %v362_v55, %v366_v56  ;;  %v2698_v1 = vcombine.high %v363_v57, %v367_v58  ;;  %v2695_v2 = vcombine.low %v362_v55, %v366_v56  ;;  %v2697_v3 = vcombine.low %v363_v57, %v367_v58  ;;  %v3554_v4 = vld [vmem:[%s3533_s20] sm:$0xff]   ;;  %v3561_v12 = vld [vmem:[%s3533_s20 + $0x8] sm:$0xff]   ;;  %v376_v29 = vld [vmem:[#allocation7 + $0x70] sm:$0xff] }
  0x9c   : > { %801 = vmatpush1.bf16.msra.mxu0 %v2727_v35  ;;  %914 = vmatpush1.bf16.msra.mxu1 %v2729_v36  ;;  %v2708_v31 = vcombine.high %v372_v28, %v376_v29  ;;  %v3575_v32 = vld [vmem:[%s3533_s20 + $0x18] sm:$0xff]   ;;  %v364_v33 = vld [vmem:[#allocation7 + $0x10] sm:$0xff]  ;;  %v2707_v35 = vcombine.low %v372_v28, %v376_v29  ;;  %v3582_v38 = vld [vmem:[%s3533_s20 + $0x20] sm:$0xff]  }
  0x9d   : > { %802 = vmatprep.subr.bf16.mxu0 %v2720_v37  ;;  %915 = vmatprep.subr.bf16.mxu1 %v2722_v39  ;;  %v368_v34 = vld [vmem:[#allocation7 + $0x30] sm:$0xff]  ;;  %v3589_v39 = vld [vmem:[%s3533_s20 + $0x28] sm:$0xff]   ;;  %v3603_v41 = vld [vmem:[%s3533_s20 + $0x38] sm:$0xff]  }
  0x9e   : > { %v2700_v36 = vcombine.high %v364_v33, %v368_v34  ;;  %v2699_v37 = vcombine.low %v364_v33, %v368_v34  ;;  %v3596_v40 = vld [vmem:[%s3533_s20 + $0x30] sm:$0xff]   ;;  %v421_v42 = vld [vmem:[#allocation7 + $0x1d8] sm:$0xff] }
  0x9f   : > { %v417_v47 = vld [vmem:[#allocation7 + $0x1b8] sm:$0xff] }
  0xa0   : > { %803 = vmatpush1.bf16.msra.mxu0 %v2719_v43  ;;  %916 = vmatpush1.bf16.msra.mxu1 %v2721_v44  ;;  %v425_v43 = vld [vmem:[#allocation7 + $0x1f8] sm:$0xff] }
  0xa1   : > { %804 = vmatprep.subr.bf16.mxu0 %v2712_v45  ;;  %917 = vmatprep.subr.bf16.mxu1 %v2714_v46  ;;  %v2758_v44 = vcombine.high %v421_v42, %v425_v43  ;;  %v2757_v45 = vcombine.low %v421_v42, %v425_v43  ;;  %v413_v46 = vld [vmem:[#allocation7 + $0x198] sm:$0xff] }
  0xa2   : > { %v2750_v48 = vcombine.high %v413_v46, %v417_v47  ;;  %v2749_v49 = vcombine.low %v413_v46, %v417_v47  ;;  %v405_v50 = vld [vmem:[#allocation7 + $0x158] sm:$0xff] }
  0xa3   : > { %v401_v55 = vld [vmem:[#allocation7 + $0x138] sm:$0xff] }
  0xa4   : > { %805 = vmatpush1.bf16.msra.mxu0 %v2711_v51  ;;  %918 = vmatpush1.bf16.msra.mxu1 %v2713_v52  ;;  %v409_v51 = vld [vmem:[#allocation7 + $0x178] sm:$0xff] }
  0xa5   : > { %806 = vmatprep.subr.bf16.mxu0 %v2704_v53  ;;  %919 = vmatprep.subr.bf16.mxu1 %v2706_v54  ;;  %v2742_v52 = vcombine.high %v405_v50, %v409_v51  ;;  %v2741_v53 = vcombine.low %v405_v50, %v409_v51  ;;  %v397_v54 = vld [vmem:[#allocation7 + $0x118] sm:$0xff] }
  0xa6   : > { %v2734_v56 = vcombine.high %v397_v54, %v401_v55  ;;  %v2733_v57 = vcombine.low %v397_v54, %v401_v55  ;;  %v389_v58 = vld [vmem:[#allocation7 + $0xd8] sm:$0xff] }
  0xa7   : > { %v369_v9 = vld [vmem:[#allocation7 + $0x38] sm:$0xff] }
  0xa8   : > { %807 = vmatpush1.bf16.msra.mxu0 %v2703_v59  ;;  %920 = vmatpush1.bf16.msra.mxu1 %v2705_v62  ;;  %v393_v59 = vld [vmem:[#allocation7 + $0xf8] sm:$0xff] }
  0xa9   : > { %808 = vmatprep.subr.bf16.mxu0 %v2696_v63  ;;  %921 = vmatprep.subr.bf16.mxu1 %v2698_v1  ;;  %v2726_v60 = vcombine.high %v389_v58, %v393_v59  ;;  %v2725_v61 = vcombine.low %v389_v58, %v393_v59  ;;  %v381_v62 = vld [vmem:[#allocation7 + $0x98] sm:$0xff] }
  0xaa   : > { %v385_v63 = vld [vmem:[#allocation7 + $0xb8] sm:$0xff] }
  0xab   : > { %v2718_v1 = vcombine.high %v381_v62, %v385_v63 }
  0xac   : > { %809 = vmatpush1.bf16.msra.mxu0 %v2695_v2  ;;  %922 = vmatpush1.bf16.msra.mxu1 %v2697_v3  ;;  %v2717_v2 = vcombine.low %v381_v62, %v385_v63  ;;  %v373_v3 = vld [vmem:[#allocation7 + $0x58] sm:$0xff] }
  0xad   : > { %1020 = vmatprep.subr.bf16.mxu0 %v2756_v5  ;;  %1133 = vmatprep.subr.bf16.mxu1 %v2758_v44  ;;  %v377_v5 = vld [vmem:[#allocation7 + $0x78] sm:$0xff] }
  0xae   : > { %v2710_v6 = vcombine.high %v373_v3, %v377_v5  ;;  %v2709_v7 = vcombine.low %v373_v3, %v377_v5 }
  0xaf   : > { %827 = vmatmul.mubr.bf16.vlgmr.msra.gmra.mxu0 %v3554_v4  ;;  %940 = vmatmul.mubr.bf16.vlgmr.msra.gmra.mxu1 %v3554_v4 }
  0xb0   : > { %836 = vmatprep.mubr.bf16.mxu0 %v4288_v0  ;;  %949 = vmatprep.mubr.bf16.mxu1 %v4288_v0 }
  0xb1   : > { %1021 = vmatpush1.bf16.msra.mxu0 %v2755_v8  ;;  %1134 = vmatpush1.bf16.msra.mxu1 %v2757_v45  ;;  %v365_v8 = vld [vmem:[#allocation7 + $0x18] sm:$0xff] }
  0xb2   : > { %1022 = vmatprep.subr.bf16.mxu0 %v2748_v11  ;;  %1135 = vmatprep.subr.bf16.mxu1 %v2750_v48  ;;  %v2702_v10 = vcombine.high %v365_v8, %v369_v9  ;;  %v2701_v11 = vcombine.low %v365_v8, %v369_v9 }
  0xb5   : > { %1023 = vmatpush1.bf16.msra.mxu0 %v2747_v13  ;;  %1136 = vmatpush1.bf16.msra.mxu1 %v2749_v49 }
  0xb6   : > { %1024 = vmatprep.subr.bf16.mxu0 %v2740_v16  ;;  %1137 = vmatprep.subr.bf16.mxu1 %v2742_v52 }
  0xb7   : > { %837 = vmatmul.mubr.bf16.gmra.mxu0 %v3561_v12  ;;  %950 = vmatmul.mubr.bf16.gmra.mxu1 %v3561_v12 }
  0xb8   : > { %846 = vmatprep.mubr.bf16.mxu0 %v4288_v0  ;;  %959 = vmatprep.mubr.bf16.mxu1 %v4288_v0 }
  0xb9   : > { %1025 = vmatpush1.bf16.msra.mxu0 %v2739_v17  ;;  %1138 = vmatpush1.bf16.msra.mxu1 %v2741_v53 }
  0xba   : > { %1026 = vmatprep.subr.bf16.mxu0 %v2732_v20  ;;  %1139 = vmatprep.subr.bf16.mxu1 %v2734_v56 }
  0xbd   : > { %1027 = vmatpush1.bf16.msra.mxu0 %v2731_v22  ;;  %1140 = vmatpush1.bf16.msra.mxu1 %v2733_v57 }
  0xbe   : > { %1028 = vmatprep.subr.bf16.mxu0 %v2724_v25  ;;  %1141 = vmatprep.subr.bf16.mxu1 %v2726_v60 }
  0xbf   : > { %847 = vmatmul.mubr.bf16.gmra.mxu0 %v3568_v21  ;;  %960 = vmatmul.mubr.bf16.gmra.mxu1 %v3568_v21 }
  0xc0   : > { %856 = vmatprep.mubr.bf16.mxu0 %v4288_v0  ;;  %969 = vmatprep.mubr.bf16.mxu1 %v4288_v0 }
  0xc1   : > { %1029 = vmatpush1.bf16.msra.mxu0 %v2723_v26  ;;  %1142 = vmatpush1.bf16.msra.mxu1 %v2725_v61 }
  0xc2   : > { %1030 = vmatprep.subr.bf16.mxu0 %v2716_v27  ;;  %1143 = vmatprep.subr.bf16.mxu1 %v2718_v1 }
  0xc5   : > { %1031 = vmatpush1.bf16.msra.mxu0 %v2715_v30  ;;  %1144 = vmatpush1.bf16.msra.mxu1 %v2717_v2 }
  0xc6   : > { %1032 = vmatprep.subr.bf16.mxu0 %v2708_v31  ;;  %1145 = vmatprep.subr.bf16.mxu1 %v2710_v6 }
  0xc7   : > { %857 = vmatmul.mubr.bf16.gmra.mxu0 %v3575_v32  ;;  %970 = vmatmul.mubr.bf16.gmra.mxu1 %v3575_v32 }
  0xc8   : > { %866 = vmatprep.mubr.bf16.mxu0 %v4288_v0  ;;  %979 = vmatprep.mubr.bf16.mxu1 %v4288_v0 }
  0xc9   : > { %1033 = vmatpush1.bf16.msra.mxu0 %v2707_v35  ;;  %1146 = vmatpush1.bf16.msra.mxu1 %v2709_v7 }
  0xca   : > { %1034 = vmatprep.subr.bf16.mxu0 %v2700_v36  ;;  %1147 = vmatprep.subr.bf16.mxu1 %v2702_v10 }
  0xcd   : > { %1035 = vmatpush1.bf16.msra.mxu0 %v2699_v37  ;;  %1148 = vmatpush1.bf16.msra.mxu1 %v2701_v11 }
  0xcf   : > { %867 = vmatmul.mubr.bf16.gmra.mxu0 %v3582_v38  ;;  %980 = vmatmul.mubr.bf16.gmra.mxu1 %v3582_v38 }
  0xd0   : > { %876 = vmatprep.mubr.bf16.mxu0 %v4288_v0  ;;  %989 = vmatprep.mubr.bf16.mxu1 %v4288_v0 }
  0xd7   : > { %877 = vmatmul.mubr.bf16.gmra.mxu0 %v3589_v39  ;;  %990 = vmatmul.mubr.bf16.gmra.mxu1 %v3589_v39 }
  0xd8   : > { %886 = vmatprep.mubr.bf16.mxu0 %v4288_v0  ;;  %999 = vmatprep.mubr.bf16.mxu1 %v4288_v0 }
  0xdf   : > { %887 = vmatmul.mubr.bf16.gmra.mxu0 %v3596_v40  ;;  %1000 = vmatmul.mubr.bf16.gmra.mxu1 %v3596_v40 }
  0xe0   : > { %896 = vmatprep.mubr.bf16.mxu0 %v4288_v0  ;;  %1009 = vmatprep.mubr.bf16.mxu1 %v4288_v0 }
  0xe7   : > { %897 = vmatmul.mubr.bf16.gmra.mxu0 %v3603_v41  ;;  %1010 = vmatmul.mubr.bf16.gmra.mxu1 %v3603_v41 }
  0xe8   : > { %1052 = vmatprep.mubr.bf16.mxu0 %v4288_v0  ;;  %1165 = vmatprep.mubr.bf16.mxu1 %v4288_v0 }
  0xef   : > { %1053 = vmatmul.mubr.bf16.vlgmr.msra.gmra.mxu0 %v3554_v4  ;;  %1166 = vmatmul.mubr.bf16.vlgmr.msra.gmra.mxu1 %v3554_v4 }
  0xf0   : > { %1062 = vmatprep.mubr.bf16.mxu0 %v4288_v0  ;;  %1175 = vmatprep.mubr.bf16.mxu1 %v4288_v0 }
  0xf7   : > { %1063 = vmatmul.mubr.bf16.gmra.mxu0 %v3561_v12  ;;  %1176 = vmatmul.mubr.bf16.gmra.mxu1 %v3561_v12 }
  0xf8   : > { %1072 = vmatprep.mubr.bf16.mxu0 %v4288_v0  ;;  %1185 = vmatprep.mubr.bf16.mxu1 %v4288_v0 }
  0xff   : > { %1073 = vmatmul.mubr.bf16.gmra.mxu0 %v3568_v21  ;;  %1186 = vmatmul.mubr.bf16.gmra.mxu1 %v3568_v21 }
 0x100   : > { %1082 = vmatprep.mubr.bf16.mxu0 %v4288_v0  ;;  %1195 = vmatprep.mubr.bf16.mxu1 %v4288_v0 }
 0x107   : > { %1083 = vmatmul.mubr.bf16.gmra.mxu0 %v3575_v32  ;;  %1196 = vmatmul.mubr.bf16.gmra.mxu1 %v3575_v32 }
 0x108   : > { %1092 = vmatprep.mubr.bf16.mxu0 %v4288_v0  ;;  %1205 = vmatprep.mubr.bf16.mxu1 %v4288_v0 }
 0x10f   : > { %1093 = vmatmul.mubr.bf16.gmra.mxu0 %v3582_v38  ;;  %1206 = vmatmul.mubr.bf16.gmra.mxu1 %v3582_v38 }
 0x110   : > { %1102 = vmatprep.mubr.bf16.mxu0 %v4288_v0  ;;  %1215 = vmatprep.mubr.bf16.mxu1 %v4288_v0 }
 0x117   : > { %1103 = vmatmul.mubr.bf16.gmra.mxu0 %v3589_v39  ;;  %1216 = vmatmul.mubr.bf16.gmra.mxu1 %v3589_v39 }
 0x118   : > { %1112 = vmatprep.mubr.bf16.mxu0 %v4288_v0  ;;  %1225 = vmatprep.mubr.bf16.mxu1 %v4288_v0 }
 0x11f   : > { %1113 = vmatmul.mubr.bf16.gmra.mxu0 %v3596_v40  ;;  %1226 = vmatmul.mubr.bf16.gmra.mxu1 %v3596_v40 }
 0x120   : > { %1122 = vmatprep.mubr.bf16.mxu0 %v4288_v0  ;;  %1235 = vmatprep.mubr.bf16.mxu1 %v4288_v0 }
 0x127   : > { %1123 = vmatmul.mubr.bf16.gmra.mxu0 %v3603_v41  ;;  %1236 = vmatmul.mubr.bf16.gmra.mxu1 %v3603_v41 }
 0x128   : > { %1407 = vmatprep.mubr.bf16.mxu0 %v4288_v0  ;;  %1568 = vmatprep.mubr.bf16.mxu1 %v4288_v0 }
 0x16f   : > { %v3641_v4 = vpop.f32.mrf.mxu0  ;;  %v3643_v12 = vpop.f32.mrf.mxu1 }
 0x170   : > { %4315 = vst [vmem:[#allocation19_spill] sm:$0xff] %v3641_v4  ;;  %4316 = vst [vmem:[#allocation20_spill] sm:$0xff] %v3643_v12 }
 0x171   : > { %v3645_v13 = vpop.f32.mrf.mxu0  ;;  %v3647_v14 = vpop.f32.mrf.mxu1 }
 0x172   : > { %4317 = vst [vmem:[#allocation21_spill] sm:$0xff] %v3647_v14 }
 0x173   : > { %v3649_v15 = vpop.f32.mrf.mxu0  ;;  %v3653_v17 = vpop.f32.mrf.mxu1 }
 0x174   : > { %4318 = vst [vmem:[#allocation22_spill] sm:$0xff] %v3649_v15  ;;  %4319 = vst [vmem:[#allocation23_spill] sm:$0xff] %v3653_v17 }
 0x175   : > { %v3657_v19 = vpop.f32.mrf.mxu0  ;;  %v3659_v20 = vpop.f32.mrf.mxu1 }
 0x176   : > { %4320 = vst [vmem:[#allocation24_spill] sm:$0xff] %v3659_v20 }
 0x177   : > { %v3661_v21 = vpop.f32.mrf.mxu0  ;;  %v3663_v22 = vpop.f32.mrf.mxu1 }
 0x178   : > { %4321 = vst [vmem:[#allocation25_spill] sm:$0xff] %v3661_v21  ;;  %4322 = vst [vmem:[#allocation26_spill] sm:$0xff] %v3663_v22 }
 0x179   : > { %v3665_v23 = vpop.f32.mrf.mxu0  ;;  %v3667_v24 = vpop.f32.mrf.mxu1 }
 0x17b   : > { %v3669_v25 = vpop.f32.mrf.mxu0  ;;  %v3673_v27 = vpop.f32.mrf.mxu1 }
 0x17c   : > { %4323 = vst [vmem:[#allocation27_spill] sm:$0xff] %v3669_v25  ;;  %4324 = vst [vmem:[#allocation28_spill] sm:$0xff] %v3673_v27 }
 0x17d   : > { %v3677_v29 = vpop.f32.mrf.mxu0  ;;  %v3679_v30 = vpop.f32.mrf.mxu1 }
 0x17f   : > { %v3681_v31 = vpop.f32.mrf.mxu0  ;;  %v3683_v32 = vpop.f32.mrf.mxu1 }
 0x181   : > { %v3685_v33 = vpop.f32.mrf.mxu0  ;;  %v3687_v34 = vpop.f32.mrf.mxu1 }
 0x183   : > { %v3689_v35 = vpop.f32.mrf.mxu0  ;;  %v3691_v36 = vpop.f32.mrf.mxu1 }
 0x185   : > { %v3693_v37 = vpop.f32.mrf.mxu0  ;;  %v3695_v38 = vpop.f32.mrf.mxu1 }
 0x187   : > { %v3697_v39 = vpop.f32.mrf.mxu0  ;;  %v3699_v40 = vpop.f32.mrf.mxu1 }
 0x189   : > { %v3701_v41 = vpop.f32.mrf.mxu0  ;;  %v3703_v42 = vpop.f32.mrf.mxu1 }
 0x18b   : > { %v3705_v43 = vpop.f32.mrf.mxu0  ;;  %v3707_v44 = vpop.f32.mrf.mxu1 }
 0x18d   : > { %v3709_v45 = vpop.f32.mrf.mxu0  ;;  %v3711_v46 = vpop.f32.mrf.mxu1 }
 0x18f   : > { %v3713_v47 = vpop.f32.mrf.mxu0  ;;  %v3715_v48 = vpop.f32.mrf.mxu1 }
 0x191   : > { %v3717_v49 = vpop.f32.mrf.mxu0  ;;  %v3719_v50 = vpop.f32.mrf.mxu1 }
 0x193   : > { %v3721_v51 = vpop.f32.mrf.mxu0  ;;  %v3723_v52 = vpop.f32.mrf.mxu1 }
 0x195   : > { %v874_v53 = vpop.f32.mrf.mxu0  ;;  %v987_v54 = vpop.f32.mrf.mxu1 }
 0x197   : > { %v878_v55 = vpop.f32.mrf.mxu0  ;;  %v991_v56 = vpop.f32.mrf.mxu1 }
 0x199   : > { %v880_v57 = vpop.f32.mrf.mxu0  ;;  %v993_v58 = vpop.f32.mrf.mxu1 }
 0x19b   : > { %v882_v59 = vpop.f32.mrf.mxu0  ;;  %v995_v60 = vpop.f32.mrf.mxu1 }
 0x19d   : > { %v884_v61 = vpop.f32.mrf.mxu0  ;;  %v997_v62 = vpop.f32.mrf.mxu1 }
 0x19f   : > { %v888_v63 = vpop.f32.mrf.mxu0  ;;  %v1001_v1 = vpop.f32.mrf.mxu1 }
 0x1a1   : > { %v890_v2 = vpop.f32.mrf.mxu0  ;;  %v1003_v3 = vpop.f32.mrf.mxu1 }
 0x1a3   : > { %v892_v5 = vpop.f32.mrf.mxu0  ;;  %v1005_v6 = vpop.f32.mrf.mxu1 }
 0x1a4   : > { %v1282_v20 = vpack.c.bf16 %v892_v5, %v888_v63  ;;  %v2940_v63 = vld [vmem:[#allocation5 + $0x40] sm:$0xff]  }
 0x1a5   : > { %v894_v7 = vpop.f32.mrf.mxu0  ;;  %v1007_v8 = vpop.f32.mrf.mxu1 }
 0x1a6   : > { %v1283_v22 = vpack.c.bf16 %v894_v7, %v890_v2  ;;  %v1285_v21 = vpack.c.bf16 %v1007_v8, %v1003_v3  ;;  %v4337_v2 = vld [vmem:[#allocation20_spill] sm:$0xff]  ;;  %v4339_v7 = vmov 0  }
 0x1a7   : > { %v898_v9 = vpop.f32.mrf.mxu0  ;;  %v1011_v10 = vpop.f32.mrf.mxu1 }
 0x1a9   : > { %v900_v11 = vpop.f32.mrf.mxu0  ;;  %v1013_v0 = vpop.f32.mrf.mxu1 }
 0x1ab   : > { %v902_v18 = vpop.f32.mrf.mxu0  ;;  %v1015_v16 = vpop.f32.mrf.mxu1 }
 0x1ac   : > { %v1288_v17 = vpack.c.bf16 %v902_v18, %v898_v9  ;;  %v1290_v27 = vpack.c.bf16 %v1015_v16, %v1011_v10  ;;  %v1276_v16 = vpack.c.bf16 %v882_v59, %v878_v55  ;;  %v1265_v55 = vpack.c.bf16 %v3709_v45, %v3701_v41  ;;  %v2946_v9 = vld [vmem:[#allocation5 + $0x8] sm:$0xff]  }
 0x1ad   : > { %v904_v28 = vpop.f32.mrf.mxu0  ;;  %v1017_v12 = vpop.f32.mrf.mxu1  ;;  %v1264_v41 = vpack.c.bf16 %v3705_v43, %v3697_v39  ;;  %v1258_v39 = vpack.c.bf16 %v3689_v35, %v3681_v31  ;;  %v4326_v35 = vld [vmem:[#allocation24_spill] sm:$0xff] }
 0x1ae   : > { %v1289_v26 = vpack.c.bf16 %v904_v28, %v900_v11  ;;  %v1291_v4 = vpack.c.bf16 %v1017_v12, %v1013_v0  ;;  %v1277_v28 = vpack.c.bf16 %v884_v61, %v880_v57  ;;  %v1284_v11 = vpack.c.bf16 %v1005_v6, %v1001_v1  ;;  %v4336_v1 = vld [vmem:[#allocation23_spill] sm:$0xff] }
 0x1af   : > { %v3725_v15 = vpop.f32.mrf.mxu0  ;;  %v1279_v12 = vpack.c.bf16 %v997_v62, %v993_v58  ;;  %v4338_v3 = vpack.c.bf16 %v4336_v1, %v4337_v2  ;;  %v2958_v1 = vld [vmem:[#allocation5 + $0x38] sm:$0xff]  }
 0x1b0   : > { %1536 = vmatprep.subr.bf16.mxu1 %v1289_v26  ;;  %1375 = vmatprep.subr.bf16.mxu0 %v1291_v4  ;;  %v1273_v26 = vpack.c.bf16 %v987_v54, %v3719_v50  ;;  %v2951_v2 = vld [vmem:[#allocation5 + $0x78] sm:$0xff]  }
 0x1b1   : > { %v3727_v25 = vpop.f32.mrf.mxu0  ;;  %1537 = vmatpush1.bf16.msra.mxu1 %v1288_v17  ;;  %1376 = vmatpush1.bf16.msra.mxu0 %v1290_v27 }
 0x1b2   : > { %1538 = vmatprep.subr.bf16.mxu1 %v1283_v22  ;;  %1377 = vmatprep.subr.bf16.mxu0 %v1285_v21  ;;  %v1271_v21 = vpack.c.bf16 %v874_v53, %v3717_v49  ;;  %v1278_v22 = vpack.c.bf16 %v995_v60, %v991_v56  ;;  %v1272_v49 = vpack.c.bf16 %v3723_v52, %v3715_v48  ;;  %v4328_v52 = vld [vmem:[#allocation25_spill] sm:$0xff]  ;;  %v2944_v60 = vld [vmem:[#allocation5] sm:$0xff]  }
 0x1b3   : > { %v3729_v14 = vpop.f32.mrf.mxu0  ;;  %v1267_v53 = vpack.c.bf16 %v3711_v46, %v3703_v42  ;;  %v1259_v48 = vpack.c.bf16 %v3693_v37, %v3685_v33  ;;  %v1266_v42 = vpack.c.bf16 %v3707_v44, %v3699_v40  ;;  %v1261_v46 = vpack.c.bf16 %v3695_v38, %v3687_v34  ;;  %v4327_v44 = vld [vmem:[#allocation27_spill] sm:$0xff] }
 0x1b4   : > { %v1250_v0 = vpack.c.bf16 %v3729_v14, %v3725_v15  ;;  %v1253_v33 = vpack.c.bf16 %v3677_v29, %v3665_v23  ;;  %v1260_v37 = vpack.c.bf16 %v3691_v36, %v3683_v32  ;;  %v1255_v38 = vpack.c.bf16 %v3679_v30, %v3667_v24  ;;  %v4325_v29 = vld [vmem:[#allocation21_spill] sm:$0xff]  ;;  %v4330_v24 = vld [vmem:[#allocation28_spill] sm:$0xff]  ;;  %v4331_v30 = vld [vmem:[#allocation26_spill] sm:$0xff] }
 0x1b5   : > { %v3733_v18 = vpop.f32.mrf.mxu0  ;;  %1539 = vmatpush1.bf16.msra.mxu1 %v1282_v20  ;;  %1378 = vmatpush1.bf16.msra.mxu0 %v1284_v11  ;;  %v1270_v20 = vpack.c.bf16 %v3721_v51, %v3713_v47  ;;  %v1247_v23 = vpack.c.bf16 %v3657_v19, %v3645_v13  ;;  %v1249_v32 = vpack.c.bf16 %v4326_v35, %v4325_v29  ;;  %v4333_v13 = vld [vmem:[#allocation22_spill] sm:$0xff]  ;;  %v4334_v19 = vld [vmem:[#allocation19_spill] sm:$0xff] }
 0x1b6   : > { %v1251_v4 = vpack.c.bf16 %v3733_v18, %v3727_v25  ;;  %1540 = vmatprep.subr.bf16.mxu1 %v1277_v28  ;;  %1379 = vmatprep.subr.bf16.mxu0 %v1279_v12  ;;  %v4329_v56 = vpack.c.bf16 %v4327_v44, %v4328_v52  ;;  %v4332_v58 = vpack.c.bf16 %v4330_v24, %v4331_v30  ;;  %v2941_v28 = vld [vmem:[#allocation5 + $0x48] sm:$0xff]   ;;  %v2957_v18 = vld [vmem:[#allocation5 + $0x90] sm:$0xff]  }
 0x1b7   : > { %v3737_v17 = vpop.f32.mrf.mxu0  ;;  %v4335_v62 = vpack.c.bf16 %v4333_v13, %v4334_v19  ;;  %v2954_v44 = vld [vmem:[#allocation5 + $0x28] sm:$0xff]   ;;  %v2949_v19 = vld [vmem:[#allocation5 + $0x70] sm:$0xff]  }
 0x1b8   : > { %v2964_v14 = vld [vmem:[#allocation8 + $0x70] ss:$8 sps:$4 sm:$0xff]   ;;  %v2969_v15 = vld [vmem:[#allocation8 + $0x64] ss:$8 sps:$4 sm:$0xff]  }
 0x1b9   : > { %v3741_v27 = vpop.f32.mrf.mxu0  ;;  %1541 = vmatpush1.bf16.msra.mxu1 %v1276_v16  ;;  %1380 = vmatpush1.bf16.msra.mxu0 %v1278_v22 }
 0x1ba   : > { %1542 = vmatprep.subr.bf16.mxu1 %v1271_v21  ;;  %1381 = vmatprep.subr.bf16.mxu0 %v1273_v26  ;;  %v2948_v21 = vld [vmem:[#allocation5 + $0x10] sm:$0xff]  }
 0x1bb   : > { %v3745_v57 = vpop.f32.mrf.mxu0  ;;  %v2942_v26 = vld [vmem:[#allocation5 + $0x50] sm:$0xff]  }
 0x1bc   : > { %v1256_v50 = vpack.c.bf16 %v3745_v57, %v3737_v17  ;;  %v2955_v17 = vld [vmem:[#allocation5 + $0x88] sm:$0xff]  }
 0x1bd   : > { %v3755_v54 = vpop.f32.mrf.mxu0  ;;  %1543 = vmatpush1.bf16.msra.mxu1 %v1270_v20  ;;  %1382 = vmatpush1.bf16.msra.mxu0 %v1272_v49 }
 0x1be   : > { %v1257_v47 = vpack.c.bf16 %v3755_v54, %v3741_v27  ;;  %1544 = vmatprep.subr.bf16.mxu1 %v1265_v55  ;;  %1383 = vmatprep.subr.bf16.mxu0 %v1267_v53  ;;  %v2950_v53 = vld [vmem:[#allocation5 + $0x18] sm:$0xff]   ;;  %v2967_v54 = vld [vmem:[#allocation8 + $0x60] ss:$8 sps:$4 sm:$0xff]  }
 0x1bf   : > { %v3761_v45 = vpop.f32.mrf.mxu0 }
 0x1c1   : > { %v3769_v51 = vpop.f32.mrf.mxu0  ;;  %1545 = vmatpush1.bf16.msra.mxu1 %v1264_v41  ;;  %1384 = vmatpush1.bf16.msra.mxu0 %v1266_v42 }
 0x1c2   : > { %1546 = vmatprep.subr.bf16.mxu1 %v1259_v48  ;;  %1385 = vmatprep.subr.bf16.mxu0 %v1261_v46  ;;  %v2943_v48 = vld [vmem:[#allocation5 + $0x58] sm:$0xff]  }
 0x1c3   : > { %v3773_v43 = vpop.f32.mrf.mxu0 }
 0x1c4   : > { %v1262_v34 = vpack.c.bf16 %v3773_v43, %v3761_v45  ;;  %v3848_v45 = vpop.f32.mrf.mxu1  ;;  %v2972_v43 = vld [vmem:[#allocation8 + $0x54] ss:$8 sps:$4 sm:$0xff]  }
 0x1c5   : > { %v3783_v40 = vpop.f32.mrf.mxu0  ;;  %1547 = vmatpush1.bf16.msra.mxu1 %v1258_v39  ;;  %1386 = vmatpush1.bf16.msra.mxu0 %v1260_v37  ;;  %4340 = vst [vmem:[#allocation21_spill] sm:$0xff] %v3848_v45 }
 0x1c6   : > { %1548 = vmatprep.subr.bf16.mxu1 %v1253_v33  ;;  %1387 = vmatprep.subr.bf16.mxu0 %v1255_v38  ;;  %v2952_v33 = vld [vmem:[#allocation5 + $0x20] sm:$0xff]   ;;  %v3851_v27 = vpop.f32.mrf.mxu1 }
 0x1c7   : > { %v3785_v31 = vpop.f32.mrf.mxu0  ;;  %v2945_v38 = vld [vmem:[#allocation5 + $0x60] sm:$0xff]   ;;  %4341 = vst [vmem:[#allocation24_spill] sm:$0xff] %v3851_v27 }
 0x1c8   : > { %v3853_v57 = vpop.f32.mrf.mxu1 }
 0x1c9   : > { %v3791_v36 = vpop.f32.mrf.mxu0  ;;  %1549 = vmatpush1.bf16.msra.mxu1 %v4329_v56  ;;  %1388 = vmatpush1.bf16.msra.mxu0 %v4332_v58  ;;  %v2947_v56 = vld [vmem:[#allocation5 + $0x68] sm:$0xff]   ;;  %4342 = vst [vmem:[#allocation27_spill] sm:$0xff] %v3853_v57 }
 0x1ca   : > { %1550 = vmatprep.subr.bf16.mxu1 %v1247_v23  ;;  %1389 = vmatprep.subr.bf16.mxu0 %v1249_v32  ;;  %v3856_v25 = vpop.f32.mrf.mxu1 }
 0x1cb   : > { %v3799_v59 = vpop.f32.mrf.mxu0  ;;  %4343 = vst [vmem:[#allocation25_spill] sm:$0xff] %v3856_v25  ;;  %v1861_v25 = vld [vmem:[#allocation10 + $0x10] sm:$0xff] }
 0x1cd   : > { %v3801_v61 = vpop.f32.mrf.mxu0  ;;  %1551 = vmatpush1.bf16.msra.mxu1 %v4335_v62  ;;  %1390 = vmatpush1.bf16.msra.mxu0 %v4338_v3  ;;  %v1268_v62 = vpack.c.bf16 %v3799_v59, %v3785_v31  ;;  %v2975_v31 = vld [vmem:[#allocation8 + $0x44] ss:$8 sps:$4 sm:$0xff]   ;;  %v2973_v59 = vld [vmem:[#allocation8 + $0x40] ss:$8 sps:$4 sm:$0xff]   ;;  %v2978_v3 = vld [vmem:[#allocation8 + $0x34] ss:$8 sps:$4 sm:$0xff]  }
 0x1ce   : > { %v1269_v13 = vpack.c.bf16 %v3801_v61, %v3791_v36  ;;  %v2960_v61 = vld [vmem:[#allocation5 + $0xa0] sm:$0xff]  }
 0x1cf   : > { %v3809_v5 = vpop.f32.mrf.mxu0 }
 0x1d0   : > { %1569 = vmatmul.mubr.bf16.vlgmr.msra.gmra.mxu1 %v2944_v60  ;;  %1408 = vmatmul.mubr.bf16.vlgmr.msra.gmra.mxu0 %v2940_v63  ;;  %v2956_v60 = vld [vmem:[#allocation5 + $0x30] sm:$0xff]   ;;  %v1263_v63 = vpack.c.bf16 %v3783_v40, %v3769_v51  ;;  %v2953_v51 = vld [vmem:[#allocation5 + $0x80] sm:$0xff]  }
 0x1d1   : > { %v1096_v6 = vpop.f32.mrf.mxu0  ;;  %1578 = vmatprep.mubr.bf16.mxu1 %v4339_v7  ;;  %1417 = vmatprep.mubr.bf16.mxu0 %v4339_v7  ;;  %v2970_v40 = vld [vmem:[#allocation8 + $0x50] ss:$8 sps:$4 sm:$0xff]  }
 0x1d3   : > { %v1098_v8 = vpop.f32.mrf.mxu0 }
 0x1d4   : > { %v1274_v58 = vpack.c.bf16 %v1098_v8, %v3809_v5  ;;  %v2981_v8 = vld [vmem:[#allocation8 + $0x24] ss:$8 sps:$4 sm:$0xff]  }
 0x1d5   : > { %v1100_v10 = vpop.f32.mrf.mxu0 }
 0x1d6   : > { %v1275_v30 = vpack.c.bf16 %v1100_v10, %v1096_v6  ;;  %v2976_v6 = vld [vmem:[#allocation8 + $0x30] ss:$8 sps:$4 sm:$0xff]   ;;  %v2979_v10 = vld [vmem:[#allocation8 + $0x20] ss:$8 sps:$4 sm:$0xff]  }
 0x1d7   : > { %v1104_v11 = vpop.f32.mrf.mxu0 }
 0x1d8   : > { %1579 = vmatmul.mubr.bf16.gmra.mxu1 %v2946_v9  ;;  %1418 = vmatmul.mubr.bf16.gmra.mxu0 %v2941_v28  ;;  %v2961_v28 = vld [vmem:[#allocation5 + $0xa8] sm:$0xff]  }
 0x1d9   : > { %v1106_v12 = vpop.f32.mrf.mxu0  ;;  %1588 = vmatprep.mubr.bf16.mxu1 %v4339_v7  ;;  %1427 = vmatprep.mubr.bf16.mxu0 %v4339_v7 }
 0x1db   : > { %v1108_v16 = vpop.f32.mrf.mxu0 }
 0x1dc   : > { %v1280_v24 = vpack.c.bf16 %v1108_v16, %v1104_v11  ;;  %v2984_v11 = vld [vmem:[#allocation8 + $0x14] ss:$8 sps:$4 sm:$0xff]   ;;  %v2982_v16 = vld [vmem:[#allocation8 + $0x10] ss:$8 sps:$4 sm:$0xff]  }
 0x1dd   : > { %v1110_v22 = vpop.f32.mrf.mxu0 }
 0x1de   : > { %v1281_v52 = vpack.c.bf16 %v1110_v22, %v1106_v12 }
 0x1df   : > { %v1114_v20 = vpop.f32.mrf.mxu0 }
 0x1e0   : > { %1589 = vmatmul.mubr.bf16.gmra.mxu1 %v2948_v21  ;;  %1428 = vmatmul.mubr.bf16.gmra.mxu0 %v2942_v26  ;;  %v2987_v21 = vld [vmem:[#allocation8 + $0x4] ss:$8 sps:$4 sm:$0xff]   ;;  %v2985_v26 = vld [vmem:[#allocation8] ss:$8 sps:$4 sm:$0xff]  }
 0x1e1   : > { %v1116_v55 = vpop.f32.mrf.mxu0  ;;  %1598 = vmatprep.mubr.bf16.mxu1 %v4339_v7  ;;  %1437 = vmatprep.mubr.bf16.mxu0 %v4339_v7 }
 0x1e3   : > { %v1118_v49 = vpop.f32.mrf.mxu0 }
 0x1e4   : > { %v1286_v32 = vpack.c.bf16 %v1118_v49, %v1114_v20  ;;  %v2962_v20 = vld [vmem:[#allocation5 + $0xb0] sm:$0xff]  }
 0x1e5   : > { %v1120_v41 = vpop.f32.mrf.mxu0 }
 0x1e6   : > { %v1287_v35 = vpack.c.bf16 %v1120_v41, %v1116_v55  ;;  %v2990_v55 = vld [vmem:[#allocation8 + $0xf4] ss:$8 sps:$4 sm:$0xff]   ;;  %v2993_v41 = vld [vmem:[#allocation8 + $0xe4] ss:$8 sps:$4 sm:$0xff]  }
 0x1e7   : > { %v1124_v42 = vpop.f32.mrf.mxu0 }
 0x1e8   : > { %1599 = vmatmul.mubr.bf16.gmra.mxu1 %v2950_v53  ;;  %1438 = vmatmul.mubr.bf16.gmra.mxu0 %v2943_v48  ;;  %v2988_v53 = vld [vmem:[#allocation8 + $0xf0] ss:$8 sps:$4 sm:$0xff]  }
 0x1e9   : > { %v1126_v46 = vpop.f32.mrf.mxu0  ;;  %1608 = vmatprep.mubr.bf16.mxu1 %v4339_v7  ;;  %1447 = vmatprep.mubr.bf16.mxu0 %v4339_v7 }
 0x1eb   : > { %v1128_v39 = vpop.f32.mrf.mxu0 }
 0x1ec   : > { %v1292_v29 = vpack.c.bf16 %v1128_v39, %v1124_v42  ;;  %v2991_v42 = vld [vmem:[#allocation8 + $0xe0] ss:$8 sps:$4 sm:$0xff]   ;;  %v2996_v39 = vld [vmem:[#allocation8 + $0xd4] ss:$8 sps:$4 sm:$0xff]  }
 0x1ed   : > { %v1130_v37 = vpop.f32.mrf.mxu0 }
 0x1ee   : > { %v1293_v23 = vpack.c.bf16 %v1130_v37, %v1126_v46  ;;  %v2963_v46 = vld [vmem:[#allocation5 + $0xb8] sm:$0xff]  }
 0x1ef   : > { %v2994_v37 = vld [vmem:[#allocation8 + $0xd0] ss:$8 sps:$4 sm:$0xff]  }
 0x1f0   : > { %1714 = vmatprep.subr.bf16.mxu0 %v1293_v23  ;;  %1609 = vmatmul.mubr.bf16.gmra.mxu1 %v2952_v33 }
 0x1f1   : > { %1448 = vmatmul.mubr.bf16.gmra.mxu0 %v2945_v38  ;;  %1618 = vmatprep.mubr.bf16.mxu1 %v4339_v7  ;;  %v2999_v38 = vld [vmem:[#allocation8 + $0xc4] ss:$8 sps:$4 sm:$0xff]  }
 0x1f2   : > { %1715 = vmatpush1.bf16.msra.mxu0 %v1292_v29  ;;  %1457 = vmatprep.mubr.bf16.mxu0 %v4339_v7  ;;  %v2997_v29 = vld [vmem:[#allocation8 + $0xc0] ss:$8 sps:$4 sm:$0xff]  }
 0x1f3   : > { %1716 = vmatprep.subr.bf16.mxu0 %v1287_v35 }
 0x1f6   : > { %1717 = vmatpush1.bf16.msra.mxu0 %v1286_v32  ;;  %v3000_v32 = vld [vmem:[#allocation8 + $0xb0] ss:$8 sps:$4 sm:$0xff]  }
 0x1f7   : > { %1718 = vmatprep.subr.bf16.mxu0 %v1281_v52 }
 0x1f8   : > { %1619 = vmatmul.mubr.bf16.gmra.mxu1 %v2954_v44  ;;  %v3005_v44 = vld [vmem:[#allocation8 + $0xa4] ss:$8 sps:$4 sm:$0xff]  }
 0x1f9   : > { %1458 = vmatmul.mubr.bf16.gmra.mxu0 %v2947_v56  ;;  %1628 = vmatprep.mubr.bf16.mxu1 %v4339_v7  ;;  %v3003_v56 = vld [vmem:[#allocation8 + $0xa0] ss:$8 sps:$4 sm:$0xff]  }
 0x1fa   : > { %1719 = vmatpush1.bf16.msra.mxu0 %v1280_v24  ;;  %1467 = vmatprep.mubr.bf16.mxu0 %v4339_v7  ;;  %v3008_v24 = vld [vmem:[#allocation8 + $0x94] ss:$8 sps:$4 sm:$0xff]  }
 0x1fb   : > { %1720 = vmatprep.subr.bf16.mxu0 %v1275_v30 }
 0x1fe   : > { %1721 = vmatpush1.bf16.msra.mxu0 %v1274_v58  ;;  %v3006_v58 = vld [vmem:[#allocation8 + $0x90] ss:$8 sps:$4 sm:$0xff]  }
 0x1ff   : > { %1722 = vmatprep.subr.bf16.mxu0 %v1269_v13 }
 0x200   : > { %1629 = vmatmul.mubr.bf16.gmra.mxu1 %v2956_v60  ;;  %v3011_v60 = vld [vmem:[#allocation8 + $0x84] ss:$8 sps:$4 sm:$0xff]  }
 0x201   : > { %1468 = vmatmul.mubr.bf16.gmra.mxu0 %v2949_v19  ;;  %1638 = vmatprep.mubr.bf16.mxu1 %v4339_v7  ;;  %v3009_v19 = vld [vmem:[#allocation8 + $0x80] ss:$8 sps:$4 sm:$0xff]  }
 0x202   : > { %1723 = vmatpush1.bf16.msra.mxu0 %v1268_v62  ;;  %1477 = vmatprep.mubr.bf16.mxu0 %v4339_v7 }
 0x203   : > { %1724 = vmatprep.subr.bf16.mxu0 %v1263_v63 }
 0x206   : > { %1725 = vmatpush1.bf16.msra.mxu0 %v1262_v34 }
 0x207   : > { %1726 = vmatprep.subr.bf16.mxu0 %v1257_v47  ;;  %v2959_v47 = vld [vmem:[#allocation5 + $0x98] sm:$0xff]  }
 0x208   : > { %1639 = vmatmul.mubr.bf16.gmra.mxu1 %v2958_v1 }
 0x209   : > { %1478 = vmatmul.mubr.bf16.gmra.mxu0 %v2951_v2 }
 0x20a   : > { %1727 = vmatpush1.bf16.msra.mxu0 %v1256_v50  ;;  %1746 = vmatprep.mubr.bf16.mxu0 %v4339_v7  ;;  %v3858_v50 = vpop.f32.mrf.mxu1 }
 0x20b   : > { %1728 = vmatprep.subr.bf16.mxu0 %v1251_v4  ;;  %v2966_v4 = vld [vmem:[#allocation8 + $0x74] ss:$8 sps:$4 sm:$0xff]   ;;  %4344 = vst [vmem:[#allocation28_spill] sm:$0xff] %v3858_v50 }
 0x20c   : > { %2163 = vmatprep.subr.bf16.mxu1 %v2966_v4 }
 0x20d   : > { %2164 = vmatpush1.bf16.msra.mxu1 %v2964_v14 }
 0x20e   : > { %1729 = vmatpush1.bf16.msra.mxu0 %v1250_v0  ;;  %v3861_v0 = vpop.f32.mrf.mxu1  ;;  %2165 = vmatprep.subr.bf16.mxu1 %v2969_v15 }
 0x20f   : > { %4345 = vst [vmem:[#allocation26_spill] sm:$0xff] %v3861_v0  ;;  %v1860_v0 = vld [vmem:[#allocation10 + $0x8] sm:$0xff] }
 0x210   : > { %v3863_v34 = vpop.f32.mrf.mxu1 }
 0x211   : > { %1747 = vmatmul.mubr.bf16.vlgmr.msra.gmra.mxu0 %v2953_v51  ;;  %2166 = vmatpush1.bf16.msra.mxu1 %v2967_v54  ;;  %4346 = vst [vmem:[#allocation22_spill] sm:$0xff] %v3863_v34 }
 0x212   : > { %1756 = vmatprep.mubr.bf16.mxu0 %v4339_v7  ;;  %2167 = vmatprep.subr.bf16.mxu1 %v2972_v43  ;;  %v3866_v36 = vpop.f32.mrf.mxu1 }
 0x213   : > { %4347 = vst [vmem:[#allocation19_spill] sm:$0xff] %v3866_v36 }
 0x214   : > { %v3868_v5 = vpop.f32.mrf.mxu1 }
 0x215   : > { %2168 = vmatpush1.bf16.msra.mxu1 %v2970_v40  ;;  %4348 = vst [vmem:[#allocation23_spill] sm:$0xff] %v3868_v5 }
 0x216   : > { %2169 = vmatprep.subr.bf16.mxu1 %v2975_v31  ;;  %v3871_v9 = vpop.f32.mrf.mxu1 }
 0x217   : > { %4349 = vst [vmem:[#allocation20_spill] sm:$0xff] %v3871_v9  ;;  %v1859_v9 = vld [vmem:[#allocation10] sm:$0xff] }
 0x218   : > { %v3873_v12 = vpop.f32.mrf.mxu1 }
 0x219   : > { %1757 = vmatmul.mubr.bf16.gmra.mxu0 %v2955_v17  ;;  %2170 = vmatpush1.bf16.msra.mxu1 %v2973_v59  ;;  %4350 = vst [vmem:[#allocation29_spill] sm:$0xff] %v3873_v12 }
 0x21a   : > { %1766 = vmatprep.mubr.bf16.mxu0 %v4339_v7  ;;  %2171 = vmatprep.subr.bf16.mxu1 %v2978_v3  ;;  %v3876_v22 = vpop.f32.mrf.mxu1 }
 0x21b   : > { %4351 = vst [vmem:[#allocation30_spill] sm:$0xff] %v3876_v22 }
 0x21c   : > { %v3878_v49 = vpop.f32.mrf.mxu1 }
 0x21d   : > { %2172 = vmatpush1.bf16.msra.mxu1 %v2976_v6  ;;  %4352 = vst [vmem:[#allocation31_spill] sm:$0xff] %v3878_v49 }
 0x21e   : > { %2173 = vmatprep.subr.bf16.mxu1 %v2981_v8  ;;  %v3881_v48 = vpop.f32.mrf.mxu1 }
 0x21f   : > { %4353 = vst [vmem:[#allocation32_spill] sm:$0xff] %v3881_v48 }
 0x220   : > { %v3883_v33 = vpop.f32.mrf.mxu1 }
 0x221   : > { %1767 = vmatmul.mubr.bf16.gmra.mxu0 %v2957_v18  ;;  %2174 = vmatpush1.bf16.msra.mxu1 %v2979_v10  ;;  %4354 = vst [vmem:[#allocation33_spill] sm:$0xff] %v3883_v33 }
 0x222   : > { %1776 = vmatprep.mubr.bf16.mxu0 %v4339_v7  ;;  %2175 = vmatprep.subr.bf16.mxu1 %v2984_v11  ;;  %v3885_v23 = vpop.f32.mrf.mxu1 }
 0x223   : > { %4355 = vst [vmem:[#allocation34_spill] sm:$0xff] %v3885_v23 }
 0x224   : > { %v3887_v35 = vpop.f32.mrf.mxu1 }
 0x225   : > { %2176 = vmatpush1.bf16.msra.mxu1 %v2982_v16  ;;  %4356 = vst [vmem:[#allocation35_spill] sm:$0xff] %v3887_v35 }
 0x226   : > { %2177 = vmatprep.subr.bf16.mxu1 %v2987_v21  ;;  %v3889_v52 = vpop.f32.mrf.mxu1 }
 0x227   : > { %4357 = vst [vmem:[#allocation36_spill] sm:$0xff] %v3889_v52 }
 0x228   : > { %v3891_v30 = vpop.f32.mrf.mxu1 }
 0x229   : > { %1777 = vmatmul.mubr.bf16.gmra.mxu0 %v2959_v47  ;;  %2178 = vmatpush1.bf16.msra.mxu1 %v2985_v26  ;;  %4358 = vst [vmem:[#allocation37_spill] sm:$0xff] %v3891_v30 }
 0x22a   : > { %1786 = vmatprep.mubr.bf16.mxu0 %v4339_v7  ;;  %2179 = vmatprep.subr.bf16.mxu1 %v2990_v55  ;;  %v3893_v13 = vpop.f32.mrf.mxu1 }
 0x22b   : > { %4359 = vst [vmem:[#allocation38_spill] sm:$0xff] %v3893_v13 }
 0x22c   : > { %v3895_v62 = vpop.f32.mrf.mxu1 }
 0x22d   : > { %2180 = vmatpush2.bf16.msra.mxu1 %v2988_v53  ;;  %4360 = vst [vmem:[#allocation39_spill] sm:$0xff] %v3895_v62 }
 0x22e   : > { %2181 = vmatprep.subr.bf16.mxu1 %v2993_v41  ;;  %v3897_v63 = vpop.f32.mrf.mxu1 }
 0x22f   : > { %4361 = vst [vmem:[#allocation40_spill] sm:$0xff] %v3897_v63 }
 0x230   : > { %v3899_v1 = vpop.f32.mrf.mxu1 }
 0x231   : > { %1787 = vmatmul.mubr.bf16.gmra.mxu0 %v2960_v61  ;;  %2182 = vmatpush2.bf16.msra.mxu1 %v2991_v42  ;;  %4362 = vst [vmem:[#allocation41_spill] sm:$0xff] %v3899_v1 }
 0x232   : > { %1796 = vmatprep.mubr.bf16.mxu0 %v4339_v7  ;;  %2183 = vmatprep.subr.bf16.mxu1 %v2996_v39  ;;  %v3901_v2 = vpop.f32.mrf.mxu1 }
 0x233   : > { %4363 = vst [vmem:[#allocation42_spill] sm:$0xff] %v3901_v2 }
 0x234   : > { %v3903_v51 = vpop.f32.mrf.mxu1 }
 0x235   : > { %2184 = vmatpush2.bf16.msra.mxu1 %v2994_v37  ;;  %4364 = vst [vmem:[#allocation43_spill] sm:$0xff] %v3903_v51 }
 0x236   : > { %2185 = vmatprep.subr.bf16.mxu1 %v2999_v38  ;;  %v3905_v17 = vpop.f32.mrf.mxu1 }
 0x237   : > { %4365 = vst [vmem:[#allocation44_spill] sm:$0xff] %v3905_v17 }
 0x238   : > { %v3907_v18 = vpop.f32.mrf.mxu1 }
 0x239   : > { %1797 = vmatmul.mubr.bf16.gmra.mxu0 %v2961_v28  ;;  %2186 = vmatpush2.bf16.msra.mxu1 %v2997_v29  ;;  %4366 = vst [vmem:[#allocation45_spill] sm:$0xff] %v3907_v18 }
 0x23a   : > { %1806 = vmatprep.mubr.bf16.mxu0 %v4339_v7  ;;  %v3909_v4 = vpop.f32.mrf.mxu1 }
 0x23b   : > { %4367 = vst [vmem:[#allocation46_spill] sm:$0xff] %v3909_v4 }
 0x23c   : > { %v3911_v14 = vpop.f32.mrf.mxu1 }
 0x23d   : > { %4368 = vst [vmem:[#allocation47_spill] sm:$0xff] %v3911_v14 }
 0x23e   : > { %v3913_v15 = vpop.f32.mrf.mxu1 }
 0x23f   : > { %4369 = vst [vmem:[#allocation48_spill] sm:$0xff] %v3913_v15 }
 0x240   : > { %v3915_v54 = vpop.f32.mrf.mxu1 }
 0x241   : > { %1807 = vmatmul.mubr.bf16.gmra.mxu0 %v2962_v20  ;;  %4370 = vst [vmem:[#allocation49_spill] sm:$0xff] %v3915_v54 }
 0x242   : > { %1816 = vmatprep.mubr.bf16.mxu0 %v4339_v7  ;;  %v3002_v7 = vld [vmem:[#allocation8 + $0xb4] ss:$8 sps:$4 sm:$0xff]   ;;  %v3917_v47 = vpop.f32.mrf.mxu1 }
 0x243   : > { %2187 = vmatprep.subr.bf16.mxu1 %v3002_v7  ;;  %4371 = vst [vmem:[#allocation50_spill] sm:$0xff] %v3917_v47 }
 0x244   : > { %2188 = vmatpush2.bf16.msra.mxu1 %v3000_v32 }
 0x245   : > { %2189 = vmatprep.subr.bf16.mxu1 %v3005_v44 }
 0x248   : > { %2190 = vmatpush2.bf16.msra.mxu1 %v3003_v56 }
 0x249   : > { %1817 = vmatmul.mubr.bf16.gmra.mxu0 %v2963_v46  ;;  %2191 = vmatprep.subr.bf16.mxu1 %v3008_v24 }
 0x24c   : > { %2192 = vmatpush2.bf16.msra.mxu1 %v3006_v58 }
 0x24d   : > { %2193 = vmatprep.subr.bf16.mxu1 %v3011_v60 }
 0x250   : > { %2194 = vmatpush2.bf16.msra.mxu1 %v3009_v19 }
 0x290   : > { %v1570_v43 = vpop.f32.mrf.mxu1  ;;  %v1409_v40 = vpop.f32.mrf.mxu0 }
 0x291   : > { %v1571_v33 = vadd.f32 %v1570_v43, %v1409_v40 }
 0x292   : > { %v1411_v31 = vpop.f32.mrf.mxu0  ;;  %v1572_v59 = vpop.f32.mrf.mxu1 }
 0x293   : > { %v1573_v49 = vadd.f32 %v1572_v59, %v1411_v31 }
 0x294   : > { %v1413_v61 = vpop.f32.mrf.mxu0  ;;  %v1574_v6 = vpop.f32.mrf.mxu1 }
 0x295   : > { %v1575_v36 = vadd.f32 %v1574_v6, %v1413_v61 }
 0x296   : > { %v1415_v3 = vpop.f32.mrf.mxu0  ;;  %v1576_v28 = vpop.f32.mrf.mxu1 }
 0x297   : > { %v1577_v57 = vadd.f32 %v1576_v28, %v1415_v3 }
 0x298   : > { %v1419_v8 = vpop.f32.mrf.mxu0  ;;  %v1580_v21 = vpop.f32.mrf.mxu1 }
 0x299   : > { %v1581_v43 = vadd.f32 %v1580_v21, %v1419_v8 }
 0x29a   : > { %v3919_v10 = vpop.f32.mrf.mxu0  ;;  %v1582_v55 = vpop.f32.mrf.mxu1 }
 0x29c   : > { %v3921_v11 = vpop.f32.mrf.mxu0  ;;  %v1584_v42 = vpop.f32.mrf.mxu1 }
 0x29d   : > { %v1585_v6 = vadd.f32 %v1584_v42, %v3921_v11  ;;  %v1866_v11 = vld [vmem:[#allocation10 + $0x38] sm:$0xff] }
 0x29e   : > { %v3923_v16 = vpop.f32.mrf.mxu0  ;;  %v3937_v37 = vpop.f32.mrf.mxu1 }
 0x2a0   : > { %v3925_v26 = vpop.f32.mrf.mxu0  ;;  %v3943_v7 = vpop.f32.mrf.mxu1 }
 0x2a1   : > { %v1591_v21 = vadd.f32 %v3943_v7, %v3925_v26 }
 0x2a2   : > { %v3927_v20 = vpop.f32.mrf.mxu0  ;;  %v3949_v56 = vpop.f32.mrf.mxu1 }
 0x2a4   : > { %v3929_v53 = vpop.f32.mrf.mxu0  ;;  %v3955_v60 = vpop.f32.mrf.mxu1 }
 0x2a6   : > { %v3931_v41 = vpop.f32.mrf.mxu0  ;;  %v3961_v54 = vpop.f32.mrf.mxu1 }
 0x2a8   : > { %v3933_v46 = vpop.f32.mrf.mxu0  ;;  %v3967_v4 = vpop.f32.mrf.mxu1 }
 0x2aa   : > { %v3935_v39 = vpop.f32.mrf.mxu0  ;;  %v3973_v51 = vpop.f32.mrf.mxu1 }
 0x2ac   : > { %v3939_v38 = vpop.f32.mrf.mxu0  ;;  %v3979_v63 = vpop.f32.mrf.mxu1 }
 0x2ae   : > { %v3941_v29 = vpop.f32.mrf.mxu0  ;;  %v3983_v13 = vpop.f32.mrf.mxu1 }
 0x2b0   : > { %v3989_v35 = vpop.f32.mrf.mxu1 }
 0x2b1   : > { %v3945_v32 = vpop.f32.mrf.mxu0 }
 0x2b2   : > { %v3993_v12 = vpop.f32.mrf.mxu1 }
 0x2b3   : > { %v3947_v44 = vpop.f32.mrf.mxu0 }
 0x2b5   : > { %v3951_v24 = vpop.f32.mrf.mxu0 }
 0x2b7   : > { %v3953_v58 = vpop.f32.mrf.mxu0 }
 0x2b9   : > { %v3957_v19 = vpop.f32.mrf.mxu0 }
 0x2bb   : > { %v3959_v47 = vpop.f32.mrf.mxu0 }
 0x2bd   : > { %v3963_v15 = vpop.f32.mrf.mxu0 }
 0x2bf   : > { %v3965_v14 = vpop.f32.mrf.mxu0 }
 0x2c1   : > { %v3969_v18 = vpop.f32.mrf.mxu0 }
 0x2c3   : > { %v3971_v17 = vpop.f32.mrf.mxu0 }
 0x2c5   : > { %v3975_v2 = vpop.f32.mrf.mxu0 }
 0x2c7   : > { %v3977_v1 = vpop.f32.mrf.mxu0 }
 0x2c9   : > { %v3981_v62 = vpop.f32.mrf.mxu0 }
 0x2ca   : > { %4372 = vst [vmem:[#allocation51_spill] sm:$0xff] %v3981_v62 }
 0x2cb   : > { %v3985_v30 = vpop.f32.mrf.mxu0 }
 0x2cc   : > { %4373 = vst [vmem:[#allocation52_spill] sm:$0xff] %v3985_v30 }
 0x2cd   : > { %v3987_v52 = vpop.f32.mrf.mxu0 }
 0x2ce   : > { %4374 = vst [vmem:[#allocation53_spill] sm:$0xff] %v3987_v52  ;;  %v3995_v52 = vpop.f32.mrf.mxu1 }
 0x2cf   : > { %v3991_v23 = vpop.f32.mrf.mxu0 }
 0x2d0   : > { %4375 = vst [vmem:[#allocation54_spill] sm:$0xff] %v3991_v23  ;;  %v1862_v23 = vld [vmem:[#allocation10 + $0x18] sm:$0xff]  ;;  %v3999_v3 = vpop.f32.mrf.mxu1 }
 0x2d1   : > { %v1748_v48 = vpop.f32.mrf.mxu0 }
 0x2d2   : > { %v1827_v22 = vadd.f32 %v1748_v48, %v1571_v33  ;;  %v1583_v33 = vadd.f32 %v1582_v55, %v3919_v10 }
 0x2d3   : > { %v1750_v5 = vpop.f32.mrf.mxu0 }
 0x2d4   : > { %v1828_v34 = vadd.f32 %v1750_v5, %v1573_v49  ;;  %v1891_v27 = vadd.f32 %v1859_v9, %v1827_v22 }
 0x2d5   : > { %v1752_v50 = vpop.f32.mrf.mxu0 }
 0x2d6   : > { %v1829_v45 = vadd.f32 %v1752_v50, %v1575_v36  ;;  %v1892_v40 = vadd.f32 %v1860_v0, %v1828_v34  ;;  %v1923_v62 = vmax.f32 %v1891_v27, 0.0  ;;  %v1863_v50 = vld [vmem:[#allocation10 + $0x20] sm:$0xff]  ;;  %v1864_v0 = vld [vmem:[#allocation10 + $0x28] sm:$0xff] }
 0x2d7   : > { %v1754_v30 = vpop.f32.mrf.mxu0 }
 0x2d8   : > { %v1893_v31 = vadd.f32 %v1861_v25, %v1829_v45  ;;  %v1830_v48 = vadd.f32 %v1754_v30, %v1577_v57  ;;  %v1924_v9 = vmax.f32 %v1892_v40, 0.0  ;;  %v1865_v57 = vld [vmem:[#allocation10 + $0x30] sm:$0xff]  ;;  %v1587_v25 = vadd.f32 %v3937_v37, %v3923_v16  ;;  %v4003_v30 = vpop.f32.mrf.mxu1 }
 0x2d9   : > { %v1758_v59 = vpop.f32.mrf.mxu0 }
 0x2da   : > { %v1925_v61 = vmax.f32 %v1893_v31, 0.0  ;;  %v1894_v5 = vadd.f32 %v1862_v23, %v1830_v48  ;;  %v1831_v49 = vadd.f32 %v1758_v59, %v1581_v43  ;;  %v1593_v43 = vadd.f32 %v3949_v56, %v3927_v20  ;;  %v4011_v59 = vpop.f32.mrf.mxu1  ;;  %v1869_v20 = vld [vmem:[#allocation10 + $0x50] sm:$0xff] }
 0x2db   : > { %v1760_v36 = vpop.f32.mrf.mxu0  ;;  %v1597_v56 = vadd.f32 %v3961_v54, %v3931_v41 }
 0x2dc   : > { %v1955_v22 = vpack.c.bf16 %v1925_v61, %v1923_v62  ;;  %v1926_v28 = vmax.f32 %v1894_v5, 0.0  ;;  %v1832_v8 = vadd.f32 %v1760_v36, %v1583_v33  ;;  %v1895_v27 = vadd.f32 %v1863_v50, %v1831_v49  ;;  %v1867_v61 = vld [vmem:[#allocation10 + $0x40] sm:$0xff]  ;;  %v1868_v50 = vld [vmem:[#allocation10 + $0x48] sm:$0xff] }
 0x2dd   : > { %v1762_v45 = vpop.f32.mrf.mxu0  ;;  %v1595_v33 = vadd.f32 %v3955_v60, %v3929_v53  ;;  %v1870_v60 = vld [vmem:[#allocation10 + $0x58] sm:$0xff] }
 0x2de   : > { %v1833_v34 = vadd.f32 %v1762_v45, %v1585_v6  ;;  %v1956_v23 = vpack.c.bf16 %v1926_v28, %v1924_v9  ;;  %v1896_v55 = vadd.f32 %v1864_v0, %v1832_v8  ;;  %v1927_v16 = vmax.f32 %v1895_v27, 0.0  ;;  %v4015_v8 = vpop.f32.mrf.mxu1 }
 0x2df   : > { %v1764_v10 = vpop.f32.mrf.mxu0  ;;  %v1601_v0 = vadd.f32 %v3967_v4, %v3933_v46  ;;  %v1603_v27 = vadd.f32 %v3973_v51, %v3935_v39  ;;  %v1873_v51 = vld [vmem:[#allocation10 + $0x70] sm:$0xff]  ;;  %v1607_v39 = vadd.f32 %v3983_v13, %v3941_v29 }
 0x2e0   : > { %v1897_v62 = vadd.f32 %v1865_v57, %v1833_v34  ;;  %v1834_v42 = vadd.f32 %v1764_v10, %v1587_v25  ;;  %2195 = vmatprep.mubr.bf16.mxu1 %v1956_v23  ;;  %v1928_v7 = vmax.f32 %v1896_v55, 0.0  ;;  %v1871_v55 = vld [vmem:[#allocation10 + $0x60] sm:$0xff] }
 0x2e1   : > { %v1768_v40 = vpop.f32.mrf.mxu0  ;;  %2196 = vmatmul.mubr.bf16.vlgmr.msra.gmra.mxu1 %v1955_v22 }
 0x2e2   : > { %v1929_v37 = vmax.f32 %v1897_v62, 0.0  ;;  %v1898_v31 = vadd.f32 %v1866_v11, %v1834_v42  ;;  %v1835_v48 = vadd.f32 %v1768_v40, %v1591_v21  ;;  %v1605_v11 = vadd.f32 %v3979_v63, %v3939_v38  ;;  %v4023_v21 = vpop.f32.mrf.mxu1  ;;  %v1872_v40 = vld [vmem:[#allocation10 + $0x68] sm:$0xff]  ;;  %v1874_v38 = vld [vmem:[#allocation10 + $0x78] sm:$0xff] }
 0x2e3   : > { %v1770_v26 = vpop.f32.mrf.mxu0 }
 0x2e4   : > { %v1930_v5 = vmax.f32 %v1898_v31, 0.0  ;;  %v1836_v49 = vadd.f32 %v1770_v26, %v1593_v43  ;;  %v1957_v6 = vpack.c.bf16 %v1929_v37, %v1927_v16  ;;  %v1899_v9 = vadd.f32 %v1867_v61, %v1835_v48 }
 0x2e5   : > { %v1772_v36 = vpop.f32.mrf.mxu0  ;;  %v1611_v61 = vadd.f32 %v3989_v35, %v3945_v32 }
 0x2e6   : > { %v1837_v22 = vadd.f32 %v1772_v36, %v1595_v33  ;;  %v1958_v28 = vpack.c.bf16 %v1930_v5, %v1928_v7  ;;  %v1900_v45 = vadd.f32 %v1868_v50, %v1836_v49  ;;  %v1931_v54 = vmax.f32 %v1899_v9, 0.0  ;;  %v4027_v33 = vpop.f32.mrf.mxu1  ;;  %v1875_v9 = vld [vmem:[#allocation10 + $0x80] sm:$0xff] }
 0x2e7   : > { %v1774_v53 = vpop.f32.mrf.mxu0  ;;  %v1613_v49 = vadd.f32 %v3993_v12, %v3947_v44  ;;  %v1617_v12 = vadd.f32 %v3999_v3, %v3953_v58 }
 0x2e8   : > { %v1901_v57 = vadd.f32 %v1869_v20, %v1837_v22  ;;  %v1838_v25 = vadd.f32 %v1774_v53, %v1597_v56  ;;  %2205 = vmatprep.mubr.bf16.mxu1 %v1958_v28  ;;  %v1932_v46 = vmax.f32 %v1900_v45, 0.0  ;;  %v1615_v20 = vadd.f32 %v3995_v52, %v3951_v24  ;;  %v1632_v56 = vpop.f32.mrf.mxu1  ;;  %v1877_v45 = vld [vmem:[#allocation10 + $0x90] sm:$0xff] }
 0x2e9   : > { %v1778_v34 = vpop.f32.mrf.mxu0  ;;  %2206 = vmatmul.mubr.bf16.gmra.mxu1 %v1957_v6  ;;  %v1621_v52 = vadd.f32 %v4003_v30, %v3957_v19 }
 0x2ea   : > { %v1933_v41 = vmax.f32 %v1901_v57, 0.0  ;;  %v1902_v23 = vadd.f32 %v1870_v60, %v1838_v25  ;;  %v1839_v10 = vadd.f32 %v1778_v34, %v1601_v0  ;;  %v1876_v60 = vld [vmem:[#allocation10 + $0x88] sm:$0xff] }
 0x2eb   : > { %v1780_v4 = vpop.f32.mrf.mxu0 }
 0x2ec   : > { %v1934_v62 = vmax.f32 %v1902_v23, 0.0  ;;  %v1840_v42 = vadd.f32 %v1780_v4, %v1603_v27  ;;  %v1959_v43 = vpack.c.bf16 %v1933_v41, %v1931_v54  ;;  %v1903_v37 = vadd.f32 %v1871_v55, %v1839_v10  ;;  %v1634_v27 = vpop.f32.mrf.mxu1  ;;  %v1878_v54 = vld [vmem:[#allocation10 + $0x98] sm:$0xff] }
 0x2ed   : > { %v1782_v16 = vpop.f32.mrf.mxu0  ;;  %v1623_v10 = vadd.f32 %v4011_v59, %v3959_v47  ;;  %v1627_v47 = vadd.f32 %v4023_v21, %v3965_v14 }
 0x2ee   : > { %v1841_v31 = vadd.f32 %v1782_v16, %v1605_v11  ;;  %v1960_v48 = vpack.c.bf16 %v1934_v62, %v1932_v46  ;;  %v1904_v26 = vadd.f32 %v1872_v40, %v1840_v42  ;;  %v1935_v13 = vmax.f32 %v1903_v37, 0.0  ;;  %v1636_v62 = vpop.f32.mrf.mxu1  ;;  %v1879_v42 = vld [vmem:[#allocation10 + $0xa0] sm:$0xff]  ;;  %v1881_v37 = vld [vmem:[#allocation10 + $0xb0] sm:$0xff] }
 0x2ef   : > { %v1784_v63 = vpop.f32.mrf.mxu0  ;;  %v1625_v46 = vadd.f32 %v4015_v8, %v3963_v15  ;;  %v1631_v15 = vadd.f32 %v4027_v33, %v3969_v18 }
 0x2f0   : > { %v1905_v7 = vadd.f32 %v1873_v51, %v1841_v31  ;;  %v1842_v5 = vadd.f32 %v1784_v63, %v1607_v39  ;;  %2215 = vmatprep.mubr.bf16.mxu1 %v1960_v48  ;;  %v1936_v35 = vmax.f32 %v1904_v26, 0.0  ;;  %v1880_v51 = vld [vmem:[#allocation10 + $0xa8] sm:$0xff]  ;;  %v1640_v63 = vpop.f32.mrf.mxu1 }
 0x2f1   : > { %v1788_v6 = vpop.f32.mrf.mxu0  ;;  %2216 = vmatmul.mubr.bf16.gmra.mxu1 %v1959_v43 }
 0x2f2   : > { %v1937_v29 = vmax.f32 %v1905_v7, 0.0  ;;  %v1906_v50 = vadd.f32 %v1874_v38, %v1842_v5  ;;  %v1843_v36 = vadd.f32 %v1788_v6, %v1611_v61  ;;  %v1882_v61 = vld [vmem:[#allocation10 + $0xb8] sm:$0xff]  ;;  %v1633_v5 = vadd.f32 %v1632_v56, %v3971_v17 }
 0x2f3   : > { %v1790_v22 = vpop.f32.mrf.mxu0  ;;  %v1637_v17 = vadd.f32 %v1636_v62, %v3977_v1 }
 0x2f4   : > { %v1938_v32 = vmax.f32 %v1906_v50, 0.0  ;;  %v1844_v28 = vadd.f32 %v1790_v22, %v1613_v49  ;;  %v1961_v53 = vpack.c.bf16 %v1937_v29, %v1935_v13  ;;  %v1907_v44 = vadd.f32 %v1875_v9, %v1843_v36  ;;  %v1642_v50 = vpop.f32.mrf.mxu1  ;;  %v1883_v36 = vld [vmem:[#allocation10 + $0xc0] sm:$0xff] }
 0x2f5   : > { %v1792_v0 = vpop.f32.mrf.mxu0  ;;  %v1635_v29 = vadd.f32 %v1634_v27, %v3975_v2 }
 0x2f6   : > { %v1845_v57 = vadd.f32 %v1792_v0, %v1615_v20  ;;  %v1962_v25 = vpack.c.bf16 %v1938_v32, %v1936_v35  ;;  %v1908_v24 = vadd.f32 %v1876_v60, %v1844_v28  ;;  %v1939_v55 = vmax.f32 %v1907_v44, 0.0  ;;  %v1884_v35 = vld [vmem:[#allocation10 + $0xc8] sm:$0xff]  ;;  %v1885_v28 = vld [vmem:[#allocation10 + $0xd0] sm:$0xff]  ;;  %v1644_v0 = vpop.f32.mrf.mxu1  ;;  %v4376_v44 = vld [vmem:[#allocation51_spill] sm:$0xff] }
 0x2f7   : > { %v1794_v34 = vpop.f32.mrf.mxu0  ;;  %v1641_v2 = vadd.f32 %v1640_v63, %v4376_v44 }
 0x2f8   : > { %v1909_v41 = vadd.f32 %v1877_v45, %v1845_v57  ;;  %v1846_v23 = vadd.f32 %v1794_v34, %v1617_v12  ;;  %2225 = vmatprep.mubr.bf16.mxu1 %v1962_v25  ;;  %v1940_v19 = vmax.f32 %v1908_v24, 0.0  ;;  %v1886_v12 = vld [vmem:[#allocation10 + $0xd8] sm:$0xff]  ;;  %v4377_v34 = vld [vmem:[#allocation52_spill] sm:$0xff] }
 0x2f9   : > { %v1798_v11 = vpop.f32.mrf.mxu0  ;;  %2226 = vmatmul.mubr.bf16.gmra.mxu1 %v1961_v53 }
 0x2fa   : > { %v1941_v58 = vmax.f32 %v1909_v41, 0.0  ;;  %v1910_v3 = vadd.f32 %v1878_v54, %v1846_v23  ;;  %v1847_v4 = vadd.f32 %v1798_v11, %v1621_v52  ;;  %v1643_v54 = vadd.f32 %v1642_v50, %v4377_v34  ;;  %v2281_v34 = vld [vmem:[#allocation11 + $0x28] sm:$0xff] }
 0x2fb   : > { %v1800_v43 = vpop.f32.mrf.mxu0 }
 0x2fc   : > { %v1963_v30 = vpack.c.bf16 %v1941_v58, %v1939_v55  ;;  %v1942_v40 = vmax.f32 %v1910_v3, 0.0  ;;  %v1848_v16 = vadd.f32 %v1800_v43, %v1623_v10  ;;  %v1911_v59 = vadd.f32 %v1879_v42, %v1847_v4  ;;  %v4378_v10 = vld [vmem:[#allocation53_spill] sm:$0xff]  ;;  %v1646_v55 = vpop.f32.mrf.mxu1  ;;  %v1887_v58 = vld [vmem:[#allocation10 + $0xe0] sm:$0xff]  ;;  %v1888_v43 = vld [vmem:[#allocation10 + $0xe8] sm:$0xff] }
 0x2fd   : > { %v1802_v39 = vpop.f32.mrf.mxu0  ;;  %v1645_v11 = vadd.f32 %v1644_v0, %v4378_v10 }
 0x2fe   : > { %v1849_v31 = vadd.f32 %v1802_v39, %v1625_v46  ;;  %v1964_v48 = vpack.c.bf16 %v1942_v40, %v1940_v19  ;;  %v1912_v8 = vadd.f32 %v1880_v51, %v1848_v16  ;;  %v1943_v6 = vmax.f32 %v1911_v59, 0.0  ;;  %v4379_v40 = vld [vmem:[#allocation54_spill] sm:$0xff] }
 0x2ff   : > { %v1804_v38 = vpop.f32.mrf.mxu0  ;;  %v1647_v16 = vadd.f32 %v1646_v55, %v4379_v40  ;;  %v1890_v59 = vld [vmem:[#allocation10 + $0xf8] sm:$0xff] }
 0x300   : > { %v1913_v26 = vadd.f32 %v1881_v37, %v1849_v31  ;;  %v1850_v7 = vadd.f32 %v1804_v38, %v1627_v47  ;;  %2235 = vmatprep.mubr.bf16.mxu1 %v1964_v48  ;;  %v1944_v9 = vmax.f32 %v1912_v8, 0.0  ;;  %v4386_v55 = vld [vmem:[#allocation22_spill] sm:$0xff] }
 0x301   : > { %v1808_v49 = vpop.f32.mrf.mxu0  ;;  %2236 = vmatmul.mubr.bf16.gmra.mxu1 %v1963_v30  ;;  %v1889_v30 = vld [vmem:[#allocation10 + $0xf0] sm:$0xff] }
 0x302   : > { %v1945_v13 = vmax.f32 %v1913_v26, 0.0  ;;  %v1914_v14 = vadd.f32 %v1882_v61, %v1850_v7  ;;  %v1851_v21 = vadd.f32 %v1808_v49, %v1631_v15 }
 0x303   : > { %v1810_v20 = vpop.f32.mrf.mxu0 }
 0x304   : > { %v1965_v22 = vpack.c.bf16 %v1945_v13, %v1943_v6  ;;  %v1946_v18 = vmax.f32 %v1914_v14, 0.0  ;;  %v1852_v33 = vadd.f32 %v1810_v20, %v1633_v5  ;;  %v1915_v56 = vadd.f32 %v1883_v36, %v1851_v21  ;;  %v2276_v6 = vld [vmem:[#allocation11] sm:$0xff]  ;;  %v4380_v13 = vld [vmem:[#allocation21_spill] sm:$0xff]  ;;  %v4381_v36 = vld [vmem:[#allocation24_spill] sm:$0xff] }
 0x305   : > { %v1812_v32 = vpop.f32.mrf.mxu0 }
 0x306   : > { %v1853_v53 = vadd.f32 %v1812_v32, %v1635_v29  ;;  %v1966_v60 = vpack.c.bf16 %v1946_v18, %v1944_v9  ;;  %v1916_v57 = vadd.f32 %v1884_v35, %v1852_v33  ;;  %v1947_v24 = vmax.f32 %v1915_v56, 0.0  ;;  %v2277_v29 = vld [vmem:[#allocation11 + $0x8] sm:$0xff]  ;;  %v4382_v35 = vld [vmem:[#allocation27_spill] sm:$0xff] }
 0x307   : > { %v1814_v45 = vpop.f32.mrf.mxu0 }
 0x308   : > { %v1917_v25 = vadd.f32 %v1885_v28, %v1853_v53  ;;  %v1854_v27 = vadd.f32 %v1814_v45, %v1637_v17  ;;  %2245 = vmatprep.mubr.bf16.mxu1 %v1966_v60  ;;  %v1948_v4 = vmax.f32 %v1916_v57, 0.0  ;;  %v2279_v53 = vld [vmem:[#allocation11 + $0x18] sm:$0xff]  ;;  %v4383_v60 = vld [vmem:[#allocation25_spill] sm:$0xff] }
 0x309   : > { %v1818_v52 = vpop.f32.mrf.mxu0  ;;  %2246 = vmatmul.mubr.bf16.gmra.mxu1 %v1965_v22  ;;  %v2278_v22 = vld [vmem:[#allocation11 + $0x10] sm:$0xff] }
 0x30a   : > { %v1949_v41 = vmax.f32 %v1917_v25, 0.0  ;;  %v1918_v23 = vadd.f32 %v1886_v12, %v1854_v27  ;;  %v1855_v1 = vadd.f32 %v1818_v52, %v1641_v2  ;;  %v2280_v12 = vld [vmem:[#allocation11 + $0x20] sm:$0xff]  ;;  %v4384_v2 = vld [vmem:[#allocation28_spill] sm:$0xff]  ;;  %v4385_v52 = vld [vmem:[#allocation26_spill] sm:$0xff] }
 0x30b   : > { %v1820_v3 = vpop.f32.mrf.mxu0 }
 0x30c   : > { %v1967_v46 = vpack.c.bf16 %v1949_v41, %v1947_v24  ;;  %v1950_v62 = vmax.f32 %v1918_v23, 0.0  ;;  %v1856_v42 = vadd.f32 %v1820_v3, %v1643_v54  ;;  %v1919_v51 = vadd.f32 %v1887_v58, %v1855_v1  ;;  %v2282_v1 = vld [vmem:[#allocation11 + $0x30] sm:$0xff] }
 0x30d   : > { %v1822_v19 = vpop.f32.mrf.mxu0 }
 0x30e   : > { %v1857_v39 = vadd.f32 %v1822_v19, %v1645_v11  ;;  %v1968_v37 = vpack.c.bf16 %v1950_v62, %v1948_v4  ;;  %v1920_v31 = vadd.f32 %v1888_v43, %v1856_v42  ;;  %v1951_v38 = vmax.f32 %v1919_v51, 0.0  ;;  %v2283_v62 = vld [vmem:[#allocation11 + $0x38] sm:$0xff]  ;;  %v4387_v42 = vld [vmem:[#allocation19_spill] sm:$0xff] }
 0x30f   : > { %v1824_v47 = vpop.f32.mrf.mxu0 }
 0x310   : > { %v1921_v48 = vadd.f32 %v1889_v30, %v1857_v39  ;;  %v1858_v63 = vadd.f32 %v1824_v47, %v1647_v16  ;;  %2255 = vmatprep.mubr.bf16.mxu1 %v1968_v37  ;;  %v1952_v8 = vmax.f32 %v1920_v31, 0.0  ;;  %v2284_v30 = vld [vmem:[#allocation11 + $0x40] sm:$0xff]  ;;  %v2285_v47 = vld [vmem:[#allocation11 + $0x48] sm:$0xff] }
 0x311   : > { %2256 = vmatmul.mubr.bf16.gmra.mxu1 %v1967_v46  ;;  %v4388_v16 = vld [vmem:[#allocation23_spill] sm:$0xff]  ;;  %v4389_v31 = vld [vmem:[#allocation20_spill] sm:$0xff] }
 0x312   : > { %v1953_v61 = vmax.f32 %v1921_v48, 0.0  ;;  %v1922_v15 = vadd.f32 %v1890_v59, %v1858_v63 }
 0x314   : > { %v1969_v26 = vpack.c.bf16 %v1953_v61, %v1951_v38  ;;  %v1954_v7 = vmax.f32 %v1922_v15, 0.0 }
 0x316   : > { %v1970_v5 = vpack.c.bf16 %v1954_v7, %v1952_v8 }
 0x318   : > { %2265 = vmatprep.mubr.bf16.mxu1 %v1970_v5  ;;  %v2286_v5 = vld [vmem:[#allocation11 + $0x50] sm:$0xff] }
 0x319   : > { %2266 = vmatmul.mubr.bf16.gmra.mxu1 %v1969_v26 }
 0x3a1   : > { %v2197_v49 = vpop.f32.mrf.mxu1 }
 0x3a2   : > { %v2198_v14 = vadd.f32 %v2197_v49, %v4380_v13 }
 0x3a3   : > { %v2199_v21 = vpop.f32.mrf.mxu1 }
 0x3a4   : > { %v2308_v50 = vadd.f32 %v2276_v6, %v2198_v14  ;;  %v2200_v20 = vadd.f32 %v2199_v21, %v4381_v36  ;;  %v4390_v6 = vld [vmem:[#allocation29_spill] sm:$0xff] }
 0x3a5   : > { %v2201_v9 = vpop.f32.mrf.mxu1 }
 0x3a6   : > { %v2372_v18 = vmul.f32 0.70710677, %v2308_v50  ;;  %v2309_v33 = vadd.f32 %v2277_v29, %v2200_v20  ;;  %v2202_v32 = vadd.f32 %v2201_v9, %v4382_v35  ;;  %v2340_v15 = vmul.f32 0.5, %v2308_v50  ;;  %v2287_v20 = vld [vmem:[#allocation11 + $0x58] sm:$0xff] }
 0x3a7   : > { %v2203_v28 = vpop.f32.mrf.mxu1 }
 0x3a8   : > { %3012 = verf.f32 %v2372_v18  ;;  %v2373_v17 = vmul.f32 0.70710677, %v2309_v33  ;;  %v4057_v56 = vadd.f32 %v2278_v22, %v2202_v32  ;;  %v2204_v0 = vadd.f32 %v2203_v28, %v4383_v60  ;;  %v4391_v18 = vld [vmem:[#allocation30_spill] sm:$0xff]  ;;  %v2288_v28 = vld [vmem:[#allocation11 + $0x60] sm:$0xff] }
 0x3a9   : > { %v2207_v45 = vpop.f32.mrf.mxu1  ;;  %v2341_v29 = vmul.f32 0.5, %v2309_v33  ;;  %v4392_v60 = vld [vmem:[#allocation31_spill] sm:$0xff] }
 0x3aa   : > { %3014 = verf.f32 %v2373_v17  ;;  %v2374_v44 = vmul.f32 0.70710677, %v4057_v56  ;;  %v2208_v57 = vadd.f32 %v2207_v45, %v4384_v2  ;;  %v4062_v25 = vadd.f32 %v2279_v53, %v2204_v0  ;;  %v2289_v2 = vld [vmem:[#allocation11 + $0x68] sm:$0xff] }
 0x3ab   : > { %v2209_v27 = vpop.f32.mrf.mxu1  ;;  %v2342_v33 = vmul.f32 0.5, %v4057_v56 }
 0x3ac   : > { %3016 = verf.f32 %v2374_v44  ;;  %v4064_v54 = vadd.f32 %v2280_v12, %v2208_v57  ;;  %v2210_v24 = vadd.f32 %v2209_v27, %v4385_v52  ;;  %v2375_v41 = vmul.f32 0.70710677, %v4062_v25  ;;  %v4393_v52 = vld [vmem:[#allocation32_spill] sm:$0xff] }
 0x3ad   : > { %v2211_v23 = vpop.f32.mrf.mxu1  ;;  %v2343_v56 = vmul.f32 0.5, %v4062_v25  ;;  %v4394_v25 = vld [vmem:[#allocation33_spill] sm:$0xff] }
 0x3ae   : > { %v2376_v10 = vmul.f32 0.70710677, %v4064_v54  ;;  %v4069_v11 = vadd.f32 %v2281_v34, %v2210_v24  ;;  %v2212_v58 = vadd.f32 %v2211_v23, %v4386_v55  ;;  %3018 = verf.f32 %v2375_v41 }
 0x3af   : > { %v2213_v3 = vpop.f32.mrf.mxu1  ;;  %v2344_v55 = vmul.f32 0.5, %v4064_v54  ;;  %v2291_v54 = vld [vmem:[#allocation11 + $0x78] sm:$0xff] }
 0x3b0   : > { %3020 = verf.f32 %v2376_v10  ;;  %v2377_v4 = vmul.f32 0.70710677, %v4069_v11  ;;  %v4073_v46 = vadd.f32 %v2282_v1, %v2212_v58  ;;  %v2214_v43 = vadd.f32 %v2213_v3, %v4387_v42 }
 0x3b1   : > { %v2217_v19 = vpop.f32.mrf.mxu1 }
 0x3b2   : > { %3022 = verf.f32 %v2377_v4  ;;  %v2378_v40 = vmul.f32 0.70710677, %v4073_v46  ;;  %v2218_v51 = vadd.f32 %v2217_v19, %v4388_v16  ;;  %v4078_v39 = vadd.f32 %v2283_v62, %v2214_v43  ;;  %v2290_v62 = vld [vmem:[#allocation11 + $0x70] sm:$0xff] }
 0x3b3   : > { %v2219_v37 = vpop.f32.mrf.mxu1  ;;  %v2345_v16 = vmul.f32 0.5, %v4069_v11  ;;  %v4396_v11 = vld [vmem:[#allocation35_spill] sm:$0xff] }
 0x3b4   : > { %3024 = verf.f32 %v2378_v40  ;;  %v4081_v59 = vadd.f32 %v2284_v30, %v2218_v51  ;;  %v2220_v48 = vadd.f32 %v2219_v37, %v4389_v31  ;;  %v2379_v38 = vmul.f32 0.70710677, %v4078_v39 }
 0x3b5   : > { %v3013_v63 = vpop.eup %3012  ;;  %v2221_v61 = vpop.f32.mrf.mxu1 }
 0x3b6   : > { %v2436_v8 = vadd.f32 1.0, %v3013_v63  ;;  %v2380_v26 = vmul.f32 0.70710677, %v4081_v59  ;;  %v4086_v7 = vadd.f32 %v2285_v47, %v2220_v48  ;;  %3026 = verf.f32 %v2379_v38  ;;  %v4395_v48 = vld [vmem:[#allocation34_spill] sm:$0xff] }
 0x3b7   : > { %v3015_v49 = vpop.eup %3014  ;;  %v2222_v13 = vadd.f32 %v2221_v61, %v4390_v6  ;;  %v2223_v14 = vpop.f32.mrf.mxu1  ;;  %v2292_v61 = vld [vmem:[#allocation11 + $0x80] sm:$0xff] }
 0x3b8   : > { %v2468_v21 = vmul.f32 %v2436_v8, %v2340_v15  ;;  %v2437_v36 = vadd.f32 1.0, %v3015_v49  ;;  %3028 = verf.f32 %v2380_v26  ;;  %v2381_v22 = vmul.f32 0.70710677, %v4086_v7 }
 0x3b9   : > { %v3017_v9 = vpop.eup %3016  ;;  %v4090_v50 = vadd.f32 %v2286_v5, %v2222_v13  ;;  %v2224_v35 = vadd.f32 %v2223_v14, %v4391_v18  ;;  %v2227_v32 = vpop.f32.mrf.mxu1  ;;  %v2346_v8 = vmul.f32 0.5, %v4073_v46  ;;  %v2293_v14 = vld [vmem:[#allocation11 + $0x88] sm:$0xff]  ;;  %v2347_v46 = vmul.f32 0.5, %v4078_v39 }
 0x3ba   : > { %2500 = vst [vmem:[%s4093_s14] sm:$0xff] %v2468_v21  ;;  %v2469_v17 = vmul.f32 %v2437_v36, %v2341_v29  ;;  %v2438_v53 = vadd.f32 1.0, %v3017_v9  ;;  %v2228_v0 = vadd.f32 %v2227_v32, %v4392_v60  ;;  %3030 = verf.f32 %v2381_v22  ;;  %v2294_v60 = vld [vmem:[#allocation11 + $0x90] sm:$0xff] }
 0x3bb   : > { %v2382_v45 = vmul.f32 0.70710677, %v4090_v50  ;;  %v4099_v12 = vadd.f32 %v2287_v20, %v2224_v35  ;;  %v2229_v44 = vpop.f32.mrf.mxu1  ;;  %v3019_v57 = vpop.eup %3018  ;;  %v4397_v20 = vld [vmem:[#allocation36_spill] sm:$0xff] }
 0x3bc   : > { %2501 = vst [vmem:[%s4093_s14 + $0x8] sm:$0xff] %v2469_v17  ;;  %v2470_v27 = vmul.f32 %v2438_v53, %v2342_v33  ;;  %v4102_v34 = vadd.f32 %v2288_v28, %v2228_v0  ;;  %v2230_v24 = vadd.f32 %v2229_v44, %v4393_v52  ;;  %v2439_v23 = vadd.f32 1.0, %v3019_v57 }
 0x3bd   : > { %v3021_v41 = vpop.eup %3020  ;;  %3032 = verf.f32 %v2382_v45  ;;  %v2383_v1 = vmul.f32 0.70710677, %v4099_v12  ;;  %v2231_v10 = vpop.f32.mrf.mxu1  ;;  %v2348_v28 = vmul.f32 0.5, %v4081_v59  ;;  %v4398_v45 = vld [vmem:[#allocation37_spill] sm:$0xff]  ;;  %v2349_v59 = vmul.f32 0.5, %v4086_v7 }
 0x3be   : > { %2502 = vst [vmem:[%s4093_s14 + $0x10] sm:$0xff] %v2470_v27  ;;  %v2440_v58 = vadd.f32 1.0, %v3021_v41  ;;  %v2384_v3 = vmul.f32 0.70710677, %v4102_v34  ;;  %v4110_v4 = vadd.f32 %v2289_v2, %v2230_v24  ;;  %v2471_v43 = vmul.f32 %v2439_v23, %v2343_v56  ;;  %v4399_v41 = vld [vmem:[#allocation38_spill] sm:$0xff] }
 0x3bf   : > { %v3023_v42 = vpop.eup %3022  ;;  %3034 = verf.f32 %v2383_v1  ;;  %v2232_v19 = vadd.f32 %v2231_v10, %v4394_v25  ;;  %v2233_v30 = vpop.f32.mrf.mxu1  ;;  %v2295_v23 = vld [vmem:[#allocation11 + $0x98] sm:$0xff]  ;;  %v2296_v10 = vld [vmem:[#allocation11 + $0xa0] sm:$0xff] }
 0x3c0   : > { %v2472_v40 = vmul.f32 %v2440_v58, %v2344_v55  ;;  %v2441_v51 = vadd.f32 1.0, %v3023_v42  ;;  %3036 = verf.f32 %v2384_v3  ;;  %2503 = vst [vmem:[%s4093_s14 + $0x18] sm:$0xff] %v2471_v43  ;;  %v2385_v47 = vmul.f32 0.70710677, %v4110_v4  ;;  %v4400_v58 = vld [vmem:[#allocation39_spill] sm:$0xff] }
 0x3c1   : > { %v3025_v37 = vpop.eup %3024  ;;  %v4116_v31 = vadd.f32 %v2290_v62, %v2232_v19  ;;  %v2234_v63 = vadd.f32 %v2233_v30, %v4395_v48  ;;  %v2237_v38 = vpop.f32.mrf.mxu1  ;;  %v2350_v42 = vmul.f32 0.5, %v4090_v50  ;;  %v2351_v48 = vmul.f32 0.5, %v4099_v12 }
 0x3c2   : > { %2504 = vst [vmem:[%s4093_s14 + $0x20] sm:$0xff] %v2472_v40  ;;  %v2473_v15 = vmul.f32 %v2441_v51, %v2345_v16  ;;  %v2442_v26 = vadd.f32 1.0, %v3025_v37  ;;  %v2238_v5 = vadd.f32 %v2237_v38, %v4396_v11  ;;  %3038 = verf.f32 %v2385_v47  ;;  %v4401_v16 = vld [vmem:[#allocation40_spill] sm:$0xff] }
 0x3c3   : > { %v2386_v49 = vmul.f32 0.70710677, %v4116_v31  ;;  %v4123_v6 = vadd.f32 %v2291_v54, %v2234_v63  ;;  %v2239_v13 = vpop.f32.mrf.mxu1  ;;  %v3027_v21 = vpop.eup %3026  ;;  %v2297_v54 = vld [vmem:[#allocation11 + $0xa8] sm:$0xff]  ;;  %v2352_v38 = vmul.f32 0.5, %v4102_v34 }
 0x3c4   : > { %2505 = vst [vmem:[%s4093_s14 + $0x28] sm:$0xff] %v2473_v15  ;;  %v2474_v29 = vmul.f32 %v2442_v26, %v2346_v8  ;;  %v4126_v36 = vadd.f32 %v2292_v61, %v2238_v5  ;;  %v2240_v9 = vadd.f32 %v2239_v13, %v4397_v20  ;;  %v2443_v18 = vadd.f32 1.0, %v3027_v21  ;;  %v4402_v5 = vld [vmem:[#allocation41_spill] sm:$0xff]  ;;  %v4403_v20 = vld [vmem:[#allocation42_spill] sm:$0xff] }
 0x3c5   : > { %v3029_v22 = vpop.eup %3028  ;;  %3040 = verf.f32 %v2386_v49  ;;  %v2387_v35 = vmul.f32 0.70710677, %v4123_v6  ;;  %v2241_v32 = vpop.f32.mrf.mxu1  ;;  %v2298_v13 = vld [vmem:[#allocation11 + $0xb0] sm:$0xff] }
 0x3c6   : > { %2506 = vst [vmem:[%s4093_s14 + $0x30] sm:$0xff] %v2474_v29  ;;  %v2444_v17 = vadd.f32 1.0, %v3029_v22  ;;  %v2388_v33 = vmul.f32 0.70710677, %v4126_v36  ;;  %v4134_v53 = vadd.f32 %v2293_v14, %v2240_v9  ;;  %v2475_v0 = vmul.f32 %v2443_v18, %v2347_v46  ;;  %v2299_v14 = vld [vmem:[#allocation11 + $0xb8] sm:$0xff] }
 0x3c7   : > { %3042 = verf.f32 %v2387_v35  ;;  %v2242_v39 = vadd.f32 %v2241_v32, %v4398_v45  ;;  %v2243_v44 = vpop.f32.mrf.mxu1  ;;  %v3031_v2 = vpop.eup %3030  ;;  %v2353_v9 = vmul.f32 0.5, %v4110_v4  ;;  %v2354_v45 = vmul.f32 0.5, %v4116_v31  ;;  %v2301_v31 = vld [vmem:[#allocation11 + $0xc8] sm:$0xff] }
 0x3c8   : > { %v2476_v57 = vmul.f32 %v2444_v17, %v2348_v28  ;;  %3044 = verf.f32 %v2388_v33  ;;  %v2389_v27 = vmul.f32 0.70710677, %v4134_v53  ;;  %2507 = vst [vmem:[%s4093_s14 + $0x38] sm:$0xff] %v2475_v0  ;;  %v2445_v52 = vadd.f32 1.0, %v3031_v2  ;;  %v4404_v17 = vld [vmem:[#allocation43_spill] sm:$0xff] }
 0x3c9   : > { %v4140_v24 = vadd.f32 %v2294_v60, %v2242_v39  ;;  %v2244_v56 = vadd.f32 %v2243_v44, %v4399_v41  ;;  %v2247_v1 = vpop.f32.mrf.mxu1  ;;  %v2300_v60 = vld [vmem:[#allocation11 + $0xc0] sm:$0xff]  ;;  %v2355_v2 = vmul.f32 0.5, %v4123_v6 }
 0x3ca   : > { %v3033_v55 = vpop.eup %3032  ;;  %2508 = vst [vmem:[%s4093_s14 + $0x40] sm:$0xff] %v2476_v57  ;;  %3046 = verf.f32 %v2389_v27  ;;  %v2248_v3 = vadd.f32 %v2247_v1, %v4400_v58  ;;  %v2477_v62 = vmul.f32 %v2445_v52, %v2349_v59  ;;  %v2356_v58 = vmul.f32 0.5, %v4126_v36 }
 0x3cb   : > { %v2446_v43 = vadd.f32 1.0, %v3033_v55  ;;  %v2390_v7 = vmul.f32 0.70710677, %v4140_v24  ;;  %v2249_v25 = vpop.f32.mrf.mxu1  ;;  %v4147_v30 = vadd.f32 %v2295_v23, %v2244_v56  ;;  %v4405_v23 = vld [vmem:[#allocation44_spill] sm:$0xff]  ;;  %v2302_v55 = vld [vmem:[#allocation11 + $0xd0] sm:$0xff] }
 0x3cc   : > { %v3035_v19 = vpop.eup %3034  ;;  %v4149_v40 = vadd.f32 %v2296_v10, %v2248_v3  ;;  %v2250_v51 = vadd.f32 %v2249_v25, %v4401_v16  ;;  %2509 = vst [vmem:[%s4093_s14 + $0x48] sm:$0xff] %v2477_v62  ;;  %v4406_v3 = vld [vmem:[#allocation45_spill] sm:$0xff] }
 0x3cd   : > { %v3037_v37 = vpop.eup %3036  ;;  %v2478_v47 = vmul.f32 %v2446_v43, %v2350_v42  ;;  %v2447_v63 = vadd.f32 1.0, %v3035_v19  ;;  %3048 = verf.f32 %v2390_v7  ;;  %v2251_v50 = vpop.f32.mrf.mxu1  ;;  %v2391_v15 = vmul.f32 0.70710677, %v4147_v30 }
 0x3ce   : > { %v2448_v61 = vadd.f32 1.0, %v3037_v37  ;;  %v2392_v26 = vmul.f32 0.70710677, %v4149_v40  ;;  %v4158_v11 = vadd.f32 %v2297_v54, %v2250_v51  ;;  %v2252_v49 = vadd.f32 %v2251_v50, %v4402_v5  ;;  %v2303_v37 = vld [vmem:[#allocation11 + $0xd8] sm:$0xff]  ;;  %v4408_v5 = vld [vmem:[#allocation47_spill] sm:$0xff] }
 0x3cf   : > { %2510 = vst [vmem:[%s4093_s14 + $0x50] sm:$0xff] %v2478_v47  ;;  %v2479_v8 = vmul.f32 %v2447_v63, %v2351_v48  ;;  %v2253_v12 = vpop.f32.mrf.mxu1  ;;  %v3039_v21 = vpop.eup %3038  ;;  %3050 = verf.f32 %v2391_v15  ;;  %v2357_v7 = vmul.f32 0.5, %v4134_v53  ;;  %v4407_v47 = vld [vmem:[#allocation46_spill] sm:$0xff] }
 0x3d0   : > { %v2480_v29 = vmul.f32 %v2448_v61, %v2352_v38  ;;  %v2254_v34 = vadd.f32 %v2253_v12, %v4403_v20  ;;  %v2449_v22 = vadd.f32 1.0, %v3039_v21  ;;  %3052 = verf.f32 %v2392_v26  ;;  %v4409_v21 = vld [vmem:[#allocation48_spill] sm:$0xff] }
 0x3d1   : > { %2511 = vst [vmem:[%s4093_s14 + $0x58] sm:$0xff] %v2479_v8  ;;  %v2393_v46 = vmul.f32 0.70710677, %v4158_v11  ;;  %v2257_v18 = vpop.f32.mrf.mxu1  ;;  %v4166_v32 = vadd.f32 %v2298_v13, %v2252_v49  ;;  %v2358_v38 = vmul.f32 0.5, %v4140_v24  ;;  %v2304_v13 = vld [vmem:[#allocation11 + $0xe0] sm:$0xff]  ;;  %v2359_v24 = vmul.f32 0.5, %v4147_v30 }
 0x3d2   : > { %v3041_v35 = vpop.eup %3040  ;;  %2512 = vst [vmem:[%s4093_s14 + $0x60] sm:$0xff] %v2480_v29  ;;  %v4168_v28 = vadd.f32 %v2299_v14, %v2254_v34  ;;  %v2258_v33 = vadd.f32 %v2257_v18, %v4404_v17  ;;  %v2481_v0 = vmul.f32 %v2449_v22, %v2353_v9  ;;  %v2305_v14 = vld [vmem:[#allocation11 + $0xe8] sm:$0xff] }
 0x3d3   : > { %v2450_v39 = vadd.f32 1.0, %v3041_v35  ;;  %3054 = verf.f32 %v2393_v46  ;;  %v2259_v4 = vpop.f32.mrf.mxu1  ;;  %v2394_v57 = vmul.f32 0.70710677, %v4166_v32 }
 0x3d4   : > { %v3043_v44 = vpop.eup %3042  ;;  %v2395_v27 = vmul.f32 0.70710677, %v4168_v28  ;;  %2513 = vst [vmem:[%s4093_s14 + $0x68] sm:$0xff] %v2481_v0  ;;  %v4176_v56 = vadd.f32 %v2300_v60, %v2258_v33  ;;  %v2260_v1 = vadd.f32 %v2259_v4, %v4405_v23  ;;  %v4410_v33 = vld [vmem:[#allocation49_spill] sm:$0xff]  ;;  %v2307_v23 = vld [vmem:[#allocation11 + $0xf8] sm:$0xff] }
 0x3d5   : > { %v3045_v59 = vpop.eup %3044  ;;  %v2482_v52 = vmul.f32 %v2450_v39, %v2354_v45  ;;  %v2451_v41 = vadd.f32 1.0, %v3043_v44  ;;  %v2261_v10 = vpop.f32.mrf.mxu1  ;;  %3056 = verf.f32 %v2394_v57  ;;  %v2306_v0 = vld [vmem:[#allocation11 + $0xf0] sm:$0xff]  ;;  %v2360_v45 = vmul.f32 0.5, %v4149_v40 }
 0x3d6   : > { %v2452_v6 = vadd.f32 1.0, %v3045_v59  ;;  %v2262_v62 = vadd.f32 %v2261_v10, %v4406_v3  ;;  %3058 = verf.f32 %v2395_v27  ;;  %v2396_v25 = vmul.f32 0.70710677, %v4176_v56 }
 0x3d7   : > { %v3047_v42 = vpop.eup %3046  ;;  %2514 = vst [vmem:[%s4093_s14 + $0x70] sm:$0xff] %v2482_v52  ;;  %v2483_v43 = vmul.f32 %v2451_v41, %v2355_v2  ;;  %v2263_v19 = vpop.f32.mrf.mxu1  ;;  %v4184_v54 = vadd.f32 %v2301_v31, %v2260_v1  ;;  %v2361_v2 = vmul.f32 0.5, %v4158_v11  ;;  %v4411_v1 = vld [vmem:[#allocation50_spill] sm:$0xff]  ;;  %v2362_v11 = vmul.f32 0.5, %v4166_v32 }
 0x3d8   : > { %v2484_v16 = vmul.f32 %v2452_v6, %v2356_v58  ;;  %v2453_v51 = vadd.f32 1.0, %v3047_v42  ;;  %v4186_v36 = vadd.f32 %v2302_v55, %v2262_v62  ;;  %3060 = verf.f32 %v2396_v25 }
 0x3d9   : > { %2515 = vst [vmem:[%s4093_s14 + $0x78] sm:$0xff] %v2483_v43  ;;  %v2264_v48 = vadd.f32 %v2263_v19, %v4407_v47  ;;  %v2267_v63 = vpop.f32.mrf.mxu1  ;;  %v2397_v61 = vmul.f32 0.70710677, %v4184_v54  ;;  %v2363_v62 = vmul.f32 0.5, %v4168_v28  ;;  %v2365_v28 = vmul.f32 0.5, %v4184_v54 }
 0x3da   : > { %v3049_v50 = vpop.eup %3048  ;;  %2516 = vst [vmem:[%s4093_s14 + $0x80] sm:$0xff] %v2484_v16  ;;  %v2485_v53 = vmul.f32 %v2453_v51, %v2357_v7  ;;  %v2398_v8 = vmul.f32 0.70710677, %v4186_v36  ;;  %v2268_v49 = vadd.f32 %v2267_v63, %v4408_v5  ;;  %v2364_v16 = vmul.f32 0.5, %v4176_v56 }
 0x3db   : > { %v2454_v15 = vadd.f32 1.0, %v3049_v50  ;;  %v4194_v26 = vadd.f32 %v2303_v37, %v2264_v48  ;;  %v2269_v12 = vpop.f32.mrf.mxu1  ;;  %3062 = verf.f32 %v2397_v61  ;;  %v2366_v63 = vmul.f32 0.5, %v4186_v36 }
 0x3dc   : > { %2517 = vst [vmem:[%s4093_s14 + $0x88] sm:$0xff] %v2485_v53  ;;  %v2270_v29 = vadd.f32 %v2269_v12, %v4409_v21  ;;  %v3051_v20 = vpop.eup %3050  ;;  %3064 = verf.f32 %v2398_v8  ;;  %v2336_v35 = vadd.f32 %v2304_v13, %v2268_v49 }
 0x3dd   : > { %v2486_v34 = vmul.f32 %v2454_v15, %v2358_v38  ;;  %v2399_v9 = vmul.f32 0.70710677, %v4194_v26  ;;  %v2271_v22 = vpop.f32.mrf.mxu1  ;;  %v3053_v46 = vpop.eup %3052  ;;  %v2455_v18 = vadd.f32 1.0, %v3051_v20  ;;  %v2367_v61 = vmul.f32 0.5, %v4194_v26 }
 0x3de   : > { %v2337_v17 = vadd.f32 %v2305_v14, %v2270_v29  ;;  %v2272_v60 = vadd.f32 %v2271_v22, %v4410_v33  ;;  %v2456_v39 = vadd.f32 1.0, %v3053_v46  ;;  %v2400_v57 = vmul.f32 0.70710677, %v2336_v35 }
 0x3df   : > { %2518 = vst [vmem:[%s4093_s14 + $0x90] sm:$0xff] %v2486_v34  ;;  %3066 = verf.f32 %v2399_v9  ;;  %v2273_v4 = vpop.f32.mrf.mxu1  ;;  %v2487_v44 = vmul.f32 %v2455_v18, %v2359_v24  ;;  %v2368_v49 = vmul.f32 0.5, %v2336_v35 }
 0x3e0   : > { %v3055_v30 = vpop.eup %3054  ;;  %v2488_v27 = vmul.f32 %v2456_v39, %v2360_v45  ;;  %v2401_v52 = vmul.f32 0.70710677, %v2337_v17  ;;  %v2338_v41 = vadd.f32 %v2306_v0, %v2272_v60  ;;  %3068 = verf.f32 %v2400_v57 }
 0x3e1   : > { %v2457_v59 = vadd.f32 1.0, %v3055_v30  ;;  %2519 = vst [vmem:[%s4093_s14 + $0x98] sm:$0xff] %v2487_v44  ;;  %v2274_v31 = vadd.f32 %v2273_v4, %v4411_v1  ;;  %v2369_v36 = vmul.f32 0.5, %v2337_v17 }
 0x3e2   : > { %v3057_v40 = vpop.eup %3056  ;;  %2520 = vst [vmem:[%s4093_s14 + $0xa0] sm:$0xff] %v2488_v27  ;;  %3070 = verf.f32 %v2401_v52  ;;  %v2402_v55 = vmul.f32 0.70710677, %v2338_v41  ;;  %v2370_v29 = vmul.f32 0.5, %v2338_v41 }
 0x3e3   : > { %v2489_v10 = vmul.f32 %v2457_v59, %v2361_v2  ;;  %v3059_v58 = vpop.eup %3058  ;;  %v2458_v6 = vadd.f32 1.0, %v3057_v40  ;;  %v2339_v3 = vadd.f32 %v2307_v23, %v2274_v31 }
 0x3e4   : > { %v2459_v42 = vadd.f32 1.0, %v3059_v58  ;;  %3072 = verf.f32 %v2402_v55 }
 0x3e5   : > { %2521 = vst [vmem:[%s4093_s14 + $0xa8] sm:$0xff] %v2489_v10  ;;  %v3061_v43 = vpop.eup %3060  ;;  %v2490_v7 = vmul.f32 %v2458_v6, %v2362_v11  ;;  %v2403_v25 = vmul.f32 0.70710677, %v2339_v3  ;;  %v2371_v9 = vmul.f32 0.5, %v2339_v3 }
 0x3e6   : > { %v2491_v19 = vmul.f32 %v2459_v42, %v2363_v62  ;;  %v2460_v51 = vadd.f32 1.0, %v3061_v43 }
 0x3e7   : > { %2522 = vst [vmem:[%s4093_s14 + $0xb0] sm:$0xff] %v2490_v7  ;;  %3074 = verf.f32 %v2403_v25 }
 0x3e8   : > { %v3063_v32 = vpop.eup %3062  ;;  %2523 = vst [vmem:[%s4093_s14 + $0xb8] sm:$0xff] %v2491_v19  ;;  %v2492_v37 = vmul.f32 %v2460_v51, %v2364_v16 }
 0x3e9   : > { %v3065_v47 = vpop.eup %3064  ;;  %v2461_v48 = vadd.f32 1.0, %v3063_v32 }
 0x3ea   : > { %2524 = vst [vmem:[%s4093_s14 + $0xc0] sm:$0xff] %v2492_v37  ;;  %v2462_v50 = vadd.f32 1.0, %v3065_v47 }
 0x3eb   : > { %v2493_v38 = vmul.f32 %v2461_v48, %v2365_v28 }
 0x3ec   : > { %v3067_v53 = vpop.eup %3066  ;;  %v2494_v56 = vmul.f32 %v2462_v50, %v2366_v63 }
 0x3ed   : > { %v2463_v15 = vadd.f32 1.0, %v3067_v53  ;;  %2525 = vst [vmem:[%s4093_s14 + $0xc8] sm:$0xff] %v2493_v38  ;;  %v3069_v8 = vpop.eup %3068 }
 0x3ee   : > { %2526 = vst [vmem:[%s4093_s14 + $0xd0] sm:$0xff] %v2494_v56  ;;  %v2464_v13 = vadd.f32 1.0, %v3069_v8 }
 0x3ef   : > { %v2495_v5 = vmul.f32 %v2463_v15, %v2367_v61  ;;  %v3071_v54 = vpop.eup %3070 }
 0x3f0   : > { %v2465_v12 = vadd.f32 1.0, %v3071_v54  ;;  %v2496_v21 = vmul.f32 %v2464_v13, %v2368_v49 }
 0x3f1   : > { %2527 = vst [vmem:[%s4093_s14 + $0xd8] sm:$0xff] %v2495_v5  ;;  %v3073_v14 = vpop.eup %3072 }
 0x3f2   : > { %v2497_v26 = vmul.f32 %v2465_v12, %v2369_v36  ;;  %v2466_v20 = vadd.f32 1.0, %v3073_v14  ;;  %2528 = vst [vmem:[%s4093_s14 + $0xe0] sm:$0xff] %v2496_v21 }
 0x3f4   : > { %v3075_v34 = vpop.eup %3074  ;;  %2529 = vst [vmem:[%s4093_s14 + $0xe8] sm:$0xff] %v2497_v26  ;;  %v2498_v24 = vmul.f32 %v2466_v20, %v2370_v29 }
 0x3f5   : > { %v2467_v22 = vadd.f32 1.0, %v3075_v34 }
 0x3f6   : > { %2530 = vst [vmem:[%s4093_s14 + $0xf0] sm:$0xff] %v2498_v24 }
 0x3f7   : > { %v2499_v46 = vmul.f32 %v2467_v22, %v2371_v9 }
 0x3f9   : > { %2531 = vst [vmem:[%s4093_s14 + $0xf8] sm:$0xff] %v2499_v46 }
 0x3fa   : > { %3247 = shalt.err (!%p3244_p3)
}
 0x3fb   : > { %s3248_s13 = scalar_lea.hbm %s4229_s26, 4096  ;;  %s3252_s28 = scalar_lea.hbm %s4281_s6, 8192 }
 0x3fc   : > { %p3249_p4 = scmp.ne.s32.totalorder %s4229_s26, %s3248_s13  ;;  %p3253_p2 = scmp.lt.s32.totalorder %s4229_s26, %s4281_s6 }
 0x3fd   : > { %p3254_p7 = scmp.lt.s32.totalorder %s3252_s28, %s3248_s13 }
 0x3fe   : > { %p3250_p12 = pnand %p3249_p4, %p4412_p11 }
 0x3ff   : > { %p3255_p8 = por %p3254_p7, %p3253_p2 }
 0x400   : > { %p3251_p6 = pneg %p3250_p12 }
 0x402   : > { %p3256_p10 = pnand %p3255_p8, %p3251_p6 }
 0x404   : > { %3259 = shalt.err (!%p3256_p10)
}
 0x405   : > { %s3328_s10 = smov 256   ;;  %s3329_s8 = smov 16  }
 0x406   : > { %2846 = dma.vmem_to_hbm [thread:$0]  (%p4412_p11), %s4231_s29, 4096, %s4229_s26, %s2533_s27, %s3328_s10, %s3328_s10, %s3329_s8  }
 0x407 PF: > { %s2562_s16 = sand.u32 1, %s3298_s21   ;;  %p4413_p13 = scmp.ne.s32.totalorder %s4303_s17, 0 }
 0x408   : > { %p4414_p0 = scmp.ge.s32.totalorder %s3310_s24, 2  ;;  %s2563_s9 = scalar_lea.sflag [#allocation4], %s2562_s16 }
 0x40a   : > { %p2869_p5 = pnand %p4414_p0, %p4413_p13 }
 0x40c   : > { %p2870_p9 = pneg %p2869_p5 }
 0x40e   : > { %3293 = dma.done.wait (%p2870_p9), %s2563_s9, 4096  }
 0x40f   : > { %3295 = vsyncadd (%p2870_p9), %s2563_s9, 4294963200  ;;  %p22_p1 = scmp.ge.s32.totalorder %s3460_s7, 4   ;;  %s4415_s21 = smov %s3302_s22 }
 0x410   : > { %s4416_s22 = smov %s3306_s23  ;;  %s4417_s23 = smov %s3472_s30 }
 0x411   : > { %s4418_s24 = smov %s3460_s7  ;;  %24 = sbr.rel (!%p22_p1) target bundleno = 8 (0x8), region = 111 }
 0x416   :  { %2568 = vsyncpa [#allocation3], 1 }
 0x417   :  { %2570 = vsyncpa [#allocation3 + $0x1], 1 }
 0x418   :  { %2571 = vsyncpa [#allocation6], 1 }
 0x419   :  { %2572 = vsyncpa [#allocation9], 1 }
 0x41a   :  { %2573 = vsyncpa [#allocation12], 1 }
 0x41b   :  { %2574 = vsyncpa [#allocation4], 1 }
 0x41c   :  { %2576 = vsyncpa [#allocation4 + $0x1], 1 }

</bundles_post_ra>
